<compile_context>
chip_gen: v5e
topology: v5e:2x2
jax: 0.10.0
libtpu: 0.0.40
codegen_flags: <defaults>
</compile_context>

<pallas_src>
import math

import jax
import jax.numpy as jnp
from jax import lax
from jax.experimental import pallas as pl
from jax.experimental.pallas import tpu as pltpu


# MXU inputs cast to bf16 (f32 accumulation; f32 elementwise gate math; exact
# f32 embedding gather).  Set to jnp.float32 for exact-f32 matmuls.
MXU_DTYPE = jnp.bfloat16

# Window depth for the embedding-row gather DMA pipeline.
GATHER_INFLIGHT = 8

LANE = 128
SUBLANE = 8


def _round_up(x, m):
    return ((x + m - 1) // m) * m


# ----------------------------------------------------------------------------
# Fused embedding-gather + multi-layer LSTM encoder kernel (gridless, VMEM-resident)
# ----------------------------------------------------------------------------
def make_encoder_kernel(num_layers, seq_len, batch_pad, hidden_pad):
    """All (n_rows, .) buffers are time-major flattened: row r = t*batch_pad + b."""
    n_rows = seq_len * batch_pad
    n_inflight = min(GATHER_INFLIGHT, n_rows)

    def kernel(ids_ref, table_ref, *args):
        w_refs = args[:3 * num_layers]
        y_ref, hN_ref, cN_ref = args[3 * num_layers:3 * num_layers + 3]
        x_ref, gx_ref, act_ref, gsem = args[3 * num_layers + 3:]

        # ------------------------------------------------------------------
        # Embedding: exact row gather from the HBM table via a windowed
        # async-copy pipeline (n_inflight DMAs in flight).  No one-hot matmul,
        # table never resides in VMEM.
        # TODO(synk): at realistic E/T gather several rows per DMA descriptor
        # and overlap the gather tail with layer-0's hoisted input projection.
        # ------------------------------------------------------------------
        def row_copy(r, slot):
            return pltpu.make_async_copy(
                table_ref.at[ids_ref[r]], x_ref.at[r], gsem.at[slot])

        for r in range(n_inflight):          # prime the window (static)
            row_copy(r, r).start()

        @pl.loop(0, n_rows)
        def _(r):
            slot = r % n_inflight
            row_copy(r, slot).wait()

            @pl.when(r + n_inflight < n_rows)
            def _():
                row_copy(r + n_inflight, slot).start()

        # ------------------------------------------------------------------
        # Multi-layer LSTM (PyTorch gate order [i, f, g, o], b_ih+b_hh folded).
        # ------------------------------------------------------------------
        for layer in range(num_layers):
            wihT = w_refs[3 * layer][...]          # (E_in_p, 4*Hp)  MXU dtype
            whhT = w_refs[3 * layer + 1][...]      # (Hp,     4*Hp)  MXU dtype
            bias = w_refs[3 * layer + 2][...]      # (1,      4*Hp)  f32

            xin_ref = x_ref if layer == 0 else act_ref
            xin = xin_ref[...].astype(wihT.dtype)

            # Input projection for ALL timesteps hoisted out of the recurrence
            # as one MXU matmul; bias broadcast folded in once (not per step).
            # TODO(synk): time-chunk this buffer at realistic (T*B, 4H) to fit
            # v7x's 64 MiB VMEM and interleave it under the previous layer's
            # recurrence.
            gx_ref[...] = (
                jnp.dot(xin, wihT, preferred_element_type=jnp.float32) + bias)

            def step(t, carry, whhT=whhT):
                h, c = carry
                r = pl.multiple_of(t * batch_pad, batch_pad)
                # TODO(synk): hold whhT in MXU weight staging across the
                # recurrence (matmul_push_rhs / matmul_acc_lhs).
                gates = gx_ref[pl.ds(r, batch_pad), :] + jnp.dot(
                    h.astype(whhT.dtype), whhT,
                    preferred_element_type=jnp.float32)        # (Bp, 4Hp) f32
                # hidden_pad is a lane multiple: each gate slice is a whole
                # lane tile -> free view, no XLU relayout per step.
                i_g = jax.nn.sigmoid(gates[:, 0 * hidden_pad:1 * hidden_pad])
                f_g = jax.nn.sigmoid(gates[:, 1 * hidden_pad:2 * hidden_pad])
                g_g = jnp.tanh(gates[:, 2 * hidden_pad:3 * hidden_pad])
                o_g = jax.nn.sigmoid(gates[:, 3 * hidden_pad:4 * hidden_pad])
                c_new = f_g * c + i_g * g_g
                h_new = o_g * jnp.tanh(c_new)
                # Full (8, 128k)-aligned tile store -- no masked partial vst.
                act_ref[pl.ds(r, batch_pad), :] = h_new
                return h_new, c_new

            zeros = jnp.zeros((batch_pad, hidden_pad), jnp.float32)
            h_f, c_f = lax.fori_loop(0, seq_len, step, (zeros, zeros),
                                     unroll=min(8, seq_len))

            hN_ref[pl.ds(layer * batch_pad, batch_pad), :] = h_f
            cN_ref[pl.ds(layer * batch_pad, batch_pad), :] = c_f

        # ------------------------------------------------------------------
        # Epilogue: relayout the last layer's time-major rows into the
        # batch-major (Bp, T, Hp) output while still VMEM-resident
        # (strided sublane reads + full-tile writes) -- no wrapper-side
        # HBM-round-trip transpose.
        # ------------------------------------------------------------------
        for b in range(batch_pad):
            y_ref[b] = act_ref[pl.ds(b, seq_len, stride=batch_pad), :]

    return kernel


def encoder_forward(ids_tm, table, packed_layers, *, seq_len, batch_pad, hidden_pad):
    """ids_tm: (T*Bp,) int32, time-major (row = t*Bp + b)."""
    num_layers = len(packed_layers)
    n_rows = seq_len * batch_pad
    embed_dim = table.shape[1]

    flat_w = []
    for lp in packed_layers:
        flat_w += [lp["w_ihT"], lp["w_hhT"], lp["b"]]

    kernel = make_encoder_kernel(num_layers, seq_len, batch_pad, hidden_pad)

    smem = pl.BlockSpec(memory_space=pltpu.MemorySpace.SMEM)
    hbm = pl.BlockSpec(memory_space=pl.ANY)       # table stays in HBM
    vmem = pl.BlockSpec(memory_space=pltpu.MemorySpace.VMEM)

    # Explicit scoped-VMEM budget (defaults are 16 MiB v5e / 32 MiB v6e,v7x).
    f32 = 4
    needed = (
        n_rows * embed_dim * f32                         # gathered embeddings
        + n_rows * 4 * hidden_pad * f32                  # hoisted input gates
        + n_rows * hidden_pad * f32                      # layer activations
        + batch_pad * seq_len * hidden_pad * f32         # y output
        + 2 * num_layers * batch_pad * hidden_pad * f32  # h_n / c_n
        + sum(w.size * w.dtype.itemsize for w in flat_w))
    vmem_limit = int(min(max(2 * needed + (4 << 20), 8 << 20), 64 << 20))

    y, h_n, c_n = pl.pallas_call(
        kernel,
        out_shape=(
            jax.ShapeDtypeStruct((batch_pad, seq_len, hidden_pad), jnp.float32),
            jax.ShapeDtypeStruct((num_layers * batch_pad, hidden_pad), jnp.float32),
            jax.ShapeDtypeStruct((num_layers * batch_pad, hidden_pad), jnp.float32),
        ),
        in_specs=[smem, hbm] + [vmem] * (3 * num_layers),
        out_specs=(vmem, vmem, vmem),
        scratch_shapes=[
            pltpu.VMEM((n_rows, embed_dim), jnp.float32),       # gathered x
            pltpu.VMEM((n_rows, 4 * hidden_pad), jnp.float32),  # hoisted gates
            pltpu.VMEM((n_rows, hidden_pad), jnp.float32),      # layer activations
            pltpu.SemaphoreType.DMA((min(GATHER_INFLIGHT, n_rows),)),
        ],
        compiler_params=pltpu.CompilerParams(vmem_limit_bytes=vmem_limit),
    )(ids_tm, table, *flat_w)
    return y, h_n, c_n


# ----------------------------------------------------------------------------
# Parameters (exact nn.Embedding / nn.LSTM shapes) + exact zero-padded packing
# ----------------------------------------------------------------------------
def init_params(key, vocab_size, embedding_dim, hidden_dim, num_layers):
    keys = jax.random.split(key, 1 + 4 * num_layers)
    params = {"embedding": jax.random.normal(
        keys[0], (vocab_size, embedding_dim), jnp.float32)}
    bound = 1.0 / math.sqrt(hidden_dim)
    layers = []
    for layer in range(num_layers):
        in_dim = embedding_dim if layer == 0 else hidden_dim
        k_ih, k_hh, k_bih, k_bhh = keys[1 + 4 * layer: 1 + 4 * (layer + 1)]
        layers.append({
            "w_ih": jax.random.uniform(k_ih, (4 * hidden_dim, in_dim),
                                       jnp.float32, -bound, bound),
            "w_hh": jax.random.uniform(k_hh, (4 * hidden_dim, hidden_dim),
                                       jnp.float32, -bound, bound),
            "b_ih": jax.random.uniform(k_bih, (4 * hidden_dim,),
                                       jnp.float32, -bound, bound),
            "b_hh": jax.random.uniform(k_bhh, (4 * hidden_dim,),
                                       jnp.float32, -bound, bound),
        })
    params["lstm"] = layers
    return params


def _pad_gate_rows(w, h, hp):
    # (4h, cols) -> (4hp, cols): zero-pad each gate block [i,f,g,o] to hp rows.
    cols = w.shape[1]
    return jnp.pad(w.reshape(4, h, cols),
                   ((0, 0), (0, hp - h), (0, 0))).reshape(4 * hp, cols)


def _pack_layer(lp, layer, hidden, hidden_pad):
    # Exact zero-padding: padded gate pre-activations are 0, so padded h/c stay 0.
    h, hp = hidden, hidden_pad
    w_ih = _pad_gate_rows(lp["w_ih"], h, hp)                    # (4hp, in_dim)
    w_hh = _pad_gate_rows(lp["w_hh"], h, hp)                    # (4hp, h)
    w_hh = jnp.pad(w_hh, ((0, 0), (0, hp - h)))                 # (4hp, hp)
    if layer > 0:
        w_ih = jnp.pad(w_ih, ((0, 0), (0, hp - h)))             # (4hp, hp)
    b = (lp["b_ih"] + lp["b_hh"]).reshape(4, h)
    b = jnp.pad(b, ((0, 0), (0, hp - h))).reshape(1, 4 * hp)
    return {
        "w_ihT": w_ih.T.astype(MXU_DTYPE),                      # (in_dim_p, 4hp)
        "w_hhT": w_hh.T.astype(MXU_DTYPE),                      # (hp, 4hp)
        "b": b.astype(jnp.float32),                             # (1, 4hp)
    }


# ----------------------------------------------------------------------------
# Forward pass (matches PointerGeneratorNetwork.forward)
# ----------------------------------------------------------------------------
@jax.jit
def pgn_forward(params, context, question):
    del question  # unused by the reference forward (decoder/attention/fc unused)
    B, T = context.shape
    H = params["lstm"][0]["w_hh"].shape[1]
    L = len(params["lstm"])

    Bp = _round_up(max(B, 1), SUBLANE)   # sublane-aligned batch
    Hp = _round_up(H, LANE)              # lane-aligned hidden

    packed = [_pack_layer(lp, i, H, Hp) for i, lp in enumerate(params["lstm"])]

    # Pad batch (padded rows gather id 0 and are discarded) and flatten
    # time-major once: row = t*Bp + b.
    ctx = jnp.pad(context.astype(jnp.int32), ((0, Bp - B), (0, 0)))
    ids_tm = jnp.transpose(ctx, (1, 0)).reshape(T * Bp)

    y, h_n, c_n = encoder_forward(
        ids_tm, params["embedding"], packed,
        seq_len=T, batch_pad=Bp, hidden_pad=Hp)

    context_outputs = y[:B, :, :H]                     # (B, T, H)
    hidden = h_n.reshape(L, Bp, Hp)[:, :B, :H]         # (L, B, H)
    cell = c_n.reshape(L, Bp, Hp)[:, :B, :H]           # (L, B, H)
    return context_outputs, (hidden, cell)


if __name__ == "__main__":
    vocab_size = 64
    embedding_dim = 32
    hidden_dim = 32
    num_layers = 2
    dropout = 0.0  # eval-mode semantics (dropout is a no-op)

    B, T_ctx, T_q = 2, 8, 6

    key = jax.random.PRNGKey(0)
    k_param, k_ctx, k_q = jax.random.split(key, 3)
    params = init_params(k_param, vocab_size, embedding_dim, hidden_dim,
                         num_layers)
    context = jax.random.randint(k_ctx, (B, T_ctx), 0, vocab_size, jnp.int32)
    question = jax.random.randint(k_q, (B, T_q), 0, vocab_size, jnp.int32)

    context_outputs, (hidden, cell) = pgn_forward(params, context, question)
    jax.block_until_ready((context_outputs, hidden, cell))

    assert context_outputs.shape == (B, T_ctx, hidden_dim)
    assert hidden.shape == (num_layers, B, hidden_dim)
    assert cell.shape == (num_layers, B, hidden_dim)
    assert bool(jnp.all(jnp.isfinite(context_outputs)))
    assert bool(jnp.all(jnp.isfinite(hidden))) and bool(jnp.all(jnp.isfinite(cell)))
    print("KERNEL_OK")
</pallas_src>

<mosaic_0001>
module attributes {stable_mosaic.version = 11 : i64} {
  func.func @kernel(%arg0: memref<64xi32, #tpu.memory_space<smem>>, %arg1: memref<64x32xf32, #tpu.memory_space<any>>, %arg2: memref<32x512xbf16, #tpu.memory_space<vmem>>, %arg3: memref<128x512xbf16, #tpu.memory_space<vmem>>, %arg4: memref<1x512xf32, #tpu.memory_space<vmem>>, %arg5: memref<128x512xbf16, #tpu.memory_space<vmem>>, %arg6: memref<128x512xbf16, #tpu.memory_space<vmem>>, %arg7: memref<1x512xf32, #tpu.memory_space<vmem>>, %arg8: memref<8x8x128xf32, #tpu.memory_space<vmem>>, %arg9: memref<16x128xf32, #tpu.memory_space<vmem>>, %arg10: memref<16x128xf32, #tpu.memory_space<vmem>>, %arg11: memref<64x32xf32, #tpu.memory_space<vmem>>, %arg12: memref<64x512xf32, #tpu.memory_space<vmem>>, %arg13: memref<64x128xf32, #tpu.memory_space<vmem>>, %arg14: memref<8x!tpu.dma_semaphore, #tpu.memory_space<semaphore_mem>>) attributes {dimension_semantics = [], scalar_prefetch = 0 : i64, scratch_operands = 4 : i64, tpu.core_type = #tpu.core_type<tc>} {
    %c0 = arith.constant 0 : index
    %0 = memref.load %arg0[%c0] : memref<64xi32, #tpu.memory_space<smem>>
    %c0_i32 = arith.constant 0 : i32
    %c0_i32_0 = arith.constant 0 : i32
    %c0_i32_1 = arith.constant 0 : i32
    %1 = tpu.memref_slice %arg1[%0, %c0_i32_1] : memref<64x32xf32, #tpu.memory_space<any>> -> memref<1x32xf32, #tpu.memory_space<any>>
    %2 = tpu.memref_squeeze %1 : memref<1x32xf32, #tpu.memory_space<any>> -> memref<32xf32, #tpu.memory_space<any>>
    %c0_i32_2 = arith.constant 0 : i32
    %3 = tpu.memref_slice %arg11[%c0_i32, %c0_i32_2] : memref<64x32xf32, #tpu.memory_space<vmem>> -> memref<1x32xf32, #tpu.memory_space<vmem>>
    %4 = tpu.memref_squeeze %3 : memref<1x32xf32, #tpu.memory_space<vmem>> -> memref<32xf32, #tpu.memory_space<vmem>>
    %5 = tpu.memref_slice %arg14[%c0_i32_0] : memref<8x!tpu.dma_semaphore, #tpu.memory_space<semaphore_mem>> -> memref<1x!tpu.dma_semaphore, #tpu.memory_space<semaphore_mem>>
    %6 = tpu.memref_squeeze %5 : memref<1x!tpu.dma_semaphore, #tpu.memory_space<semaphore_mem>> -> memref<!tpu.dma_semaphore, #tpu.memory_space<semaphore_mem>>
    tpu.enqueue_dma source(%2 : memref<32xf32, #tpu.memory_space<any>>) target(%4 : memref<32xf32, #tpu.memory_space<vmem>>) target_semaphore(%6 : memref<!tpu.dma_semaphore, #tpu.memory_space<semaphore_mem>>)
    %c1 = arith.constant 1 : index
    %7 = memref.load %arg0[%c1] : memref<64xi32, #tpu.memory_space<smem>>
    %c1_i32 = arith.constant 1 : i32
    %c1_i32_3 = arith.constant 1 : i32
    %c0_i32_4 = arith.constant 0 : i32
    %8 = tpu.memref_slice %arg1[%7, %c0_i32_4] : memref<64x32xf32, #tpu.memory_space<any>> -> memref<1x32xf32, #tpu.memory_space<any>>
    %9 = tpu.memref_squeeze %8 : memref<1x32xf32, #tpu.memory_space<any>> -> memref<32xf32, #tpu.memory_space<any>>
    %c0_i32_5 = arith.constant 0 : i32
    %10 = tpu.memref_slice %arg11[%c1_i32, %c0_i32_5] : memref<64x32xf32, #tpu.memory_space<vmem>> -> memref<1x32xf32, #tpu.memory_space<vmem>>
    %11 = tpu.memref_squeeze %10 : memref<1x32xf32, #tpu.memory_space<vmem>> -> memref<32xf32, #tpu.memory_space<vmem>>
    %12 = tpu.memref_slice %arg14[%c1_i32_3] : memref<8x!tpu.dma_semaphore, #tpu.memory_space<semaphore_mem>> -> memref<1x!tpu.dma_semaphore, #tpu.memory_space<semaphore_mem>>
    %13 = tpu.memref_squeeze %12 : memref<1x!tpu.dma_semaphore, #tpu.memory_space<semaphore_mem>> -> memref<!tpu.dma_semaphore, #tpu.memory_space<semaphore_mem>>
    tpu.enqueue_dma source(%9 : memref<32xf32, #tpu.memory_space<any>>) target(%11 : memref<32xf32, #tpu.memory_space<vmem>>) target_semaphore(%13 : memref<!tpu.dma_semaphore, #tpu.memory_space<semaphore_mem>>)
    %c2 = arith.constant 2 : index
    %14 = memref.load %arg0[%c2] : memref<64xi32, #tpu.memory_space<smem>>
    %c2_i32 = arith.constant 2 : i32
    %c2_i32_6 = arith.constant 2 : i32
    %c0_i32_7 = arith.constant 0 : i32
    %15 = tpu.memref_slice %arg1[%14, %c0_i32_7] : memref<64x32xf32, #tpu.memory_space<any>> -> memref<1x32xf32, #tpu.memory_space<any>>
    %16 = tpu.memref_squeeze %15 : memref<1x32xf32, #tpu.memory_space<any>> -> memref<32xf32, #tpu.memory_space<any>>
    %c0_i32_8 = arith.constant 0 : i32
    %17 = tpu.memref_slice %arg11[%c2_i32, %c0_i32_8] : memref<64x32xf32, #tpu.memory_space<vmem>> -> memref<1x32xf32, #tpu.memory_space<vmem>>
    %18 = tpu.memref_squeeze %17 : memref<1x32xf32, #tpu.memory_space<vmem>> -> memref<32xf32, #tpu.memory_space<vmem>>
    %19 = tpu.memref_slice %arg14[%c2_i32_6] : memref<8x!tpu.dma_semaphore, #tpu.memory_space<semaphore_mem>> -> memref<1x!tpu.dma_semaphore, #tpu.memory_space<semaphore_mem>>
    %20 = tpu.memref_squeeze %19 : memref<1x!tpu.dma_semaphore, #tpu.memory_space<semaphore_mem>> -> memref<!tpu.dma_semaphore, #tpu.memory_space<semaphore_mem>>
    tpu.enqueue_dma source(%16 : memref<32xf32, #tpu.memory_space<any>>) target(%18 : memref<32xf32, #tpu.memory_space<vmem>>) target_semaphore(%20 : memref<!tpu.dma_semaphore, #tpu.memory_space<semaphore_mem>>)
    %c3 = arith.constant 3 : index
    %21 = memref.load %arg0[%c3] : memref<64xi32, #tpu.memory_space<smem>>
    %c3_i32 = arith.constant 3 : i32
    %c3_i32_9 = arith.constant 3 : i32
    %c0_i32_10 = arith.constant 0 : i32
    %22 = tpu.memref_slice %arg1[%21, %c0_i32_10] : memref<64x32xf32, #tpu.memory_space<any>> -> memref<1x32xf32, #tpu.memory_space<any>>
    %23 = tpu.memref_squeeze %22 : memref<1x32xf32, #tpu.memory_space<any>> -> memref<32xf32, #tpu.memory_space<any>>
    %c0_i32_11 = arith.constant 0 : i32
    %24 = tpu.memref_slice %arg11[%c3_i32, %c0_i32_11] : memref<64x32xf32, #tpu.memory_space<vmem>> -> memref<1x32xf32, #tpu.memory_space<vmem>>
    %25 = tpu.memref_squeeze %24 : memref<1x32xf32, #tpu.memory_space<vmem>> -> memref<32xf32, #tpu.memory_space<vmem>>
    %26 = tpu.memref_slice %arg14[%c3_i32_9] : memref<8x!tpu.dma_semaphore, #tpu.memory_space<semaphore_mem>> -> memref<1x!tpu.dma_semaphore, #tpu.memory_space<semaphore_mem>>
    %27 = tpu.memref_squeeze %26 : memref<1x!tpu.dma_semaphore, #tpu.memory_space<semaphore_mem>> -> memref<!tpu.dma_semaphore, #tpu.memory_space<semaphore_mem>>
    tpu.enqueue_dma source(%23 : memref<32xf32, #tpu.memory_space<any>>) target(%25 : memref<32xf32, #tpu.memory_space<vmem>>) target_semaphore(%27 : memref<!tpu.dma_semaphore, #tpu.memory_space<semaphore_mem>>)
    %c4 = arith.constant 4 : index
    %28 = memref.load %arg0[%c4] : memref<64xi32, #tpu.memory_space<smem>>
    %c4_i32 = arith.constant 4 : i32
    %c4_i32_12 = arith.constant 4 : i32
    %c0_i32_13 = arith.constant 0 : i32
    %29 = tpu.memref_slice %arg1[%28, %c0_i32_13] : memref<64x32xf32, #tpu.memory_space<any>> -> memref<1x32xf32, #tpu.memory_space<any>>
    %30 = tpu.memref_squeeze %29 : memref<1x32xf32, #tpu.memory_space<any>> -> memref<32xf32, #tpu.memory_space<any>>
    %c0_i32_14 = arith.constant 0 : i32
    %31 = tpu.memref_slice %arg11[%c4_i32, %c0_i32_14] : memref<64x32xf32, #tpu.memory_space<vmem>> -> memref<1x32xf32, #tpu.memory_space<vmem>>
    %32 = tpu.memref_squeeze %31 : memref<1x32xf32, #tpu.memory_space<vmem>> -> memref<32xf32, #tpu.memory_space<vmem>>
    %33 = tpu.memref_slice %arg14[%c4_i32_12] : memref<8x!tpu.dma_semaphore, #tpu.memory_space<semaphore_mem>> -> memref<1x!tpu.dma_semaphore, #tpu.memory_space<semaphore_mem>>
    %34 = tpu.memref_squeeze %33 : memref<1x!tpu.dma_semaphore, #tpu.memory_space<semaphore_mem>> -> memref<!tpu.dma_semaphore, #tpu.memory_space<semaphore_mem>>
    tpu.enqueue_dma source(%30 : memref<32xf32, #tpu.memory_space<any>>) target(%32 : memref<32xf32, #tpu.memory_space<vmem>>) target_semaphore(%34 : memref<!tpu.dma_semaphore, #tpu.memory_space<semaphore_mem>>)
    %c5 = arith.constant 5 : index
    %35 = memref.load %arg0[%c5] : memref<64xi32, #tpu.memory_space<smem>>
    %c5_i32 = arith.constant 5 : i32
    %c5_i32_15 = arith.constant 5 : i32
    %c0_i32_16 = arith.constant 0 : i32
    %36 = tpu.memref_slice %arg1[%35, %c0_i32_16] : memref<64x32xf32, #tpu.memory_space<any>> -> memref<1x32xf32, #tpu.memory_space<any>>
    %37 = tpu.memref_squeeze %36 : memref<1x32xf32, #tpu.memory_space<any>> -> memref<32xf32, #tpu.memory_space<any>>
    %c0_i32_17 = arith.constant 0 : i32
    %38 = tpu.memref_slice %arg11[%c5_i32, %c0_i32_17] : memref<64x32xf32, #tpu.memory_space<vmem>> -> memref<1x32xf32, #tpu.memory_space<vmem>>
    %39 = tpu.memref_squeeze %38 : memref<1x32xf32, #tpu.memory_space<vmem>> -> memref<32xf32, #tpu.memory_space<vmem>>
    %40 = tpu.memref_slice %arg14[%c5_i32_15] : memref<8x!tpu.dma_semaphore, #tpu.memory_space<semaphore_mem>> -> memref<1x!tpu.dma_semaphore, #tpu.memory_space<semaphore_mem>>
    %41 = tpu.memref_squeeze %40 : memref<1x!tpu.dma_semaphore, #tpu.memory_space<semaphore_mem>> -> memref<!tpu.dma_semaphore, #tpu.memory_space<semaphore_mem>>
    tpu.enqueue_dma source(%37 : memref<32xf32, #tpu.memory_space<any>>) target(%39 : memref<32xf32, #tpu.memory_space<vmem>>) target_semaphore(%41 : memref<!tpu.dma_semaphore, #tpu.memory_space<semaphore_mem>>)
    %c6 = arith.constant 6 : index
    %42 = memref.load %arg0[%c6] : memref<64xi32, #tpu.memory_space<smem>>
    %c6_i32 = arith.constant 6 : i32
    %c6_i32_18 = arith.constant 6 : i32
    %c0_i32_19 = arith.constant 0 : i32
    %43 = tpu.memref_slice %arg1[%42, %c0_i32_19] : memref<64x32xf32, #tpu.memory_space<any>> -> memref<1x32xf32, #tpu.memory_space<any>>
    %44 = tpu.memref_squeeze %43 : memref<1x32xf32, #tpu.memory_space<any>> -> memref<32xf32, #tpu.memory_space<any>>
    %c0_i32_20 = arith.constant 0 : i32
    %45 = tpu.memref_slice %arg11[%c6_i32, %c0_i32_20] : memref<64x32xf32, #tpu.memory_space<vmem>> -> memref<1x32xf32, #tpu.memory_space<vmem>>
    %46 = tpu.memref_squeeze %45 : memref<1x32xf32, #tpu.memory_space<vmem>> -> memref<32xf32, #tpu.memory_space<vmem>>
    %47 = tpu.memref_slice %arg14[%c6_i32_18] : memref<8x!tpu.dma_semaphore, #tpu.memory_space<semaphore_mem>> -> memref<1x!tpu.dma_semaphore, #tpu.memory_space<semaphore_mem>>
    %48 = tpu.memref_squeeze %47 : memref<1x!tpu.dma_semaphore, #tpu.memory_space<semaphore_mem>> -> memref<!tpu.dma_semaphore, #tpu.memory_space<semaphore_mem>>
    tpu.enqueue_dma source(%44 : memref<32xf32, #tpu.memory_space<any>>) target(%46 : memref<32xf32, #tpu.memory_space<vmem>>) target_semaphore(%48 : memref<!tpu.dma_semaphore, #tpu.memory_space<semaphore_mem>>)
    %c7 = arith.constant 7 : index
    %49 = memref.load %arg0[%c7] : memref<64xi32, #tpu.memory_space<smem>>
    %c7_i32 = arith.constant 7 : i32
    %c7_i32_21 = arith.constant 7 : i32
    %c0_i32_22 = arith.constant 0 : i32
    %50 = tpu.memref_slice %arg1[%49, %c0_i32_22] : memref<64x32xf32, #tpu.memory_space<any>> -> memref<1x32xf32, #tpu.memory_space<any>>
    %51 = tpu.memref_squeeze %50 : memref<1x32xf32, #tpu.memory_space<any>> -> memref<32xf32, #tpu.memory_space<any>>
    %c0_i32_23 = arith.constant 0 : i32
    %52 = tpu.memref_slice %arg11[%c7_i32, %c0_i32_23] : memref<64x32xf32, #tpu.memory_space<vmem>> -> memref<1x32xf32, #tpu.memory_space<vmem>>
    %53 = tpu.memref_squeeze %52 : memref<1x32xf32, #tpu.memory_space<vmem>> -> memref<32xf32, #tpu.memory_space<vmem>>
    %54 = tpu.memref_slice %arg14[%c7_i32_21] : memref<8x!tpu.dma_semaphore, #tpu.memory_space<semaphore_mem>> -> memref<1x!tpu.dma_semaphore, #tpu.memory_space<semaphore_mem>>
    %55 = tpu.memref_squeeze %54 : memref<1x!tpu.dma_semaphore, #tpu.memory_space<semaphore_mem>> -> memref<!tpu.dma_semaphore, #tpu.memory_space<semaphore_mem>>
    tpu.enqueue_dma source(%51 : memref<32xf32, #tpu.memory_space<any>>) target(%53 : memref<32xf32, #tpu.memory_space<vmem>>) target_semaphore(%55 : memref<!tpu.dma_semaphore, #tpu.memory_space<semaphore_mem>>)
    %c0_i32_24 = arith.constant 0 : i32
    %c64_i32 = arith.constant 64 : i32
    %56 = arith.addi %c0_i32_24, %c64_i32 : i32
    %c1_i32_25 = arith.constant 1 : i32
    scf.for %arg15 = %c0_i32_24 to %56 step %c1_i32_25  : i32 {
      %c1_i32_226 = arith.constant 1 : i32
      %657 = arith.muli %arg15, %c1_i32_226 : i32
      %c0_i32_227 = arith.constant 0 : i32
      %658 = arith.addi %c0_i32_227, %657 : i32
      %c8_i32_228 = arith.constant 8 : i32
      %c0_i32_229 = arith.constant 0 : i32
      %659 = arith.cmpi eq, %c8_i32_228, %c0_i32_229 : i32
      %c1_i32_230 = arith.constant 1 : i32
      %660 = arith.select %659, %c1_i32_230, %c8_i32_228 : i32
      %661 = arith.remsi %658, %660 : i32
      %c0_i32_231 = arith.constant 0 : i32
      %662 = arith.cmpi ne, %661, %c0_i32_231 : i32
      %c0_i32_232 = arith.constant 0 : i32
      %663 = arith.cmpi slt, %661, %c0_i32_232 : i32
      %c0_i32_233 = arith.constant 0 : i32
      %664 = arith.cmpi slt, %660, %c0_i32_233 : i32
      %665 = arith.xori %663, %664 : i1
      %666 = arith.andi %665, %662 : i1
      %667 = arith.addi %661, %660 : i32
      %668 = arith.select %666, %667, %661 : i32
      %669 = arith.index_cast %658 : i32 to index
      %670 = memref.load %arg0[%669] : memref<64xi32, #tpu.memory_space<smem>>
      %c0_i32_234 = arith.constant 0 : i32
      %671 = tpu.memref_slice %arg1[%670, %c0_i32_234] : memref<64x32xf32, #tpu.memory_space<any>> -> memref<1x32xf32, #tpu.memory_space<any>>
      %672 = tpu.memref_squeeze %671 : memref<1x32xf32, #tpu.memory_space<any>> -> memref<32xf32, #tpu.memory_space<any>>
      %c0_i32_235 = arith.constant 0 : i32
      %673 = tpu.memref_slice %arg11[%658, %c0_i32_235] : memref<64x32xf32, #tpu.memory_space<vmem>> -> memref<1x32xf32, #tpu.memory_space<vmem>>
      %674 = tpu.memref_squeeze %673 : memref<1x32xf32, #tpu.memory_space<vmem>> -> memref<32xf32, #tpu.memory_space<vmem>>
      %675 = tpu.memref_slice %arg14[%668] : memref<8x!tpu.dma_semaphore, #tpu.memory_space<semaphore_mem>> -> memref<1x!tpu.dma_semaphore, #tpu.memory_space<semaphore_mem>>
      %676 = tpu.memref_squeeze %675 : memref<1x!tpu.dma_semaphore, #tpu.memory_space<semaphore_mem>> -> memref<!tpu.dma_semaphore, #tpu.memory_space<semaphore_mem>>
      tpu.wait_dma2 semaphore(%676 : memref<!tpu.dma_semaphore, #tpu.memory_space<semaphore_mem>>) src(%672 : memref<32xf32, #tpu.memory_space<any>>) dst(%674 : memref<32xf32, #tpu.memory_space<vmem>>)
      %c8_i32_236 = arith.constant 8 : i32
      %677 = arith.addi %658, %c8_i32_236 : i32
      %c64_i32_237 = arith.constant 64 : i32
      %678 = arith.cmpi slt, %677, %c64_i32_237 : i32
      %679 = arith.extui %678 : i1 to i32
      %c0_i32_238 = arith.constant 0 : i32
      %680 = arith.cmpi ne, %679, %c0_i32_238 : i32
      scf.if %680 {
        %c8_i32_239 = arith.constant 8 : i32
        %681 = arith.addi %658, %c8_i32_239 : i32
        %682 = arith.index_cast %681 : i32 to index
        %683 = memref.load %arg0[%682] : memref<64xi32, #tpu.memory_space<smem>>
        %c0_i32_240 = arith.constant 0 : i32
        %684 = tpu.memref_slice %arg1[%683, %c0_i32_240] : memref<64x32xf32, #tpu.memory_space<any>> -> memref<1x32xf32, #tpu.memory_space<any>>
        %685 = tpu.memref_squeeze %684 : memref<1x32xf32, #tpu.memory_space<any>> -> memref<32xf32, #tpu.memory_space<any>>
        %c0_i32_241 = arith.constant 0 : i32
        %686 = tpu.memref_slice %arg11[%681, %c0_i32_241] : memref<64x32xf32, #tpu.memory_space<vmem>> -> memref<1x32xf32, #tpu.memory_space<vmem>>
        %687 = tpu.memref_squeeze %686 : memref<1x32xf32, #tpu.memory_space<vmem>> -> memref<32xf32, #tpu.memory_space<vmem>>
        %688 = tpu.memref_slice %arg14[%668] : memref<8x!tpu.dma_semaphore, #tpu.memory_space<semaphore_mem>> -> memref<1x!tpu.dma_semaphore, #tpu.memory_space<semaphore_mem>>
        %689 = tpu.memref_squeeze %688 : memref<1x!tpu.dma_semaphore, #tpu.memory_space<semaphore_mem>> -> memref<!tpu.dma_semaphore, #tpu.memory_space<semaphore_mem>>
        tpu.enqueue_dma source(%685 : memref<32xf32, #tpu.memory_space<any>>) target(%687 : memref<32xf32, #tpu.memory_space<vmem>>) target_semaphore(%689 : memref<!tpu.dma_semaphore, #tpu.memory_space<semaphore_mem>>)
      } else {
      }
    }
    %c64_i32_26 = arith.constant 64 : i32
    %c0_27 = arith.constant 0 : index
    %c0_28 = arith.constant 0 : index
    %57 = vector.load %arg2[%c0_27, %c0_28] : memref<32x512xbf16, #tpu.memory_space<vmem>>, vector<32x512xbf16>
    %c0_29 = arith.constant 0 : index
    %c0_30 = arith.constant 0 : index
    %58 = vector.load %arg3[%c0_29, %c0_30] : memref<128x512xbf16, #tpu.memory_space<vmem>>, vector<128x512xbf16>
    %c0_31 = arith.constant 0 : index
    %c0_32 = arith.constant 0 : index
    %59 = vector.load %arg4[%c0_31, %c0_32] : memref<1x512xf32, #tpu.memory_space<vmem>>, vector<1x512xf32>
    %c0_33 = arith.constant 0 : index
    %c0_34 = arith.constant 0 : index
    %60 = vector.load %arg11[%c0_33, %c0_34] : memref<64x32xf32, #tpu.memory_space<vmem>>, vector<64x32xf32>
    %61 = arith.truncf %60 : vector<64x32xf32> to vector<64x32xbf16>
    %cst = arith.constant dense<0.000000e+00> : vector<64x512xf32>
    %62 = tpu.matmul %61, %57, %cst {dimension_numbers = #tpu.dot_dimension_numbers<[1], [0], [0], [1], [0, 0, 1, 1], [], []>} : vector<64x32xbf16>, vector<32x512xbf16>, vector<64x512xf32> -> vector<64x512xf32>
    %63 = vector.broadcast %59 : vector<1x512xf32> to vector<64x512xf32>
    %64 = arith.addf %62, %63 : vector<64x512xf32>
    %c0_35 = arith.constant 0 : index
    %c0_36 = arith.constant 0 : index
    %65 = vector.load %arg12[%c0_35, %c0_36] : memref<64x512xf32, #tpu.memory_space<vmem>>, vector<64x512xf32>
    tpu.vector_store %arg12[%c0_35, %c0_36], %64 {strides = array<i32>} : memref<64x512xf32, #tpu.memory_space<vmem>>, vector<64x512xf32>,
    %cst_37 = arith.constant 0.000000e+00 : f32
    %66 = vector.broadcast %cst_37 : f32 to vector<8x128xf32>
    %c0_i32_38 = arith.constant 0 : i32
    %c8_i32 = arith.constant 8 : i32
    %67 = arith.muli %c0_i32_38, %c8_i32 : i32
    %68 = tpu.assume_multiple %67, 8 : i32
    %69 = arith.index_cast %68 : i32 to index
    %c0_39 = arith.constant 0 : index
    %70 = vector.load %arg12[%69, %c0_39] : memref<64x512xf32, #tpu.memory_space<vmem>>, vector<8x512xf32>
    %71 = arith.truncf %66 : vector<8x128xf32> to vector<8x128xbf16>
    %cst_40 = arith.constant dense<0.000000e+00> : vector<8x512xf32>
    %72 = tpu.matmul %71, %58, %cst_40 {dimension_numbers = #tpu.dot_dimension_numbers<[1], [0], [0], [1], [0, 0, 1, 1], [], []>} : vector<8x128xbf16>, vector<128x512xbf16>, vector<8x512xf32> -> vector<8x512xf32>
    %73 = arith.addf %70, %72 : vector<8x512xf32>
    %74 = vector.extract_strided_slice %73 {offsets = [0, 0], sizes = [8, 128], strides = [1, 1]} : vector<8x512xf32> to vector<8x128xf32>
    %75 = arith.negf %74 : vector<8x128xf32>
    %76 = math.exp %75 : vector<8x128xf32>
    %cst_41 = arith.constant 1.000000e+00 : f32
    %77 = vector.broadcast %cst_41 : f32 to vector<8x128xf32>
    %78 = arith.addf %77, %76 : vector<8x128xf32>
    %79 = arith.divf %77, %78 : vector<8x128xf32>
    %80 = vector.extract_strided_slice %73 {offsets = [0, 128], sizes = [8, 128], strides = [1, 1]} : vector<8x512xf32> to vector<8x128xf32>
    %81 = arith.negf %80 : vector<8x128xf32>
    %82 = math.exp %81 : vector<8x128xf32>
    %cst_42 = arith.constant 1.000000e+00 : f32
    %83 = vector.broadcast %cst_42 : f32 to vector<8x128xf32>
    %84 = arith.addf %83, %82 : vector<8x128xf32>
    %85 = arith.divf %83, %84 : vector<8x128xf32>
    %86 = vector.extract_strided_slice %73 {offsets = [0, 256], sizes = [8, 128], strides = [1, 1]} : vector<8x512xf32> to vector<8x128xf32>
    %87 = math.tanh %86 : vector<8x128xf32>
    %88 = vector.extract_strided_slice %73 {offsets = [0, 384], sizes = [8, 128], strides = [1, 1]} : vector<8x512xf32> to vector<8x128xf32>
    %89 = arith.negf %88 : vector<8x128xf32>
    %90 = math.exp %89 : vector<8x128xf32>
    %cst_43 = arith.constant 1.000000e+00 : f32
    %91 = vector.broadcast %cst_43 : f32 to vector<8x128xf32>
    %92 = arith.addf %91, %90 : vector<8x128xf32>
    %93 = arith.divf %91, %92 : vector<8x128xf32>
    %94 = arith.mulf %85, %66 : vector<8x128xf32>
    %95 = arith.mulf %79, %87 : vector<8x128xf32>
    %96 = arith.addf %94, %95 : vector<8x128xf32>
    %97 = math.tanh %96 : vector<8x128xf32>
    %98 = arith.mulf %93, %97 : vector<8x128xf32>
    %99 = arith.index_cast %68 : i32 to index
    %c0_44 = arith.constant 0 : index
    %100 = vector.load %arg13[%99, %c0_44] : memref<64x128xf32, #tpu.memory_space<vmem>>, vector<8x128xf32>
    tpu.vector_store %arg13[%99, %c0_44], %98 {strides = array<i32>} : memref<64x128xf32, #tpu.memory_space<vmem>>, vector<8x128xf32>,
    %c1_i32_45 = arith.constant 1 : i32
    %c8_i32_46 = arith.constant 8 : i32
    %101 = arith.muli %c1_i32_45, %c8_i32_46 : i32
    %102 = tpu.assume_multiple %101, 8 : i32
    %103 = arith.index_cast %102 : i32 to index
    %c0_47 = arith.constant 0 : index
    %104 = vector.load %arg12[%103, %c0_47] : memref<64x512xf32, #tpu.memory_space<vmem>>, vector<8x512xf32>
    %105 = arith.truncf %98 : vector<8x128xf32> to vector<8x128xbf16>
    %cst_48 = arith.constant dense<0.000000e+00> : vector<8x512xf32>
    %106 = tpu.matmul %105, %58, %cst_48 {dimension_numbers = #tpu.dot_dimension_numbers<[1], [0], [0], [1], [0, 0, 1, 1], [], []>} : vector<8x128xbf16>, vector<128x512xbf16>, vector<8x512xf32> -> vector<8x512xf32>
    %107 = arith.addf %104, %106 : vector<8x512xf32>
    %108 = vector.extract_strided_slice %107 {offsets = [0, 0], sizes = [8, 128], strides = [1, 1]} : vector<8x512xf32> to vector<8x128xf32>
    %109 = arith.negf %108 : vector<8x128xf32>
    %110 = math.exp %109 : vector<8x128xf32>
    %cst_49 = arith.constant 1.000000e+00 : f32
    %111 = vector.broadcast %cst_49 : f32 to vector<8x128xf32>
    %112 = arith.addf %111, %110 : vector<8x128xf32>
    %113 = arith.divf %111, %112 : vector<8x128xf32>
    %114 = vector.extract_strided_slice %107 {offsets = [0, 128], sizes = [8, 128], strides = [1, 1]} : vector<8x512xf32> to vector<8x128xf32>
    %115 = arith.negf %114 : vector<8x128xf32>
    %116 = math.exp %115 : vector<8x128xf32>
    %cst_50 = arith.constant 1.000000e+00 : f32
    %117 = vector.broadcast %cst_50 : f32 to vector<8x128xf32>
    %118 = arith.addf %117, %116 : vector<8x128xf32>
    %119 = arith.divf %117, %118 : vector<8x128xf32>
    %120 = vector.extract_strided_slice %107 {offsets = [0, 256], sizes = [8, 128], strides = [1, 1]} : vector<8x512xf32> to vector<8x128xf32>
    %121 = math.tanh %120 : vector<8x128xf32>
    %122 = vector.extract_strided_slice %107 {offsets = [0, 384], sizes = [8, 128], strides = [1, 1]} : vector<8x512xf32> to vector<8x128xf32>
    %123 = arith.negf %122 : vector<8x128xf32>
    %124 = math.exp %123 : vector<8x128xf32>
    %cst_51 = arith.constant 1.000000e+00 : f32
    %125 = vector.broadcast %cst_51 : f32 to vector<8x128xf32>
    %126 = arith.addf %125, %124 : vector<8x128xf32>
    %127 = arith.divf %125, %126 : vector<8x128xf32>
    %128 = arith.mulf %119, %96 : vector<8x128xf32>
    %129 = arith.mulf %113, %121 : vector<8x128xf32>
    %130 = arith.addf %128, %129 : vector<8x128xf32>
    %131 = math.tanh %130 : vector<8x128xf32>
    %132 = arith.mulf %127, %131 : vector<8x128xf32>
    %133 = arith.index_cast %102 : i32 to index
    %c0_52 = arith.constant 0 : index
    %134 = vector.load %arg13[%133, %c0_52] : memref<64x128xf32, #tpu.memory_space<vmem>>, vector<8x128xf32>
    tpu.vector_store %arg13[%133, %c0_52], %132 {strides = array<i32>} : memref<64x128xf32, #tpu.memory_space<vmem>>, vector<8x128xf32>,
    %c2_i32_53 = arith.constant 2 : i32
    %c8_i32_54 = arith.constant 8 : i32
    %135 = arith.muli %c2_i32_53, %c8_i32_54 : i32
    %136 = tpu.assume_multiple %135, 8 : i32
    %137 = arith.index_cast %136 : i32 to index
    %c0_55 = arith.constant 0 : index
    %138 = vector.load %arg12[%137, %c0_55] : memref<64x512xf32, #tpu.memory_space<vmem>>, vector<8x512xf32>
    %139 = arith.truncf %132 : vector<8x128xf32> to vector<8x128xbf16>
    %cst_56 = arith.constant dense<0.000000e+00> : vector<8x512xf32>
    %140 = tpu.matmul %139, %58, %cst_56 {dimension_numbers = #tpu.dot_dimension_numbers<[1], [0], [0], [1], [0, 0, 1, 1], [], []>} : vector<8x128xbf16>, vector<128x512xbf16>, vector<8x512xf32> -> vector<8x512xf32>
    %141 = arith.addf %138, %140 : vector<8x512xf32>
    %142 = vector.extract_strided_slice %141 {offsets = [0, 0], sizes = [8, 128], strides = [1, 1]} : vector<8x512xf32> to vector<8x128xf32>
    %143 = arith.negf %142 : vector<8x128xf32>
    %144 = math.exp %143 : vector<8x128xf32>
    %cst_57 = arith.constant 1.000000e+00 : f32
    %145 = vector.broadcast %cst_57 : f32 to vector<8x128xf32>
    %146 = arith.addf %145, %144 : vector<8x128xf32>
    %147 = arith.divf %145, %146 : vector<8x128xf32>
    %148 = vector.extract_strided_slice %141 {offsets = [0, 128], sizes = [8, 128], strides = [1, 1]} : vector<8x512xf32> to vector<8x128xf32>
    %149 = arith.negf %148 : vector<8x128xf32>
    %150 = math.exp %149 : vector<8x128xf32>
    %cst_58 = arith.constant 1.000000e+00 : f32
    %151 = vector.broadcast %cst_58 : f32 to vector<8x128xf32>
    %152 = arith.addf %151, %150 : vector<8x128xf32>
    %153 = arith.divf %151, %152 : vector<8x128xf32>
    %154 = vector.extract_strided_slice %141 {offsets = [0, 256], sizes = [8, 128], strides = [1, 1]} : vector<8x512xf32> to vector<8x128xf32>
    %155 = math.tanh %154 : vector<8x128xf32>
    %156 = vector.extract_strided_slice %141 {offsets = [0, 384], sizes = [8, 128], strides = [1, 1]} : vector<8x512xf32> to vector<8x128xf32>
    %157 = arith.negf %156 : vector<8x128xf32>
    %158 = math.exp %157 : vector<8x128xf32>
    %cst_59 = arith.constant 1.000000e+00 : f32
    %159 = vector.broadcast %cst_59 : f32 to vector<8x128xf32>
    %160 = arith.addf %159, %158 : vector<8x128xf32>
    %161 = arith.divf %159, %160 : vector<8x128xf32>
    %162 = arith.mulf %153, %130 : vector<8x128xf32>
    %163 = arith.mulf %147, %155 : vector<8x128xf32>
    %164 = arith.addf %162, %163 : vector<8x128xf32>
    %165 = math.tanh %164 : vector<8x128xf32>
    %166 = arith.mulf %161, %165 : vector<8x128xf32>
    %167 = arith.index_cast %136 : i32 to index
    %c0_60 = arith.constant 0 : index
    %168 = vector.load %arg13[%167, %c0_60] : memref<64x128xf32, #tpu.memory_space<vmem>>, vector<8x128xf32>
    tpu.vector_store %arg13[%167, %c0_60], %166 {strides = array<i32>} : memref<64x128xf32, #tpu.memory_space<vmem>>, vector<8x128xf32>,
    %c3_i32_61 = arith.constant 3 : i32
    %c8_i32_62 = arith.constant 8 : i32
    %169 = arith.muli %c3_i32_61, %c8_i32_62 : i32
    %170 = tpu.assume_multiple %169, 8 : i32
    %171 = arith.index_cast %170 : i32 to index
    %c0_63 = arith.constant 0 : index
    %172 = vector.load %arg12[%171, %c0_63] : memref<64x512xf32, #tpu.memory_space<vmem>>, vector<8x512xf32>
    %173 = arith.truncf %166 : vector<8x128xf32> to vector<8x128xbf16>
    %cst_64 = arith.constant dense<0.000000e+00> : vector<8x512xf32>
    %174 = tpu.matmul %173, %58, %cst_64 {dimension_numbers = #tpu.dot_dimension_numbers<[1], [0], [0], [1], [0, 0, 1, 1], [], []>} : vector<8x128xbf16>, vector<128x512xbf16>, vector<8x512xf32> -> vector<8x512xf32>
    %175 = arith.addf %172, %174 : vector<8x512xf32>
    %176 = vector.extract_strided_slice %175 {offsets = [0, 0], sizes = [8, 128], strides = [1, 1]} : vector<8x512xf32> to vector<8x128xf32>
    %177 = arith.negf %176 : vector<8x128xf32>
    %178 = math.exp %177 : vector<8x128xf32>
    %cst_65 = arith.constant 1.000000e+00 : f32
    %179 = vector.broadcast %cst_65 : f32 to vector<8x128xf32>
    %180 = arith.addf %179, %178 : vector<8x128xf32>
    %181 = arith.divf %179, %180 : vector<8x128xf32>
    %182 = vector.extract_strided_slice %175 {offsets = [0, 128], sizes = [8, 128], strides = [1, 1]} : vector<8x512xf32> to vector<8x128xf32>
    %183 = arith.negf %182 : vector<8x128xf32>
    %184 = math.exp %183 : vector<8x128xf32>
    %cst_66 = arith.constant 1.000000e+00 : f32
    %185 = vector.broadcast %cst_66 : f32 to vector<8x128xf32>
    %186 = arith.addf %185, %184 : vector<8x128xf32>
    %187 = arith.divf %185, %186 : vector<8x128xf32>
    %188 = vector.extract_strided_slice %175 {offsets = [0, 256], sizes = [8, 128], strides = [1, 1]} : vector<8x512xf32> to vector<8x128xf32>
    %189 = math.tanh %188 : vector<8x128xf32>
    %190 = vector.extract_strided_slice %175 {offsets = [0, 384], sizes = [8, 128], strides = [1, 1]} : vector<8x512xf32> to vector<8x128xf32>
    %191 = arith.negf %190 : vector<8x128xf32>
    %192 = math.exp %191 : vector<8x128xf32>
    %cst_67 = arith.constant 1.000000e+00 : f32
    %193 = vector.broadcast %cst_67 : f32 to vector<8x128xf32>
    %194 = arith.addf %193, %192 : vector<8x128xf32>
    %195 = arith.divf %193, %194 : vector<8x128xf32>
    %196 = arith.mulf %187, %164 : vector<8x128xf32>
    %197 = arith.mulf %181, %189 : vector<8x128xf32>
    %198 = arith.addf %196, %197 : vector<8x128xf32>
    %199 = math.tanh %198 : vector<8x128xf32>
    %200 = arith.mulf %195, %199 : vector<8x128xf32>
    %201 = arith.index_cast %170 : i32 to index
    %c0_68 = arith.constant 0 : index
    %202 = vector.load %arg13[%201, %c0_68] : memref<64x128xf32, #tpu.memory_space<vmem>>, vector<8x128xf32>
    tpu.vector_store %arg13[%201, %c0_68], %200 {strides = array<i32>} : memref<64x128xf32, #tpu.memory_space<vmem>>, vector<8x128xf32>,
    %c4_i32_69 = arith.constant 4 : i32
    %c8_i32_70 = arith.constant 8 : i32
    %203 = arith.muli %c4_i32_69, %c8_i32_70 : i32
    %204 = tpu.assume_multiple %203, 8 : i32
    %205 = arith.index_cast %204 : i32 to index
    %c0_71 = arith.constant 0 : index
    %206 = vector.load %arg12[%205, %c0_71] : memref<64x512xf32, #tpu.memory_space<vmem>>, vector<8x512xf32>
    %207 = arith.truncf %200 : vector<8x128xf32> to vector<8x128xbf16>
    %cst_72 = arith.constant dense<0.000000e+00> : vector<8x512xf32>
    %208 = tpu.matmul %207, %58, %cst_72 {dimension_numbers = #tpu.dot_dimension_numbers<[1], [0], [0], [1], [0, 0, 1, 1], [], []>} : vector<8x128xbf16>, vector<128x512xbf16>, vector<8x512xf32> -> vector<8x512xf32>
    %209 = arith.addf %206, %208 : vector<8x512xf32>
    %210 = vector.extract_strided_slice %209 {offsets = [0, 0], sizes = [8, 128], strides = [1, 1]} : vector<8x512xf32> to vector<8x128xf32>
    %211 = arith.negf %210 : vector<8x128xf32>
    %212 = math.exp %211 : vector<8x128xf32>
    %cst_73 = arith.constant 1.000000e+00 : f32
    %213 = vector.broadcast %cst_73 : f32 to vector<8x128xf32>
    %214 = arith.addf %213, %212 : vector<8x128xf32>
    %215 = arith.divf %213, %214 : vector<8x128xf32>
    %216 = vector.extract_strided_slice %209 {offsets = [0, 128], sizes = [8, 128], strides = [1, 1]} : vector<8x512xf32> to vector<8x128xf32>
    %217 = arith.negf %216 : vector<8x128xf32>
    %218 = math.exp %217 : vector<8x128xf32>
    %cst_74 = arith.constant 1.000000e+00 : f32
    %219 = vector.broadcast %cst_74 : f32 to vector<8x128xf32>
    %220 = arith.addf %219, %218 : vector<8x128xf32>
    %221 = arith.divf %219, %220 : vector<8x128xf32>
    %222 = vector.extract_strided_slice %209 {offsets = [0, 256], sizes = [8, 128], strides = [1, 1]} : vector<8x512xf32> to vector<8x128xf32>
    %223 = math.tanh %222 : vector<8x128xf32>
    %224 = vector.extract_strided_slice %209 {offsets = [0, 384], sizes = [8, 128], strides = [1, 1]} : vector<8x512xf32> to vector<8x128xf32>
    %225 = arith.negf %224 : vector<8x128xf32>
    %226 = math.exp %225 : vector<8x128xf32>
    %cst_75 = arith.constant 1.000000e+00 : f32
    %227 = vector.broadcast %cst_75 : f32 to vector<8x128xf32>
    %228 = arith.addf %227, %226 : vector<8x128xf32>
    %229 = arith.divf %227, %228 : vector<8x128xf32>
    %230 = arith.mulf %221, %198 : vector<8x128xf32>
    %231 = arith.mulf %215, %223 : vector<8x128xf32>
    %232 = arith.addf %230, %231 : vector<8x128xf32>
    %233 = math.tanh %232 : vector<8x128xf32>
    %234 = arith.mulf %229, %233 : vector<8x128xf32>
    %235 = arith.index_cast %204 : i32 to index
    %c0_76 = arith.constant 0 : index
    %236 = vector.load %arg13[%235, %c0_76] : memref<64x128xf32, #tpu.memory_space<vmem>>, vector<8x128xf32>
    tpu.vector_store %arg13[%235, %c0_76], %234 {strides = array<i32>} : memref<64x128xf32, #tpu.memory_space<vmem>>, vector<8x128xf32>,
    %c5_i32_77 = arith.constant 5 : i32
    %c8_i32_78 = arith.constant 8 : i32
    %237 = arith.muli %c5_i32_77, %c8_i32_78 : i32
    %238 = tpu.assume_multiple %237, 8 : i32
    %239 = arith.index_cast %238 : i32 to index
    %c0_79 = arith.constant 0 : index
    %240 = vector.load %arg12[%239, %c0_79] : memref<64x512xf32, #tpu.memory_space<vmem>>, vector<8x512xf32>
    %241 = arith.truncf %234 : vector<8x128xf32> to vector<8x128xbf16>
    %cst_80 = arith.constant dense<0.000000e+00> : vector<8x512xf32>
    %242 = tpu.matmul %241, %58, %cst_80 {dimension_numbers = #tpu.dot_dimension_numbers<[1], [0], [0], [1], [0, 0, 1, 1], [], []>} : vector<8x128xbf16>, vector<128x512xbf16>, vector<8x512xf32> -> vector<8x512xf32>
    %243 = arith.addf %240, %242 : vector<8x512xf32>
    %244 = vector.extract_strided_slice %243 {offsets = [0, 0], sizes = [8, 128], strides = [1, 1]} : vector<8x512xf32> to vector<8x128xf32>
    %245 = arith.negf %244 : vector<8x128xf32>
    %246 = math.exp %245 : vector<8x128xf32>
    %cst_81 = arith.constant 1.000000e+00 : f32
    %247 = vector.broadcast %cst_81 : f32 to vector<8x128xf32>
    %248 = arith.addf %247, %246 : vector<8x128xf32>
    %249 = arith.divf %247, %248 : vector<8x128xf32>
    %250 = vector.extract_strided_slice %243 {offsets = [0, 128], sizes = [8, 128], strides = [1, 1]} : vector<8x512xf32> to vector<8x128xf32>
    %251 = arith.negf %250 : vector<8x128xf32>
    %252 = math.exp %251 : vector<8x128xf32>
    %cst_82 = arith.constant 1.000000e+00 : f32
    %253 = vector.broadcast %cst_82 : f32 to vector<8x128xf32>
    %254 = arith.addf %253, %252 : vector<8x128xf32>
    %255 = arith.divf %253, %254 : vector<8x128xf32>
    %256 = vector.extract_strided_slice %243 {offsets = [0, 256], sizes = [8, 128], strides = [1, 1]} : vector<8x512xf32> to vector<8x128xf32>
    %257 = math.tanh %256 : vector<8x128xf32>
    %258 = vector.extract_strided_slice %243 {offsets = [0, 384], sizes = [8, 128], strides = [1, 1]} : vector<8x512xf32> to vector<8x128xf32>
    %259 = arith.negf %258 : vector<8x128xf32>
    %260 = math.exp %259 : vector<8x128xf32>
    %cst_83 = arith.constant 1.000000e+00 : f32
    %261 = vector.broadcast %cst_83 : f32 to vector<8x128xf32>
    %262 = arith.addf %261, %260 : vector<8x128xf32>
    %263 = arith.divf %261, %262 : vector<8x128xf32>
    %264 = arith.mulf %255, %232 : vector<8x128xf32>
    %265 = arith.mulf %249, %257 : vector<8x128xf32>
    %266 = arith.addf %264, %265 : vector<8x128xf32>
    %267 = math.tanh %266 : vector<8x128xf32>
    %268 = arith.mulf %263, %267 : vector<8x128xf32>
    %269 = arith.index_cast %238 : i32 to index
    %c0_84 = arith.constant 0 : index
    %270 = vector.load %arg13[%269, %c0_84] : memref<64x128xf32, #tpu.memory_space<vmem>>, vector<8x128xf32>
    tpu.vector_store %arg13[%269, %c0_84], %268 {strides = array<i32>} : memref<64x128xf32, #tpu.memory_space<vmem>>, vector<8x128xf32>,
    %c6_i32_85 = arith.constant 6 : i32
    %c8_i32_86 = arith.constant 8 : i32
    %271 = arith.muli %c6_i32_85, %c8_i32_86 : i32
    %272 = tpu.assume_multiple %271, 8 : i32
    %273 = arith.index_cast %272 : i32 to index
    %c0_87 = arith.constant 0 : index
    %274 = vector.load %arg12[%273, %c0_87] : memref<64x512xf32, #tpu.memory_space<vmem>>, vector<8x512xf32>
    %275 = arith.truncf %268 : vector<8x128xf32> to vector<8x128xbf16>
    %cst_88 = arith.constant dense<0.000000e+00> : vector<8x512xf32>
    %276 = tpu.matmul %275, %58, %cst_88 {dimension_numbers = #tpu.dot_dimension_numbers<[1], [0], [0], [1], [0, 0, 1, 1], [], []>} : vector<8x128xbf16>, vector<128x512xbf16>, vector<8x512xf32> -> vector<8x512xf32>
    %277 = arith.addf %274, %276 : vector<8x512xf32>
    %278 = vector.extract_strided_slice %277 {offsets = [0, 0], sizes = [8, 128], strides = [1, 1]} : vector<8x512xf32> to vector<8x128xf32>
    %279 = arith.negf %278 : vector<8x128xf32>
    %280 = math.exp %279 : vector<8x128xf32>
    %cst_89 = arith.constant 1.000000e+00 : f32
    %281 = vector.broadcast %cst_89 : f32 to vector<8x128xf32>
    %282 = arith.addf %281, %280 : vector<8x128xf32>
    %283 = arith.divf %281, %282 : vector<8x128xf32>
    %284 = vector.extract_strided_slice %277 {offsets = [0, 128], sizes = [8, 128], strides = [1, 1]} : vector<8x512xf32> to vector<8x128xf32>
    %285 = arith.negf %284 : vector<8x128xf32>
    %286 = math.exp %285 : vector<8x128xf32>
    %cst_90 = arith.constant 1.000000e+00 : f32
    %287 = vector.broadcast %cst_90 : f32 to vector<8x128xf32>
    %288 = arith.addf %287, %286 : vector<8x128xf32>
    %289 = arith.divf %287, %288 : vector<8x128xf32>
    %290 = vector.extract_strided_slice %277 {offsets = [0, 256], sizes = [8, 128], strides = [1, 1]} : vector<8x512xf32> to vector<8x128xf32>
    %291 = math.tanh %290 : vector<8x128xf32>
    %292 = vector.extract_strided_slice %277 {offsets = [0, 384], sizes = [8, 128], strides = [1, 1]} : vector<8x512xf32> to vector<8x128xf32>
    %293 = arith.negf %292 : vector<8x128xf32>
    %294 = math.exp %293 : vector<8x128xf32>
    %cst_91 = arith.constant 1.000000e+00 : f32
    %295 = vector.broadcast %cst_91 : f32 to vector<8x128xf32>
    %296 = arith.addf %295, %294 : vector<8x128xf32>
    %297 = arith.divf %295, %296 : vector<8x128xf32>
    %298 = arith.mulf %289, %266 : vector<8x128xf32>
    %299 = arith.mulf %283, %291 : vector<8x128xf32>
    %300 = arith.addf %298, %299 : vector<8x128xf32>
    %301 = math.tanh %300 : vector<8x128xf32>
    %302 = arith.mulf %297, %301 : vector<8x128xf32>
    %303 = arith.index_cast %272 : i32 to index
    %c0_92 = arith.constant 0 : index
    %304 = vector.load %arg13[%303, %c0_92] : memref<64x128xf32, #tpu.memory_space<vmem>>, vector<8x128xf32>
    tpu.vector_store %arg13[%303, %c0_92], %302 {strides = array<i32>} : memref<64x128xf32, #tpu.memory_space<vmem>>, vector<8x128xf32>,
    %c7_i32_93 = arith.constant 7 : i32
    %c8_i32_94 = arith.constant 8 : i32
    %305 = arith.muli %c7_i32_93, %c8_i32_94 : i32
    %306 = tpu.assume_multiple %305, 8 : i32
    %307 = arith.index_cast %306 : i32 to index
    %c0_95 = arith.constant 0 : index
    %308 = vector.load %arg12[%307, %c0_95] : memref<64x512xf32, #tpu.memory_space<vmem>>, vector<8x512xf32>
    %309 = arith.truncf %302 : vector<8x128xf32> to vector<8x128xbf16>
    %cst_96 = arith.constant dense<0.000000e+00> : vector<8x512xf32>
    %310 = tpu.matmul %309, %58, %cst_96 {dimension_numbers = #tpu.dot_dimension_numbers<[1], [0], [0], [1], [0, 0, 1, 1], [], []>} : vector<8x128xbf16>, vector<128x512xbf16>, vector<8x512xf32> -> vector<8x512xf32>
    %311 = arith.addf %308, %310 : vector<8x512xf32>
    %312 = vector.extract_strided_slice %311 {offsets = [0, 0], sizes = [8, 128], strides = [1, 1]} : vector<8x512xf32> to vector<8x128xf32>
    %313 = arith.negf %312 : vector<8x128xf32>
    %314 = math.exp %313 : vector<8x128xf32>
    %cst_97 = arith.constant 1.000000e+00 : f32
    %315 = vector.broadcast %cst_97 : f32 to vector<8x128xf32>
    %316 = arith.addf %315, %314 : vector<8x128xf32>
    %317 = arith.divf %315, %316 : vector<8x128xf32>
    %318 = vector.extract_strided_slice %311 {offsets = [0, 128], sizes = [8, 128], strides = [1, 1]} : vector<8x512xf32> to vector<8x128xf32>
    %319 = arith.negf %318 : vector<8x128xf32>
    %320 = math.exp %319 : vector<8x128xf32>
    %cst_98 = arith.constant 1.000000e+00 : f32
    %321 = vector.broadcast %cst_98 : f32 to vector<8x128xf32>
    %322 = arith.addf %321, %320 : vector<8x128xf32>
    %323 = arith.divf %321, %322 : vector<8x128xf32>
    %324 = vector.extract_strided_slice %311 {offsets = [0, 256], sizes = [8, 128], strides = [1, 1]} : vector<8x512xf32> to vector<8x128xf32>
    %325 = math.tanh %324 : vector<8x128xf32>
    %326 = vector.extract_strided_slice %311 {offsets = [0, 384], sizes = [8, 128], strides = [1, 1]} : vector<8x512xf32> to vector<8x128xf32>
    %327 = arith.negf %326 : vector<8x128xf32>
    %328 = math.exp %327 : vector<8x128xf32>
    %cst_99 = arith.constant 1.000000e+00 : f32
    %329 = vector.broadcast %cst_99 : f32 to vector<8x128xf32>
    %330 = arith.addf %329, %328 : vector<8x128xf32>
    %331 = arith.divf %329, %330 : vector<8x128xf32>
    %332 = arith.mulf %323, %300 : vector<8x128xf32>
    %333 = arith.mulf %317, %325 : vector<8x128xf32>
    %334 = arith.addf %332, %333 : vector<8x128xf32>
    %335 = math.tanh %334 : vector<8x128xf32>
    %336 = arith.mulf %331, %335 : vector<8x128xf32>
    %337 = arith.index_cast %306 : i32 to index
    %c0_100 = arith.constant 0 : index
    %338 = vector.load %arg13[%337, %c0_100] : memref<64x128xf32, #tpu.memory_space<vmem>>, vector<8x128xf32>
    tpu.vector_store %arg13[%337, %c0_100], %336 {strides = array<i32>} : memref<64x128xf32, #tpu.memory_space<vmem>>, vector<8x128xf32>,
    %c8_i32_101 = arith.constant 8 : i32
    %c0_102 = arith.constant 0 : index
    %c0_103 = arith.constant 0 : index
    %339 = vector.load %arg9[%c0_102, %c0_103] : memref<16x128xf32, #tpu.memory_space<vmem>>, vector<8x128xf32>
    tpu.vector_store %arg9[%c0_102, %c0_103], %336 {strides = array<i32>} : memref<16x128xf32, #tpu.memory_space<vmem>>, vector<8x128xf32>,
    %c0_104 = arith.constant 0 : index
    %c0_105 = arith.constant 0 : index
    %340 = vector.load %arg10[%c0_104, %c0_105] : memref<16x128xf32, #tpu.memory_space<vmem>>, vector<8x128xf32>
    tpu.vector_store %arg10[%c0_104, %c0_105], %334 {strides = array<i32>} : memref<16x128xf32, #tpu.memory_space<vmem>>, vector<8x128xf32>,
    %c0_106 = arith.constant 0 : index
    %c0_107 = arith.constant 0 : index
    %341 = vector.load %arg5[%c0_106, %c0_107] : memref<128x512xbf16, #tpu.memory_space<vmem>>, vector<128x512xbf16>
    %c0_108 = arith.constant 0 : index
    %c0_109 = arith.constant 0 : index
    %342 = vector.load %arg6[%c0_108, %c0_109] : memref<128x512xbf16, #tpu.memory_space<vmem>>, vector<128x512xbf16>
    %c0_110 = arith.constant 0 : index
    %c0_111 = arith.constant 0 : index
    %343 = vector.load %arg7[%c0_110, %c0_111] : memref<1x512xf32, #tpu.memory_space<vmem>>, vector<1x512xf32>
    %c0_112 = arith.constant 0 : index
    %c0_113 = arith.constant 0 : index
    %344 = vector.load %arg13[%c0_112, %c0_113] : memref<64x128xf32, #tpu.memory_space<vmem>>, vector<64x128xf32>
    %345 = arith.truncf %344 : vector<64x128xf32> to vector<64x128xbf16>
    %cst_114 = arith.constant dense<0.000000e+00> : vector<64x512xf32>
    %346 = tpu.matmul %345, %341, %cst_114 {dimension_numbers = #tpu.dot_dimension_numbers<[1], [0], [0], [1], [0, 0, 1, 1], [], []>} : vector<64x128xbf16>, vector<128x512xbf16>, vector<64x512xf32> -> vector<64x512xf32>
    %347 = vector.broadcast %343 : vector<1x512xf32> to vector<64x512xf32>
    %348 = arith.addf %346, %347 : vector<64x512xf32>
    %c0_115 = arith.constant 0 : index
    %c0_116 = arith.constant 0 : index
    %349 = vector.load %arg12[%c0_115, %c0_116] : memref<64x512xf32, #tpu.memory_space<vmem>>, vector<64x512xf32>
    tpu.vector_store %arg12[%c0_115, %c0_116], %348 {strides = array<i32>} : memref<64x512xf32, #tpu.memory_space<vmem>>, vector<64x512xf32>,
    %cst_117 = arith.constant 0.000000e+00 : f32
    %350 = vector.broadcast %cst_117 : f32 to vector<8x128xf32>
    %c0_i32_118 = arith.constant 0 : i32
    %c8_i32_119 = arith.constant 8 : i32
    %351 = arith.muli %c0_i32_118, %c8_i32_119 : i32
    %352 = tpu.assume_multiple %351, 8 : i32
    %353 = arith.index_cast %352 : i32 to index
    %c0_120 = arith.constant 0 : index
    %354 = vector.load %arg12[%353, %c0_120] : memref<64x512xf32, #tpu.memory_space<vmem>>, vector<8x512xf32>
    %355 = arith.truncf %350 : vector<8x128xf32> to vector<8x128xbf16>
    %cst_121 = arith.constant dense<0.000000e+00> : vector<8x512xf32>
    %356 = tpu.matmul %355, %342, %cst_121 {dimension_numbers = #tpu.dot_dimension_numbers<[1], [0], [0], [1], [0, 0, 1, 1], [], []>} : vector<8x128xbf16>, vector<128x512xbf16>, vector<8x512xf32> -> vector<8x512xf32>
    %357 = arith.addf %354, %356 : vector<8x512xf32>
    %358 = vector.extract_strided_slice %357 {offsets = [0, 0], sizes = [8, 128], strides = [1, 1]} : vector<8x512xf32> to vector<8x128xf32>
    %359 = arith.negf %358 : vector<8x128xf32>
    %360 = math.exp %359 : vector<8x128xf32>
    %cst_122 = arith.constant 1.000000e+00 : f32
    %361 = vector.broadcast %cst_122 : f32 to vector<8x128xf32>
    %362 = arith.addf %361, %360 : vector<8x128xf32>
    %363 = arith.divf %361, %362 : vector<8x128xf32>
    %364 = vector.extract_strided_slice %357 {offsets = [0, 128], sizes = [8, 128], strides = [1, 1]} : vector<8x512xf32> to vector<8x128xf32>
    %365 = arith.negf %364 : vector<8x128xf32>
    %366 = math.exp %365 : vector<8x128xf32>
    %cst_123 = arith.constant 1.000000e+00 : f32
    %367 = vector.broadcast %cst_123 : f32 to vector<8x128xf32>
    %368 = arith.addf %367, %366 : vector<8x128xf32>
    %369 = arith.divf %367, %368 : vector<8x128xf32>
    %370 = vector.extract_strided_slice %357 {offsets = [0, 256], sizes = [8, 128], strides = [1, 1]} : vector<8x512xf32> to vector<8x128xf32>
    %371 = math.tanh %370 : vector<8x128xf32>
    %372 = vector.extract_strided_slice %357 {offsets = [0, 384], sizes = [8, 128], strides = [1, 1]} : vector<8x512xf32> to vector<8x128xf32>
    %373 = arith.negf %372 : vector<8x128xf32>
    %374 = math.exp %373 : vector<8x128xf32>
    %cst_124 = arith.constant 1.000000e+00 : f32
    %375 = vector.broadcast %cst_124 : f32 to vector<8x128xf32>
    %376 = arith.addf %375, %374 : vector<8x128xf32>
    %377 = arith.divf %375, %376 : vector<8x128xf32>
    %378 = arith.mulf %369, %350 : vector<8x128xf32>
    %379 = arith.mulf %363, %371 : vector<8x128xf32>
    %380 = arith.addf %378, %379 : vector<8x128xf32>
    %381 = math.tanh %380 : vector<8x128xf32>
    %382 = arith.mulf %377, %381 : vector<8x128xf32>
    %383 = arith.index_cast %352 : i32 to index
    %c0_125 = arith.constant 0 : index
    %384 = vector.load %arg13[%383, %c0_125] : memref<64x128xf32, #tpu.memory_space<vmem>>, vector<8x128xf32>
    tpu.vector_store %arg13[%383, %c0_125], %382 {strides = array<i32>} : memref<64x128xf32, #tpu.memory_space<vmem>>, vector<8x128xf32>,
    %c1_i32_126 = arith.constant 1 : i32
    %c8_i32_127 = arith.constant 8 : i32
    %385 = arith.muli %c1_i32_126, %c8_i32_127 : i32
    %386 = tpu.assume_multiple %385, 8 : i32
    %387 = arith.index_cast %386 : i32 to index
    %c0_128 = arith.constant 0 : index
    %388 = vector.load %arg12[%387, %c0_128] : memref<64x512xf32, #tpu.memory_space<vmem>>, vector<8x512xf32>
    %389 = arith.truncf %382 : vector<8x128xf32> to vector<8x128xbf16>
    %cst_129 = arith.constant dense<0.000000e+00> : vector<8x512xf32>
    %390 = tpu.matmul %389, %342, %cst_129 {dimension_numbers = #tpu.dot_dimension_numbers<[1], [0], [0], [1], [0, 0, 1, 1], [], []>} : vector<8x128xbf16>, vector<128x512xbf16>, vector<8x512xf32> -> vector<8x512xf32>
    %391 = arith.addf %388, %390 : vector<8x512xf32>
    %392 = vector.extract_strided_slice %391 {offsets = [0, 0], sizes = [8, 128], strides = [1, 1]} : vector<8x512xf32> to vector<8x128xf32>
    %393 = arith.negf %392 : vector<8x128xf32>
    %394 = math.exp %393 : vector<8x128xf32>
    %cst_130 = arith.constant 1.000000e+00 : f32
    %395 = vector.broadcast %cst_130 : f32 to vector<8x128xf32>
    %396 = arith.addf %395, %394 : vector<8x128xf32>
    %397 = arith.divf %395, %396 : vector<8x128xf32>
    %398 = vector.extract_strided_slice %391 {offsets = [0, 128], sizes = [8, 128], strides = [1, 1]} : vector<8x512xf32> to vector<8x128xf32>
    %399 = arith.negf %398 : vector<8x128xf32>
    %400 = math.exp %399 : vector<8x128xf32>
    %cst_131 = arith.constant 1.000000e+00 : f32
    %401 = vector.broadcast %cst_131 : f32 to vector<8x128xf32>
    %402 = arith.addf %401, %400 : vector<8x128xf32>
    %403 = arith.divf %401, %402 : vector<8x128xf32>
    %404 = vector.extract_strided_slice %391 {offsets = [0, 256], sizes = [8, 128], strides = [1, 1]} : vector<8x512xf32> to vector<8x128xf32>
    %405 = math.tanh %404 : vector<8x128xf32>
    %406 = vector.extract_strided_slice %391 {offsets = [0, 384], sizes = [8, 128], strides = [1, 1]} : vector<8x512xf32> to vector<8x128xf32>
    %407 = arith.negf %406 : vector<8x128xf32>
    %408 = math.exp %407 : vector<8x128xf32>
    %cst_132 = arith.constant 1.000000e+00 : f32
    %409 = vector.broadcast %cst_132 : f32 to vector<8x128xf32>
    %410 = arith.addf %409, %408 : vector<8x128xf32>
    %411 = arith.divf %409, %410 : vector<8x128xf32>
    %412 = arith.mulf %403, %380 : vector<8x128xf32>
    %413 = arith.mulf %397, %405 : vector<8x128xf32>
    %414 = arith.addf %412, %413 : vector<8x128xf32>
    %415 = math.tanh %414 : vector<8x128xf32>
    %416 = arith.mulf %411, %415 : vector<8x128xf32>
    %417 = arith.index_cast %386 : i32 to index
    %c0_133 = arith.constant 0 : index
    %418 = vector.load %arg13[%417, %c0_133] : memref<64x128xf32, #tpu.memory_space<vmem>>, vector<8x128xf32>
    tpu.vector_store %arg13[%417, %c0_133], %416 {strides = array<i32>} : memref<64x128xf32, #tpu.memory_space<vmem>>, vector<8x128xf32>,
    %c2_i32_134 = arith.constant 2 : i32
    %c8_i32_135 = arith.constant 8 : i32
    %419 = arith.muli %c2_i32_134, %c8_i32_135 : i32
    %420 = tpu.assume_multiple %419, 8 : i32
    %421 = arith.index_cast %420 : i32 to index
    %c0_136 = arith.constant 0 : index
    %422 = vector.load %arg12[%421, %c0_136] : memref<64x512xf32, #tpu.memory_space<vmem>>, vector<8x512xf32>
    %423 = arith.truncf %416 : vector<8x128xf32> to vector<8x128xbf16>
    %cst_137 = arith.constant dense<0.000000e+00> : vector<8x512xf32>
    %424 = tpu.matmul %423, %342, %cst_137 {dimension_numbers = #tpu.dot_dimension_numbers<[1], [0], [0], [1], [0, 0, 1, 1], [], []>} : vector<8x128xbf16>, vector<128x512xbf16>, vector<8x512xf32> -> vector<8x512xf32>
    %425 = arith.addf %422, %424 : vector<8x512xf32>
    %426 = vector.extract_strided_slice %425 {offsets = [0, 0], sizes = [8, 128], strides = [1, 1]} : vector<8x512xf32> to vector<8x128xf32>
    %427 = arith.negf %426 : vector<8x128xf32>
    %428 = math.exp %427 : vector<8x128xf32>
    %cst_138 = arith.constant 1.000000e+00 : f32
    %429 = vector.broadcast %cst_138 : f32 to vector<8x128xf32>
    %430 = arith.addf %429, %428 : vector<8x128xf32>
    %431 = arith.divf %429, %430 : vector<8x128xf32>
    %432 = vector.extract_strided_slice %425 {offsets = [0, 128], sizes = [8, 128], strides = [1, 1]} : vector<8x512xf32> to vector<8x128xf32>
    %433 = arith.negf %432 : vector<8x128xf32>
    %434 = math.exp %433 : vector<8x128xf32>
    %cst_139 = arith.constant 1.000000e+00 : f32
    %435 = vector.broadcast %cst_139 : f32 to vector<8x128xf32>
    %436 = arith.addf %435, %434 : vector<8x128xf32>
    %437 = arith.divf %435, %436 : vector<8x128xf32>
    %438 = vector.extract_strided_slice %425 {offsets = [0, 256], sizes = [8, 128], strides = [1, 1]} : vector<8x512xf32> to vector<8x128xf32>
    %439 = math.tanh %438 : vector<8x128xf32>
    %440 = vector.extract_strided_slice %425 {offsets = [0, 384], sizes = [8, 128], strides = [1, 1]} : vector<8x512xf32> to vector<8x128xf32>
    %441 = arith.negf %440 : vector<8x128xf32>
    %442 = math.exp %441 : vector<8x128xf32>
    %cst_140 = arith.constant 1.000000e+00 : f32
    %443 = vector.broadcast %cst_140 : f32 to vector<8x128xf32>
    %444 = arith.addf %443, %442 : vector<8x128xf32>
    %445 = arith.divf %443, %444 : vector<8x128xf32>
    %446 = arith.mulf %437, %414 : vector<8x128xf32>
    %447 = arith.mulf %431, %439 : vector<8x128xf32>
    %448 = arith.addf %446, %447 : vector<8x128xf32>
    %449 = math.tanh %448 : vector<8x128xf32>
    %450 = arith.mulf %445, %449 : vector<8x128xf32>
    %451 = arith.index_cast %420 : i32 to index
    %c0_141 = arith.constant 0 : index
    %452 = vector.load %arg13[%451, %c0_141] : memref<64x128xf32, #tpu.memory_space<vmem>>, vector<8x128xf32>
    tpu.vector_store %arg13[%451, %c0_141], %450 {strides = array<i32>} : memref<64x128xf32, #tpu.memory_space<vmem>>, vector<8x128xf32>,
    %c3_i32_142 = arith.constant 3 : i32
    %c8_i32_143 = arith.constant 8 : i32
    %453 = arith.muli %c3_i32_142, %c8_i32_143 : i32
    %454 = tpu.assume_multiple %453, 8 : i32
    %455 = arith.index_cast %454 : i32 to index
    %c0_144 = arith.constant 0 : index
    %456 = vector.load %arg12[%455, %c0_144] : memref<64x512xf32, #tpu.memory_space<vmem>>, vector<8x512xf32>
    %457 = arith.truncf %450 : vector<8x128xf32> to vector<8x128xbf16>
    %cst_145 = arith.constant dense<0.000000e+00> : vector<8x512xf32>
    %458 = tpu.matmul %457, %342, %cst_145 {dimension_numbers = #tpu.dot_dimension_numbers<[1], [0], [0], [1], [0, 0, 1, 1], [], []>} : vector<8x128xbf16>, vector<128x512xbf16>, vector<8x512xf32> -> vector<8x512xf32>
    %459 = arith.addf %456, %458 : vector<8x512xf32>
    %460 = vector.extract_strided_slice %459 {offsets = [0, 0], sizes = [8, 128], strides = [1, 1]} : vector<8x512xf32> to vector<8x128xf32>
    %461 = arith.negf %460 : vector<8x128xf32>
    %462 = math.exp %461 : vector<8x128xf32>
    %cst_146 = arith.constant 1.000000e+00 : f32
    %463 = vector.broadcast %cst_146 : f32 to vector<8x128xf32>
    %464 = arith.addf %463, %462 : vector<8x128xf32>
    %465 = arith.divf %463, %464 : vector<8x128xf32>
    %466 = vector.extract_strided_slice %459 {offsets = [0, 128], sizes = [8, 128], strides = [1, 1]} : vector<8x512xf32> to vector<8x128xf32>
    %467 = arith.negf %466 : vector<8x128xf32>
    %468 = math.exp %467 : vector<8x128xf32>
    %cst_147 = arith.constant 1.000000e+00 : f32
    %469 = vector.broadcast %cst_147 : f32 to vector<8x128xf32>
    %470 = arith.addf %469, %468 : vector<8x128xf32>
    %471 = arith.divf %469, %470 : vector<8x128xf32>
    %472 = vector.extract_strided_slice %459 {offsets = [0, 256], sizes = [8, 128], strides = [1, 1]} : vector<8x512xf32> to vector<8x128xf32>
    %473 = math.tanh %472 : vector<8x128xf32>
    %474 = vector.extract_strided_slice %459 {offsets = [0, 384], sizes = [8, 128], strides = [1, 1]} : vector<8x512xf32> to vector<8x128xf32>
    %475 = arith.negf %474 : vector<8x128xf32>
    %476 = math.exp %475 : vector<8x128xf32>
    %cst_148 = arith.constant 1.000000e+00 : f32
    %477 = vector.broadcast %cst_148 : f32 to vector<8x128xf32>
    %478 = arith.addf %477, %476 : vector<8x128xf32>
    %479 = arith.divf %477, %478 : vector<8x128xf32>
    %480 = arith.mulf %471, %448 : vector<8x128xf32>
    %481 = arith.mulf %465, %473 : vector<8x128xf32>
    %482 = arith.addf %480, %481 : vector<8x128xf32>
    %483 = math.tanh %482 : vector<8x128xf32>
    %484 = arith.mulf %479, %483 : vector<8x128xf32>
    %485 = arith.index_cast %454 : i32 to index
    %c0_149 = arith.constant 0 : index
    %486 = vector.load %arg13[%485, %c0_149] : memref<64x128xf32, #tpu.memory_space<vmem>>, vector<8x128xf32>
    tpu.vector_store %arg13[%485, %c0_149], %484 {strides = array<i32>} : memref<64x128xf32, #tpu.memory_space<vmem>>, vector<8x128xf32>,
    %c4_i32_150 = arith.constant 4 : i32
    %c8_i32_151 = arith.constant 8 : i32
    %487 = arith.muli %c4_i32_150, %c8_i32_151 : i32
    %488 = tpu.assume_multiple %487, 8 : i32
    %489 = arith.index_cast %488 : i32 to index
    %c0_152 = arith.constant 0 : index
    %490 = vector.load %arg12[%489, %c0_152] : memref<64x512xf32, #tpu.memory_space<vmem>>, vector<8x512xf32>
    %491 = arith.truncf %484 : vector<8x128xf32> to vector<8x128xbf16>
    %cst_153 = arith.constant dense<0.000000e+00> : vector<8x512xf32>
    %492 = tpu.matmul %491, %342, %cst_153 {dimension_numbers = #tpu.dot_dimension_numbers<[1], [0], [0], [1], [0, 0, 1, 1], [], []>} : vector<8x128xbf16>, vector<128x512xbf16>, vector<8x512xf32> -> vector<8x512xf32>
    %493 = arith.addf %490, %492 : vector<8x512xf32>
    %494 = vector.extract_strided_slice %493 {offsets = [0, 0], sizes = [8, 128], strides = [1, 1]} : vector<8x512xf32> to vector<8x128xf32>
    %495 = arith.negf %494 : vector<8x128xf32>
    %496 = math.exp %495 : vector<8x128xf32>
    %cst_154 = arith.constant 1.000000e+00 : f32
    %497 = vector.broadcast %cst_154 : f32 to vector<8x128xf32>
    %498 = arith.addf %497, %496 : vector<8x128xf32>
    %499 = arith.divf %497, %498 : vector<8x128xf32>
    %500 = vector.extract_strided_slice %493 {offsets = [0, 128], sizes = [8, 128], strides = [1, 1]} : vector<8x512xf32> to vector<8x128xf32>
    %501 = arith.negf %500 : vector<8x128xf32>
    %502 = math.exp %501 : vector<8x128xf32>
    %cst_155 = arith.constant 1.000000e+00 : f32
    %503 = vector.broadcast %cst_155 : f32 to vector<8x128xf32>
    %504 = arith.addf %503, %502 : vector<8x128xf32>
    %505 = arith.divf %503, %504 : vector<8x128xf32>
    %506 = vector.extract_strided_slice %493 {offsets = [0, 256], sizes = [8, 128], strides = [1, 1]} : vector<8x512xf32> to vector<8x128xf32>
    %507 = math.tanh %506 : vector<8x128xf32>
    %508 = vector.extract_strided_slice %493 {offsets = [0, 384], sizes = [8, 128], strides = [1, 1]} : vector<8x512xf32> to vector<8x128xf32>
    %509 = arith.negf %508 : vector<8x128xf32>
    %510 = math.exp %509 : vector<8x128xf32>
    %cst_156 = arith.constant 1.000000e+00 : f32
    %511 = vector.broadcast %cst_156 : f32 to vector<8x128xf32>
    %512 = arith.addf %511, %510 : vector<8x128xf32>
    %513 = arith.divf %511, %512 : vector<8x128xf32>
    %514 = arith.mulf %505, %482 : vector<8x128xf32>
    %515 = arith.mulf %499, %507 : vector<8x128xf32>
    %516 = arith.addf %514, %515 : vector<8x128xf32>
    %517 = math.tanh %516 : vector<8x128xf32>
    %518 = arith.mulf %513, %517 : vector<8x128xf32>
    %519 = arith.index_cast %488 : i32 to index
    %c0_157 = arith.constant 0 : index
    %520 = vector.load %arg13[%519, %c0_157] : memref<64x128xf32, #tpu.memory_space<vmem>>, vector<8x128xf32>
    tpu.vector_store %arg13[%519, %c0_157], %518 {strides = array<i32>} : memref<64x128xf32, #tpu.memory_space<vmem>>, vector<8x128xf32>,
    %c5_i32_158 = arith.constant 5 : i32
    %c8_i32_159 = arith.constant 8 : i32
    %521 = arith.muli %c5_i32_158, %c8_i32_159 : i32
    %522 = tpu.assume_multiple %521, 8 : i32
    %523 = arith.index_cast %522 : i32 to index
    %c0_160 = arith.constant 0 : index
    %524 = vector.load %arg12[%523, %c0_160] : memref<64x512xf32, #tpu.memory_space<vmem>>, vector<8x512xf32>
    %525 = arith.truncf %518 : vector<8x128xf32> to vector<8x128xbf16>
    %cst_161 = arith.constant dense<0.000000e+00> : vector<8x512xf32>
    %526 = tpu.matmul %525, %342, %cst_161 {dimension_numbers = #tpu.dot_dimension_numbers<[1], [0], [0], [1], [0, 0, 1, 1], [], []>} : vector<8x128xbf16>, vector<128x512xbf16>, vector<8x512xf32> -> vector<8x512xf32>
    %527 = arith.addf %524, %526 : vector<8x512xf32>
    %528 = vector.extract_strided_slice %527 {offsets = [0, 0], sizes = [8, 128], strides = [1, 1]} : vector<8x512xf32> to vector<8x128xf32>
    %529 = arith.negf %528 : vector<8x128xf32>
    %530 = math.exp %529 : vector<8x128xf32>
    %cst_162 = arith.constant 1.000000e+00 : f32
    %531 = vector.broadcast %cst_162 : f32 to vector<8x128xf32>
    %532 = arith.addf %531, %530 : vector<8x128xf32>
    %533 = arith.divf %531, %532 : vector<8x128xf32>
    %534 = vector.extract_strided_slice %527 {offsets = [0, 128], sizes = [8, 128], strides = [1, 1]} : vector<8x512xf32> to vector<8x128xf32>
    %535 = arith.negf %534 : vector<8x128xf32>
    %536 = math.exp %535 : vector<8x128xf32>
    %cst_163 = arith.constant 1.000000e+00 : f32
    %537 = vector.broadcast %cst_163 : f32 to vector<8x128xf32>
    %538 = arith.addf %537, %536 : vector<8x128xf32>
    %539 = arith.divf %537, %538 : vector<8x128xf32>
    %540 = vector.extract_strided_slice %527 {offsets = [0, 256], sizes = [8, 128], strides = [1, 1]} : vector<8x512xf32> to vector<8x128xf32>
    %541 = math.tanh %540 : vector<8x128xf32>
    %542 = vector.extract_strided_slice %527 {offsets = [0, 384], sizes = [8, 128], strides = [1, 1]} : vector<8x512xf32> to vector<8x128xf32>
    %543 = arith.negf %542 : vector<8x128xf32>
    %544 = math.exp %543 : vector<8x128xf32>
    %cst_164 = arith.constant 1.000000e+00 : f32
    %545 = vector.broadcast %cst_164 : f32 to vector<8x128xf32>
    %546 = arith.addf %545, %544 : vector<8x128xf32>
    %547 = arith.divf %545, %546 : vector<8x128xf32>
    %548 = arith.mulf %539, %516 : vector<8x128xf32>
    %549 = arith.mulf %533, %541 : vector<8x128xf32>
    %550 = arith.addf %548, %549 : vector<8x128xf32>
    %551 = math.tanh %550 : vector<8x128xf32>
    %552 = arith.mulf %547, %551 : vector<8x128xf32>
    %553 = arith.index_cast %522 : i32 to index
    %c0_165 = arith.constant 0 : index
    %554 = vector.load %arg13[%553, %c0_165] : memref<64x128xf32, #tpu.memory_space<vmem>>, vector<8x128xf32>
    tpu.vector_store %arg13[%553, %c0_165], %552 {strides = array<i32>} : memref<64x128xf32, #tpu.memory_space<vmem>>, vector<8x128xf32>,
    %c6_i32_166 = arith.constant 6 : i32
    %c8_i32_167 = arith.constant 8 : i32
    %555 = arith.muli %c6_i32_166, %c8_i32_167 : i32
    %556 = tpu.assume_multiple %555, 8 : i32
    %557 = arith.index_cast %556 : i32 to index
    %c0_168 = arith.constant 0 : index
    %558 = vector.load %arg12[%557, %c0_168] : memref<64x512xf32, #tpu.memory_space<vmem>>, vector<8x512xf32>
    %559 = arith.truncf %552 : vector<8x128xf32> to vector<8x128xbf16>
    %cst_169 = arith.constant dense<0.000000e+00> : vector<8x512xf32>
    %560 = tpu.matmul %559, %342, %cst_169 {dimension_numbers = #tpu.dot_dimension_numbers<[1], [0], [0], [1], [0, 0, 1, 1], [], []>} : vector<8x128xbf16>, vector<128x512xbf16>, vector<8x512xf32> -> vector<8x512xf32>
    %561 = arith.addf %558, %560 : vector<8x512xf32>
    %562 = vector.extract_strided_slice %561 {offsets = [0, 0], sizes = [8, 128], strides = [1, 1]} : vector<8x512xf32> to vector<8x128xf32>
    %563 = arith.negf %562 : vector<8x128xf32>
    %564 = math.exp %563 : vector<8x128xf32>
    %cst_170 = arith.constant 1.000000e+00 : f32
    %565 = vector.broadcast %cst_170 : f32 to vector<8x128xf32>
    %566 = arith.addf %565, %564 : vector<8x128xf32>
    %567 = arith.divf %565, %566 : vector<8x128xf32>
    %568 = vector.extract_strided_slice %561 {offsets = [0, 128], sizes = [8, 128], strides = [1, 1]} : vector<8x512xf32> to vector<8x128xf32>
    %569 = arith.negf %568 : vector<8x128xf32>
    %570 = math.exp %569 : vector<8x128xf32>
    %cst_171 = arith.constant 1.000000e+00 : f32
    %571 = vector.broadcast %cst_171 : f32 to vector<8x128xf32>
    %572 = arith.addf %571, %570 : vector<8x128xf32>
    %573 = arith.divf %571, %572 : vector<8x128xf32>
    %574 = vector.extract_strided_slice %561 {offsets = [0, 256], sizes = [8, 128], strides = [1, 1]} : vector<8x512xf32> to vector<8x128xf32>
    %575 = math.tanh %574 : vector<8x128xf32>
    %576 = vector.extract_strided_slice %561 {offsets = [0, 384], sizes = [8, 128], strides = [1, 1]} : vector<8x512xf32> to vector<8x128xf32>
    %577 = arith.negf %576 : vector<8x128xf32>
    %578 = math.exp %577 : vector<8x128xf32>
    %cst_172 = arith.constant 1.000000e+00 : f32
    %579 = vector.broadcast %cst_172 : f32 to vector<8x128xf32>
    %580 = arith.addf %579, %578 : vector<8x128xf32>
    %581 = arith.divf %579, %580 : vector<8x128xf32>
    %582 = arith.mulf %573, %550 : vector<8x128xf32>
    %583 = arith.mulf %567, %575 : vector<8x128xf32>
    %584 = arith.addf %582, %583 : vector<8x128xf32>
    %585 = math.tanh %584 : vector<8x128xf32>
    %586 = arith.mulf %581, %585 : vector<8x128xf32>
    %587 = arith.index_cast %556 : i32 to index
    %c0_173 = arith.constant 0 : index
    %588 = vector.load %arg13[%587, %c0_173] : memref<64x128xf32, #tpu.memory_space<vmem>>, vector<8x128xf32>
    tpu.vector_store %arg13[%587, %c0_173], %586 {strides = array<i32>} : memref<64x128xf32, #tpu.memory_space<vmem>>, vector<8x128xf32>,
    %c7_i32_174 = arith.constant 7 : i32
    %c8_i32_175 = arith.constant 8 : i32
    %589 = arith.muli %c7_i32_174, %c8_i32_175 : i32
    %590 = tpu.assume_multiple %589, 8 : i32
    %591 = arith.index_cast %590 : i32 to index
    %c0_176 = arith.constant 0 : index
    %592 = vector.load %arg12[%591, %c0_176] : memref<64x512xf32, #tpu.memory_space<vmem>>, vector<8x512xf32>
    %593 = arith.truncf %586 : vector<8x128xf32> to vector<8x128xbf16>
    %cst_177 = arith.constant dense<0.000000e+00> : vector<8x512xf32>
    %594 = tpu.matmul %593, %342, %cst_177 {dimension_numbers = #tpu.dot_dimension_numbers<[1], [0], [0], [1], [0, 0, 1, 1], [], []>} : vector<8x128xbf16>, vector<128x512xbf16>, vector<8x512xf32> -> vector<8x512xf32>
    %595 = arith.addf %592, %594 : vector<8x512xf32>
    %596 = vector.extract_strided_slice %595 {offsets = [0, 0], sizes = [8, 128], strides = [1, 1]} : vector<8x512xf32> to vector<8x128xf32>
    %597 = arith.negf %596 : vector<8x128xf32>
    %598 = math.exp %597 : vector<8x128xf32>
    %cst_178 = arith.constant 1.000000e+00 : f32
    %599 = vector.broadcast %cst_178 : f32 to vector<8x128xf32>
    %600 = arith.addf %599, %598 : vector<8x128xf32>
    %601 = arith.divf %599, %600 : vector<8x128xf32>
    %602 = vector.extract_strided_slice %595 {offsets = [0, 128], sizes = [8, 128], strides = [1, 1]} : vector<8x512xf32> to vector<8x128xf32>
    %603 = arith.negf %602 : vector<8x128xf32>
    %604 = math.exp %603 : vector<8x128xf32>
    %cst_179 = arith.constant 1.000000e+00 : f32
    %605 = vector.broadcast %cst_179 : f32 to vector<8x128xf32>
    %606 = arith.addf %605, %604 : vector<8x128xf32>
    %607 = arith.divf %605, %606 : vector<8x128xf32>
    %608 = vector.extract_strided_slice %595 {offsets = [0, 256], sizes = [8, 128], strides = [1, 1]} : vector<8x512xf32> to vector<8x128xf32>
    %609 = math.tanh %608 : vector<8x128xf32>
    %610 = vector.extract_strided_slice %595 {offsets = [0, 384], sizes = [8, 128], strides = [1, 1]} : vector<8x512xf32> to vector<8x128xf32>
    %611 = arith.negf %610 : vector<8x128xf32>
    %612 = math.exp %611 : vector<8x128xf32>
    %cst_180 = arith.constant 1.000000e+00 : f32
    %613 = vector.broadcast %cst_180 : f32 to vector<8x128xf32>
    %614 = arith.addf %613, %612 : vector<8x128xf32>
    %615 = arith.divf %613, %614 : vector<8x128xf32>
    %616 = arith.mulf %607, %584 : vector<8x128xf32>
    %617 = arith.mulf %601, %609 : vector<8x128xf32>
    %618 = arith.addf %616, %617 : vector<8x128xf32>
    %619 = math.tanh %618 : vector<8x128xf32>
    %620 = arith.mulf %615, %619 : vector<8x128xf32>
    %621 = arith.index_cast %590 : i32 to index
    %c0_181 = arith.constant 0 : index
    %622 = vector.load %arg13[%621, %c0_181] : memref<64x128xf32, #tpu.memory_space<vmem>>, vector<8x128xf32>
    tpu.vector_store %arg13[%621, %c0_181], %620 {strides = array<i32>} : memref<64x128xf32, #tpu.memory_space<vmem>>, vector<8x128xf32>,
    %c8_i32_182 = arith.constant 8 : i32
    %c8 = arith.constant 8 : index
    %c0_183 = arith.constant 0 : index
    %623 = vector.load %arg9[%c8, %c0_183] : memref<16x128xf32, #tpu.memory_space<vmem>>, vector<8x128xf32>
    tpu.vector_store %arg9[%c8, %c0_183], %620 {strides = array<i32>} : memref<16x128xf32, #tpu.memory_space<vmem>>, vector<8x128xf32>,
    %c8_184 = arith.constant 8 : index
    %c0_185 = arith.constant 0 : index
    %624 = vector.load %arg10[%c8_184, %c0_185] : memref<16x128xf32, #tpu.memory_space<vmem>>, vector<8x128xf32>
    tpu.vector_store %arg10[%c8_184, %c0_185], %618 {strides = array<i32>} : memref<16x128xf32, #tpu.memory_space<vmem>>, vector<8x128xf32>,
    %c0_186 = arith.constant 0 : index
    %c0_187 = arith.constant 0 : index
    %625 = tpu.strided_load %arg13[%c0_186, %c0_187] {strides = array<i32: 8, 1>} : memref<64x128xf32, #tpu.memory_space<vmem>>, vector<8x128xf32>
    %c0_188 = arith.constant 0 : index
    %c0_189 = arith.constant 0 : index
    %c0_190 = arith.constant 0 : index
    %626 = vector.load %arg8[%c0_188, %c0_189, %c0_190] : memref<8x8x128xf32, #tpu.memory_space<vmem>>, vector<1x8x128xf32>
    %627 = vector.shape_cast %626 : vector<1x8x128xf32> to vector<8x128xf32>
    %628 = vector.shape_cast %625 : vector<8x128xf32> to vector<1x8x128xf32>
    tpu.vector_store %arg8[%c0_188, %c0_189, %c0_190], %628 {strides = array<i32>} : memref<8x8x128xf32, #tpu.memory_space<vmem>>, vector<1x8x128xf32>,
    %c1_191 = arith.constant 1 : index
    %c0_192 = arith.constant 0 : index
    %629 = tpu.strided_load %arg13[%c1_191, %c0_192] {strides = array<i32: 8, 1>} : memref<64x128xf32, #tpu.memory_space<vmem>>, vector<8x128xf32>
    %c1_193 = arith.constant 1 : index
    %c0_194 = arith.constant 0 : index
    %c0_195 = arith.constant 0 : index
    %630 = vector.load %arg8[%c1_193, %c0_194, %c0_195] : memref<8x8x128xf32, #tpu.memory_space<vmem>>, vector<1x8x128xf32>
    %631 = vector.shape_cast %630 : vector<1x8x128xf32> to vector<8x128xf32>
    %632 = vector.shape_cast %629 : vector<8x128xf32> to vector<1x8x128xf32>
    tpu.vector_store %arg8[%c1_193, %c0_194, %c0_195], %632 {strides = array<i32>} : memref<8x8x128xf32, #tpu.memory_space<vmem>>, vector<1x8x128xf32>,
    %c2_196 = arith.constant 2 : index
    %c0_197 = arith.constant 0 : index
    %633 = tpu.strided_load %arg13[%c2_196, %c0_197] {strides = array<i32: 8, 1>} : memref<64x128xf32, #tpu.memory_space<vmem>>, vector<8x128xf32>
    %c2_198 = arith.constant 2 : index
    %c0_199 = arith.constant 0 : index
    %c0_200 = arith.constant 0 : index
    %634 = vector.load %arg8[%c2_198, %c0_199, %c0_200] : memref<8x8x128xf32, #tpu.memory_space<vmem>>, vector<1x8x128xf32>
    %635 = vector.shape_cast %634 : vector<1x8x128xf32> to vector<8x128xf32>
    %636 = vector.shape_cast %633 : vector<8x128xf32> to vector<1x8x128xf32>
    tpu.vector_store %arg8[%c2_198, %c0_199, %c0_200], %636 {strides = array<i32>} : memref<8x8x128xf32, #tpu.memory_space<vmem>>, vector<1x8x128xf32>,
    %c3_201 = arith.constant 3 : index
    %c0_202 = arith.constant 0 : index
    %637 = tpu.strided_load %arg13[%c3_201, %c0_202] {strides = array<i32: 8, 1>} : memref<64x128xf32, #tpu.memory_space<vmem>>, vector<8x128xf32>
    %c3_203 = arith.constant 3 : index
    %c0_204 = arith.constant 0 : index
    %c0_205 = arith.constant 0 : index
    %638 = vector.load %arg8[%c3_203, %c0_204, %c0_205] : memref<8x8x128xf32, #tpu.memory_space<vmem>>, vector<1x8x128xf32>
    %639 = vector.shape_cast %638 : vector<1x8x128xf32> to vector<8x128xf32>
    %640 = vector.shape_cast %637 : vector<8x128xf32> to vector<1x8x128xf32>
    tpu.vector_store %arg8[%c3_203, %c0_204, %c0_205], %640 {strides = array<i32>} : memref<8x8x128xf32, #tpu.memory_space<vmem>>, vector<1x8x128xf32>,
    %c4_206 = arith.constant 4 : index
    %c0_207 = arith.constant 0 : index
    %641 = tpu.strided_load %arg13[%c4_206, %c0_207] {strides = array<i32: 8, 1>} : memref<64x128xf32, #tpu.memory_space<vmem>>, vector<8x128xf32>
    %c4_208 = arith.constant 4 : index
    %c0_209 = arith.constant 0 : index
    %c0_210 = arith.constant 0 : index
    %642 = vector.load %arg8[%c4_208, %c0_209, %c0_210] : memref<8x8x128xf32, #tpu.memory_space<vmem>>, vector<1x8x128xf32>
    %643 = vector.shape_cast %642 : vector<1x8x128xf32> to vector<8x128xf32>
    %644 = vector.shape_cast %641 : vector<8x128xf32> to vector<1x8x128xf32>
    tpu.vector_store %arg8[%c4_208, %c0_209, %c0_210], %644 {strides = array<i32>} : memref<8x8x128xf32, #tpu.memory_space<vmem>>, vector<1x8x128xf32>,
    %c5_211 = arith.constant 5 : index
    %c0_212 = arith.constant 0 : index
    %645 = tpu.strided_load %arg13[%c5_211, %c0_212] {strides = array<i32: 8, 1>} : memref<64x128xf32, #tpu.memory_space<vmem>>, vector<8x128xf32>
    %c5_213 = arith.constant 5 : index
    %c0_214 = arith.constant 0 : index
    %c0_215 = arith.constant 0 : index
    %646 = vector.load %arg8[%c5_213, %c0_214, %c0_215] : memref<8x8x128xf32, #tpu.memory_space<vmem>>, vector<1x8x128xf32>
    %647 = vector.shape_cast %646 : vector<1x8x128xf32> to vector<8x128xf32>
    %648 = vector.shape_cast %645 : vector<8x128xf32> to vector<1x8x128xf32>
    tpu.vector_store %arg8[%c5_213, %c0_214, %c0_215], %648 {strides = array<i32>} : memref<8x8x128xf32, #tpu.memory_space<vmem>>, vector<1x8x128xf32>,
    %c6_216 = arith.constant 6 : index
    %c0_217 = arith.constant 0 : index
    %649 = tpu.strided_load %arg13[%c6_216, %c0_217] {strides = array<i32: 8, 1>} : memref<64x128xf32, #tpu.memory_space<vmem>>, vector<8x128xf32>
    %c6_218 = arith.constant 6 : index
    %c0_219 = arith.constant 0 : index
    %c0_220 = arith.constant 0 : index
    %650 = vector.load %arg8[%c6_218, %c0_219, %c0_220] : memref<8x8x128xf32, #tpu.memory_space<vmem>>, vector<1x8x128xf32>
    %651 = vector.shape_cast %650 : vector<1x8x128xf32> to vector<8x128xf32>
    %652 = vector.shape_cast %649 : vector<8x128xf32> to vector<1x8x128xf32>
    tpu.vector_store %arg8[%c6_218, %c0_219, %c0_220], %652 {strides = array<i32>} : memref<8x8x128xf32, #tpu.memory_space<vmem>>, vector<1x8x128xf32>,
    %c7_221 = arith.constant 7 : index
    %c0_222 = arith.constant 0 : index
    %653 = tpu.strided_load %arg13[%c7_221, %c0_222] {strides = array<i32: 8, 1>} : memref<64x128xf32, #tpu.memory_space<vmem>>, vector<8x128xf32>
    %c7_223 = arith.constant 7 : index
    %c0_224 = arith.constant 0 : index
    %c0_225 = arith.constant 0 : index
    %654 = vector.load %arg8[%c7_223, %c0_224, %c0_225] : memref<8x8x128xf32, #tpu.memory_space<vmem>>, vector<1x8x128xf32>
    %655 = vector.shape_cast %654 : vector<1x8x128xf32> to vector<8x128xf32>
    %656 = vector.shape_cast %653 : vector<8x128xf32> to vector<1x8x128xf32>
    tpu.vector_store %arg8[%c7_223, %c0_224, %c0_225], %656 {strides = array<i32>} : memref<8x8x128xf32, #tpu.memory_space<vmem>>, vector<1x8x128xf32>,
    return
  }
}

</mosaic_0001>

<bundles_post_ra>
// kernel: pgn_forward.1
= control target key start
LH: loop header
LB: loop body
LE: loop exit
PB: predicated region body
PF: predicated region fallthrough
CT: control target
= control target key end

     0   :  { %16 = vsyncpa [#allocation7], 0  ;;  %s4495_s16 = smov [#allocation6]   ;;  %s6346_s0 = inlined_call_operand.vmem [shape: s32[64], index: 0, kind: input, shape index: {}]   ;;  %s6347_s1 = inlined_call_operand.vmem [shape: f32[64,32], index: 1, kind: input, shape index: {}]   ;;  %s6348_s2 = inlined_call_operand.vmem [shape: bf16[32,512], index: 2, kind: input, shape index: {}]   ;;  %s6349_s3 = inlined_call_operand.vmem [shape: bf16[128,512], index: 3, kind: input, shape index: {}]   ;;  %s6350_s4 = inlined_call_operand.vmem [shape: f32[1,512], index: 4, kind: input, shape index: {}]   ;;  %s6351_s5 = inlined_call_operand.vmem [shape: bf16[128,512], index: 5, kind: input, shape index: {}]   ;;  %s6352_s6 = inlined_call_operand.vmem [shape: bf16[128,512], index: 6, kind: input, shape index: {}]   ;;  %s6353_s7 = inlined_call_operand.vmem [shape: f32[1,512], index: 7, kind: input, shape index: {}]   ;;  %s6354_s8 = inlined_call_operand.vmem [shape: f32[8,8,128], index: 8, kind: output, shape index: {0}]   ;;  %s6355_s9 = inlined_call_operand.vmem [shape: f32[16,128], index: 9, kind: output, shape index: {1}]   ;;  %s6356_s10 = inlined_call_operand.vmem [shape: f32[16,128], index: 10, kind: output, shape index: {2}]  }
   0x1   :  { %s22_s15 = sshll.u32 %s6346_s0, 4  ;;  %s23_s15 = int_to_ptr.vmem [resolvable:$true] %s22_s15 }
   0x2   :  { %25 = dma.vmem_to_smem %s23_s15, 16, %s4495_s16, [#allocation7]  }
   0x3   :  { %4487 = dma.done.wait [#allocation7], 16  }
   0x4   :  { %4488 = vsyncadd [#allocation7], 4294967280 }
   0x5   :  { %42 = sfence }
   0x6   :  { %s44_s17 = sld [smem:[#allocation6]] }
   0xc   :  { %s45_s20 = scalar_lea.vmem %s6347_s1, %s44_s17 }
   0xd   :  { %v60_v0 = vld [vmem:[%s45_s20] sm:$0x1] }
   0xe   :  { %61 = vst [vmem:[#allocation2] sm:$0x1] %v60_v0 }
   0xf   :  { %79 = vsyncadd [#allocation5], 16  ;;  %s3594_s21 = sld [smem:[#allocation6 + $0x1]] }
  0x15   :  { %s81_s24 = scalar_lea.vmem %s6347_s1, %s3594_s21 }
  0x16   :  { %v98_v1 = vld [vmem:[%s81_s24] sm:$0x1] }
  0x17   :  { %99 = vst [vmem:[#allocation2 + $0x1] sm:$0x1] %v98_v1 }
  0x18   :  { %117 = vsyncadd [#allocation5 + $0x1], 16  ;;  %s3595_s0 = sld [smem:[#allocation6 + $0x2]] }
  0x1e   :  { %s119_s27 = scalar_lea.vmem %s6347_s1, %s3595_s0 }
  0x1f   :  { %v136_v2 = vld [vmem:[%s119_s27] sm:$0x1] }
  0x20   :  { %137 = vst [vmem:[#allocation2 + $0x2] sm:$0x1] %v136_v2 }
  0x21   :  { %155 = vsyncadd [#allocation5 + $0x2], 16  ;;  %s3596_s28 = sld [smem:[#allocation6 + $0x3]] }
  0x27   :  { %s157_s11 = scalar_lea.vmem %s6347_s1, %s3596_s28 }
  0x28   :  { %v174_v3 = vld [vmem:[%s157_s11] sm:$0x1] }
  0x29   :  { %175 = vst [vmem:[#allocation2 + $0x3] sm:$0x1] %v174_v3 }
  0x2a   :  { %193 = vsyncadd [#allocation5 + $0x3], 16  ;;  %s3597_s12 = sld [smem:[#allocation6 + $0x4]] }
  0x30   :  { %s195_s15 = scalar_lea.vmem %s6347_s1, %s3597_s12 }
  0x31   :  { %v212_v4 = vld [vmem:[%s195_s15] sm:$0x1] }
  0x32   :  { %213 = vst [vmem:[#allocation2 + $0x4] sm:$0x1] %v212_v4 }
  0x33   :  { %231 = vsyncadd [#allocation5 + $0x4], 16  ;;  %s3598_s16 = sld [smem:[#allocation6 + $0x5]] }
  0x39   :  { %s233_s19 = scalar_lea.vmem %s6347_s1, %s3598_s16 }
  0x3a   :  { %v250_v5 = vld [vmem:[%s233_s19] sm:$0x1] }
  0x3b   :  { %251 = vst [vmem:[#allocation2 + $0x5] sm:$0x1] %v250_v5 }
  0x3c   :  { %269 = vsyncadd [#allocation5 + $0x5], 16  ;;  %s3599_s20 = sld [smem:[#allocation6 + $0x6]] }
  0x42   :  { %s271_s23 = scalar_lea.vmem %s6347_s1, %s3599_s20 }
  0x43   :  { %v288_v6 = vld [vmem:[%s271_s23] sm:$0x1] }
  0x44   :  { %289 = vst [vmem:[#allocation2 + $0x6] sm:$0x1] %v288_v6 }
  0x45   :  { %307 = vsyncadd [#allocation5 + $0x6], 16  ;;  %s3600_s24 = sld [smem:[#allocation6 + $0x7]] }
  0x4b   :  { %s309_s26 = scalar_lea.vmem %s6347_s1, %s3600_s24 }
  0x4c   :  { %v326_v7 = vld [vmem:[%s309_s26] sm:$0x1] }
  0x4d   :  { %327 = vst [vmem:[#allocation2 + $0x7] sm:$0x1] %v326_v7 }
  0x4e   :  { %345 = vsyncadd [#allocation5 + $0x7], 16  ;;  %s4579_s27 = smov 0  }
  0x4f LB: > { %p352_p0 = scmp.lt.s32.totalorder %s4493_s27, 0  ;;  %s353_s28 = ssub.s32 0, %s4493_s27  ;;  %s4493_s27 = sphi %s4579_s27, %s351_s27  }
  0x50   : > { %s3601_s29 = smin.u32 %s4493_s27, %s353_s28 }
  0x51   : > { %s355_s30 = sand.u32 7, %s3601_s29  }
  0x52   : > { %s356_s11 = ssub.s32 0, %s355_s30 }
  0x53   : > { %s6471_s11 = smov (!%p352_p0, %s356_s11), %s355_s30 }
  0x54   : > { %p3603_p1 = scmp.lt.s32.totalorder %s6471_s11, 0  ;;  %s362_s12 = sadd.s32 8, %s6471_s11 }
  0x56   : > { %s6473_s12 = smov (!%p3603_p1, %s362_s12), %s6471_s11 }
  0x57   : > { %s365_s13 = scalar_lea.sflag [#allocation5], %s6473_s12 }
  0x58   : > { %4489 = dma.done.wait %s365_s13, 16 }
  0x59   : > { %4490 = vsyncadd %s365_s13, 4294967280  ;;  %s368_s14 = sadd.s32 8, %s4493_s27 }
  0x5a   : > { %p3604_p2 = scmp.ge.s32.totalorder %s368_s14, 64 }
  0x5b   : > { %s373_s15 = sld [smem:[#allocation6 + %s368_s14]] (!%p3604_p2)  ;;  %s3544_s19 = scalar_lea.vmem (!%p3604_p2), [#allocation2], %s4493_s27 }
  0x5c   : > { %372 = sbr.rel (%p3604_p2) target bundleno = 101 (0x65), region = 284 }
  0x61   : > { %s374_s18 = scalar_lea.vmem %s6347_s1, %s373_s15 }
  0x62   : > { %v390_v8 = vld [vmem:[%s374_s18] sm:$0x1] }
  0x63   : > { %3605 = vst [vmem:[%s3544_s19 + $0x8] sm:$0x1] %v390_v8 }
  0x64   : > { %409 = vsyncadd %s365_s13, 16 }
  0x65 PF: > { %s351_s27 = sadd.s32 1, %s4493_s27  }
  0x66   : > { %p348_p3 = scmp.ge.s32.totalorder %s351_s27, 64  }
  0x67   :  { %v3624_v9 = vld [vmem:[%s6348_s2 + $0x20] sm:$0xf] (%p348_p3)  ;;  %v4107_v10 = vld [vmem:[%s6348_s2 + $0x2c] sm:$0xf0] (%p348_p3)  ;;  %v4105_v11 = vld [vmem:[%s6348_s2 + $0x24] sm:$0xf] (%p348_p3) }
  0x68   :  { %350 = sbr.rel (!%p348_p3) target bundleno = 79 (0x4f), region = 446  ;;  %v3625_v12 = vor.u32 (%p348_p3), %v4107_v10, %v3624_v9  ;;  %v3626_v13 = vld [vmem:[%s6348_s2 + $0x30] sm:$0xf0] (%p348_p3)  ;;  %v3632_v14 = vld [vmem:[%s6348_s2 + $0x28] sm:$0xf] (%p348_p3)  ;;  %vm512_vm0 = vcmask (%p348_p3), 261120  }
  0x69   :  { %v4108_v15 = vld [vmem:[%s6348_s2 + $0x34] sm:$0xf0] (%p348_p3)  ;;  %v3629_v16 = vor.u32 (%p348_p3), %v4105_v11, %v3626_v13  ;;  %v4106_v18 = vld [vmem:[%s6348_s2 + $0x2c] sm:$0xf] (%p348_p3)  ;;  %v3634_v19 = vld [vmem:[%s6348_s2 + $0x38] sm:$0xf0] (%p348_p3) }
  0x6a   :  { %v3633_v17 = vor.u32 (%p348_p3), %v4108_v15, %v3632_v14  ;;  %v3608_v20 = vld [vmem:[%s6348_s2] sm:$0xf] (%p348_p3)  ;;  %531 = vmatpush.bf16.msra.mxu0 (%p348_p3), %v3625_v12  ;;  %v3637_v21 = vor.u32 (%p348_p3), %v4106_v18, %v3634_v19  ;;  %v4103_v22 = vld [vmem:[%s6348_s2 + $0xc] sm:$0xf0] (%p348_p3)  ;;  %v4101_v23 = vld [vmem:[%s6348_s2 + $0x4] sm:$0xf] (%p348_p3) }
  0x6b   :  { %v3610_v24 = vld [vmem:[%s6348_s2 + $0x10] sm:$0xf0] (%p348_p3)  ;;  %560 = vmatpush.bf16.msra.mxu1 (%p348_p3), %v3629_v16  ;;  %v3609_v25 = vor.u32 (%p348_p3), %v4103_v22, %v3608_v20  ;;  %v3616_v27 = vld [vmem:[%s6348_s2 + $0x8] sm:$0xf] (%p348_p3)  ;;  %v4104_v28 = vld [vmem:[%s6348_s2 + $0x14] sm:$0xf0] (%p348_p3) }
  0x6c   :  { %589 = vmatpush.bf16.msra.mxu2 (%p348_p3), %v3633_v17  ;;  %v3613_v26 = vor.u32 (%p348_p3), %v4101_v23, %v3610_v24  ;;  %v4102_v29 = vld [vmem:[%s6348_s2 + $0xc] sm:$0xf] (%p348_p3)  ;;  %618 = vmatpush.bf16.msra.mxu3 (%p348_p3), %v3637_v21  ;;  %v3617_v30 = vor.u32 (%p348_p3), %v4104_v28, %v3616_v27  ;;  %v3618_v31 = vld [vmem:[%s6348_s2 + $0x18] sm:$0xf0] (%p348_p3)  ;;  %v451_v32 = vld [vmem:[#allocation2] sm:$0xff] (%p348_p3) }
  0x6d   :  { %v452_v33 = vld [vmem:[#allocation2 + $0x8] sm:$0xff]  ;;  %v3621_v34 = vor.u32 %v4102_v29, %v3618_v31  ;;  %v3768_v36 = vld [vmem:[%s6349_s3 + $0xe0] sm:$0xf]  ;;  %v4139_v37 = vld [vmem:[%s6349_s3 + $0xec] sm:$0xf0] }
  0x6e   :  { %v459_v35 = vpack.c.bf16 %v452_v33, %v451_v32  ;;  %v4137_v38 = vld [vmem:[%s6349_s3 + $0xe4] sm:$0xf]  ;;  %532 = vmatpush.bf16.msra.mxu0 %v3609_v25  ;;  %v4644_v39 = vor.u32 %v4139_v37, %v3768_v36  ;;  %v3770_v40 = vld [vmem:[%s6349_s3 + $0xf0] sm:$0xf0]  ;;  %v4138_v41 = vld [vmem:[%s6349_s3 + $0xec] sm:$0xf] }
  0x6f   :  { %v3778_v42 = vld [vmem:[%s6349_s3 + $0xf8] sm:$0xf0]  ;;  %561 = vmatpush.bf16.msra.mxu1 %v3613_v26  ;;  %v4655_v43 = vor.u32 %v4137_v38, %v3770_v40  ;;  %v3752_v44 = vld [vmem:[%s6349_s3 + $0xc0] sm:$0xf]  ;;  %v4135_v45 = vld [vmem:[%s6349_s3 + $0xcc] sm:$0xf0] }
  0x70   :  { %590 = vmatpush.bf16.msra.mxu2 %v3617_v30  ;;  %v4133_v46 = vld [vmem:[%s6349_s3 + $0xc4] sm:$0xf]  ;;  %619 = vmatpush.bf16.msra.mxu3 %v3621_v34  ;;  %v4667_v47 = vor.u32 %v4138_v41, %v3778_v42  ;;  %v4669_v48 = vor.u32 %v4135_v45, %v3752_v44  ;;  %v3754_v49 = vld [vmem:[%s6349_s3 + $0xd0] sm:$0xf0]  ;;  %v4134_v50 = vld [vmem:[%s6349_s3 + $0xcc] sm:$0xf] }
  0x71   :  { %3638 = vmatmul.msk.bf16.vlgmr.msra.gmra.mxu0 %vm512_vm0, %v459_v35  ;;  %v4679_v51 = vor.u32 %v4133_v46, %v3754_v49  ;;  %v3762_v52 = vld [vmem:[%s6349_s3 + $0xd8] sm:$0xf0]  ;;  %v3776_v53 = vld [vmem:[%s6349_s3 + $0xe8] sm:$0xf]  ;;  %v4140_v54 = vld [vmem:[%s6349_s3 + $0xf4] sm:$0xf0] }
  0x72   :  { %840 = vmatpush.bf16.msrb.mxu0 %v4644_v39  ;;  %3642 = vmatmul.msk.bf16.vlgmr.msra.gmra.mxu1 %vm512_vm0, %v459_v35  ;;  %v4692_v55 = vor.u32 %v4140_v54, %v3776_v53  ;;  %v3736_v56 = vld [vmem:[%s6349_s3 + $0xa0] sm:$0xf]  ;;  %v4131_v57 = vld [vmem:[%s6349_s3 + $0xac] sm:$0xf0]  ;;  %v4129_v58 = vld [vmem:[%s6349_s3 + $0xa4] sm:$0xf]  ;;  %v4709_v60 = vor.u32 %v4134_v50, %v3762_v52 }
  0x73   :  { %853 = vmatpush.bf16.msrb.mxu1 %v4655_v43  ;;  %3646 = vmatmul.msk.bf16.vlgmr.msra.gmra.mxu2 %vm512_vm0, %v459_v35  ;;  %v3738_v59 = vld [vmem:[%s6349_s3 + $0xb0] sm:$0xf0]  ;;  %v4711_v61 = vor.u32 %v4131_v57, %v3736_v56  ;;  %v4130_v62 = vld [vmem:[%s6349_s3 + $0xac] sm:$0xf]  ;;  %v3760_v63 = vld [vmem:[%s6349_s3 + $0xc8] sm:$0xf] }
  0x74   :  { %3650 = vmatmul.msk.bf16.vlgmr.msra.gmra.mxu3 %vm512_vm0, %v459_v35  ;;  %v4136_v0 = vld [vmem:[%s6349_s3 + $0xd4] sm:$0xf0]  ;;  %866 = vmatpush.bf16.msrb.mxu2 %v4692_v55  ;;  %v4724_v1 = vor.u32 %v4129_v58, %v3738_v59  ;;  %v3746_v2 = vld [vmem:[%s6349_s3 + $0xb8] sm:$0xf0]  ;;  %v3720_v4 = vld [vmem:[%s6349_s3 + $0x80] sm:$0xf] }
  0x75   :  { %879 = vmatpush.bf16.msrb.mxu3 %v4667_v47  ;;  %v4729_v3 = vor.u32 %v4136_v0, %v3760_v63  ;;  %v4127_v5 = vld [vmem:[%s6349_s3 + $0x8c] sm:$0xf0]  ;;  %v4125_v6 = vld [vmem:[%s6349_s3 + $0x84] sm:$0xf]  ;;  %v3722_v7 = vld [vmem:[%s6349_s3 + $0x90] sm:$0xf0]  ;;  %v4751_v11 = vor.u32 %v4130_v62, %v3746_v2 }
  0x76   :  { %841 = vmatpush.bf16.msrb.mxu0 %v4669_v48  ;;  %v3744_v8 = vld [vmem:[%s6349_s3 + $0xa8] sm:$0xf]  ;;  %v4132_v9 = vld [vmem:[%s6349_s3 + $0xb4] sm:$0xf0]  ;;  %v453_v10 = vld [vmem:[#allocation2 + $0x10] sm:$0xff]  ;;  %v4753_v12 = vor.u32 %v4127_v5, %v3720_v4  ;;  %v4760_v14 = vor.u32 %v4125_v6, %v3722_v7 }
  0x77   :  { %854 = vmatpush.bf16.msrb.mxu1 %v4679_v51  ;;  %v4126_v13 = vld [vmem:[%s6349_s3 + $0x8c] sm:$0xf]  ;;  %v3730_v15 = vld [vmem:[%s6349_s3 + $0x98] sm:$0xf0]  ;;  %v4765_v16 = vor.u32 %v4132_v9, %v3744_v8  ;;  %v3704_v17 = vld [vmem:[%s6349_s3 + $0x60] sm:$0xf] }
  0x78   :  { %867 = vmatpush.bf16.msrb.mxu2 %v4729_v3  ;;  %v4123_v18 = vld [vmem:[%s6349_s3 + $0x6c] sm:$0xf0]  ;;  %v454_v19 = vld [vmem:[#allocation2 + $0x18] sm:$0xff]  ;;  %v4121_v20 = vld [vmem:[%s6349_s3 + $0x64] sm:$0xf]  ;;  %v4781_v22 = vor.u32 %v4126_v13, %v3730_v15 }
  0x79   :  { %880 = vmatpush.bf16.msrb.mxu3 %v4709_v60  ;;  %v3706_v21 = vld [vmem:[%s6349_s3 + $0x70] sm:$0xf0]  ;;  %v4783_v23 = vor.u32 %v4123_v18, %v3704_v17  ;;  %v4122_v24 = vld [vmem:[%s6349_s3 + $0x6c] sm:$0xf]  ;;  %v3728_v25 = vld [vmem:[%s6349_s3 + $0x88] sm:$0xf]  ;;  %v460_v27 = vpack.c.bf16 %v454_v19, %v453_v10 }
  0x7a   :  { %842 = vmatpush.bf16.msrb.mxu0 %v4711_v61  ;;  %v4128_v26 = vld [vmem:[%s6349_s3 + $0x94] sm:$0xf0]  ;;  %v4796_v28 = vor.u32 %v4121_v20, %v3706_v21  ;;  %v3714_v29 = vld [vmem:[%s6349_s3 + $0x78] sm:$0xf0]  ;;  %v3688_v30 = vld [vmem:[%s6349_s3 + $0x40] sm:$0xf] }
  0x7b   :  { %855 = vmatpush.bf16.msrb.mxu1 %v4724_v1  ;;  %v4119_v31 = vld [vmem:[%s6349_s3 + $0x4c] sm:$0xf0]  ;;  %v4117_v32 = vld [vmem:[%s6349_s3 + $0x44] sm:$0xf]  ;;  %v3690_v33 = vld [vmem:[%s6349_s3 + $0x50] sm:$0xf0]  ;;  %v4813_v34 = vor.u32 %v4128_v26, %v3728_v25  ;;  %v4817_v35 = vor.u32 %v4122_v24, %v3714_v29 }
  0x7c   :  { %868 = vmatpush.bf16.msrb.mxu2 %v4765_v16  ;;  %v4819_v36 = vor.u32 %v4119_v31, %v3688_v30  ;;  %v3712_v37 = vld [vmem:[%s6349_s3 + $0x68] sm:$0xf]  ;;  %v4124_v38 = vld [vmem:[%s6349_s3 + $0x74] sm:$0xf0]  ;;  %v4829_v40 = vor.u32 %v4117_v32, %v3690_v33  ;;  %v4118_v41 = vld [vmem:[%s6349_s3 + $0x4c] sm:$0xf] }
  0x7d   :  { %881 = vmatpush.bf16.msrb.mxu3 %v4751_v11  ;;  %v3698_v42 = vld [vmem:[%s6349_s3 + $0x58] sm:$0xf0]  ;;  %v4841_v44 = vor.u32 %v4124_v38, %v3712_v37  ;;  %v3672_v45 = vld [vmem:[%s6349_s3 + $0x20] sm:$0xf]  ;;  %v4115_v46 = vld [vmem:[%s6349_s3 + $0x2c] sm:$0xf0] }
  0x7e   :  { %843 = vmatpush.bf16.msrb.mxu0 %v4753_v12  ;;  %v4113_v49 = vld [vmem:[%s6349_s3 + $0x24] sm:$0xf]  ;;  %v4854_v50 = vor.u32 %v4118_v41, %v3698_v42  ;;  %v4856_v52 = vor.u32 %v4115_v46, %v3672_v45  ;;  %v3674_v53 = vld [vmem:[%s6349_s3 + $0x30] sm:$0xf0]  ;;  %v3696_v54 = vld [vmem:[%s6349_s3 + $0x48] sm:$0xf] }
  0x7f   :  { %856 = vmatpush.bf16.msrb.mxu1 %v4760_v14  ;;  %v4120_v56 = vld [vmem:[%s6349_s3 + $0x54] sm:$0xf0]  ;;  %v4868_v57 = vor.u32 %v4113_v49, %v3674_v53  ;;  %v4114_v58 = vld [vmem:[%s6349_s3 + $0x2c] sm:$0xf]  ;;  %v3682_v59 = vld [vmem:[%s6349_s3 + $0x38] sm:$0xf0] }
  0x80   :  { %869 = vmatpush.bf16.msrb.mxu2 %v4813_v34  ;;  %v3656_v62 = vld [vmem:[%s6349_s3] sm:$0xf]  ;;  %v4111_v63 = vld [vmem:[%s6349_s3 + $0xc] sm:$0xf0]  ;;  %v4109_v0 = vld [vmem:[%s6349_s3 + $0x4] sm:$0xf]  ;;  %v4889_v4 = vor.u32 %v4120_v56, %v3696_v54  ;;  %v4893_v5 = vor.u32 %v4114_v58, %v3682_v59 }
  0x81   :  { %882 = vmatpush.bf16.msrb.mxu3 %v4781_v22  ;;  %3639 = vmatmul.msk.bf16.gmra.mxu0 %vm512_vm0, %v460_v27  ;;  %v3658_v2 = vld [vmem:[%s6349_s3 + $0x10] sm:$0xf0]  ;;  %v4895_v6 = vor.u32 %v4111_v63, %v3656_v62  ;;  %v3680_v7 = vld [vmem:[%s6349_s3 + $0x28] sm:$0xf]  ;;  %v4116_v8 = vld [vmem:[%s6349_s3 + $0x34] sm:$0xf0] }
  0x82   :  { %844 = vmatpush.bf16.msrb.mxu0 %v4783_v23  ;;  %3643 = vmatmul.msk.bf16.gmra.mxu1 %vm512_vm0, %v460_v27  ;;  %v4904_v9 = vor.u32 %v4109_v0, %v3658_v2  ;;  %v4110_v10 = vld [vmem:[%s6349_s3 + $0xc] sm:$0xf]  ;;  %v3666_v13 = vld [vmem:[%s6349_s3 + $0x18] sm:$0xf0]  ;;  %v455_v15 = vld [vmem:[#allocation2 + $0x20] sm:$0xff]  ;;  %v4913_v18 = vor.u32 %v4116_v8, %v3680_v7  ;;  %v6357_v30 = vmov 0  }
  0x83   :  { %857 = vmatpush.bf16.msrb.mxu1 %v4796_v28  ;;  %3647 = vmatmul.msk.bf16.gmra.mxu2 %vm512_vm0, %v460_v27  ;;  %v456_v17 = vld [vmem:[#allocation2 + $0x28] sm:$0xff]  ;;  %v4112_v20 = vld [vmem:[%s6349_s3 + $0x14] sm:$0xf0]  ;;  %v4923_v21 = vor.u32 %v4110_v10, %v3666_v13  ;;  %v457_v26 = vld [vmem:[#allocation2 + $0x30] sm:$0xff] }
  0x84   :  { %3651 = vmatmul.msk.bf16.gmra.mxu3 %vm512_vm0, %v460_v27  ;;  %870 = vmatpush.bf16.msrb.mxu2 %v4841_v44  ;;  %v3664_v19 = vld [vmem:[%s6349_s3 + $0x8] sm:$0xf]  ;;  %v461_v24 = vpack.c.bf16 %v456_v17, %v455_v15  ;;  %v458_v27 = vld [vmem:[#allocation2 + $0x38] sm:$0xff]  ;;  %v450_v42 = vld [vmem:[%s6350_s4] sm:$0xf] }
  0x85   :  { %883 = vmatpush.bf16.msrb.mxu3 %v4817_v35  ;;  %v4929_v25 = vor.u32 %v4112_v20, %v3664_v19  ;;  %v462_v29 = vpack.c.bf16 %v458_v27, %v457_v26  ;;  %v5016_v45 = vperm.slane %v450_v42, 0  ;;  %v5020_v49 = vperm.slane %v450_v42, 1 }
  0x86   :  { %845 = vmatpush.bf16.msrb.mxu0 %v4819_v36  ;;  %v5030_v62 = vperm.slane %v450_v42, 2  ;;  %v5032_v63 = vperm.slane %v450_v42, 3 }
  0x87   :  { %858 = vmatpush.bf16.msrb.mxu1 %v4829_v40 }
  0x88   :  { %871 = vmatpush.bf16.msrb.mxu2 %v4889_v4 }
  0x89   :  { %884 = vmatpush.bf16.msrb.mxu3 %v4854_v50 }
  0x8a   :  { %846 = vmatpush.bf16.msrb.mxu0 %v4856_v52 }
  0x8b   :  { %859 = vmatpush.bf16.msrb.mxu1 %v4868_v57 }
  0x8c   :  { %872 = vmatpush.bf16.msrb.mxu2 %v4913_v18 }
  0x8d   :  { %885 = vmatpush.bf16.msrb.mxu3 %v4893_v5 }
  0x8e   :  { %847 = vmatpush.bf16.msrb.mxu0 %v4895_v6 }
  0x8f   :  { %860 = vmatpush.bf16.msrb.mxu1 %v4904_v9 }
  0x90   :  { %873 = vmatpush.bf16.msrb.mxu2 %v4929_v25 }
  0x91   :  { %886 = vmatpush.bf16.msrb.mxu3 %v4923_v21  ;;  %3640 = vmatmul.msk.bf16.gmra.mxu0 %vm512_vm0, %v461_v24 }
  0x92   :  { %968 = vmatpush.bf16.msra.mxu0 %v4644_v39  ;;  %3644 = vmatmul.msk.bf16.gmra.mxu1 %vm512_vm0, %v461_v24 }
  0x93   :  { %981 = vmatpush.bf16.msra.mxu1 %v4655_v43  ;;  %3648 = vmatmul.msk.bf16.gmra.mxu2 %vm512_vm0, %v461_v24 }
  0x94   :  { %3652 = vmatmul.msk.bf16.gmra.mxu3 %vm512_vm0, %v461_v24  ;;  %994 = vmatpush.bf16.msra.mxu2 %v4692_v55 }
  0x95   :  { %1007 = vmatpush.bf16.msra.mxu3 %v4667_v47 }
  0x96   :  { %969 = vmatpush.bf16.msra.mxu0 %v4669_v48 }
  0x97   :  { %982 = vmatpush.bf16.msra.mxu1 %v4679_v51 }
  0x98   :  { %995 = vmatpush.bf16.msra.mxu2 %v4729_v3 }
  0x99   :  { %1008 = vmatpush.bf16.msra.mxu3 %v4709_v60 }
  0x9a   :  { %970 = vmatpush.bf16.msra.mxu0 %v4711_v61 }
  0x9b   :  { %983 = vmatpush.bf16.msra.mxu1 %v4724_v1 }
  0x9c   :  { %996 = vmatpush.bf16.msra.mxu2 %v4765_v16 }
  0x9d   :  { %1009 = vmatpush.bf16.msra.mxu3 %v4751_v11 }
  0x9e   :  { %971 = vmatpush.bf16.msra.mxu0 %v4753_v12 }
  0x9f   :  { %984 = vmatpush.bf16.msra.mxu1 %v4760_v14 }
  0xa0   :  { %997 = vmatpush.bf16.msra.mxu2 %v4813_v34 }
  0xa1   :  { %1010 = vmatpush.bf16.msra.mxu3 %v4781_v22  ;;  %3641 = vmatmul.msk.bf16.gmra.mxu0 %vm512_vm0, %v462_v29 }
  0xa2   :  { %972 = vmatpush.bf16.msra.mxu0 %v4783_v23  ;;  %3645 = vmatmul.msk.bf16.gmra.mxu1 %vm512_vm0, %v462_v29 }
  0xa3   :  { %985 = vmatpush.bf16.msra.mxu1 %v4796_v28  ;;  %3649 = vmatmul.msk.bf16.gmra.mxu2 %vm512_vm0, %v462_v29 }
  0xa4   :  { %3653 = vmatmul.msk.bf16.gmra.mxu3 %vm512_vm0, %v462_v29  ;;  %998 = vmatpush.bf16.msra.mxu2 %v4841_v44 }
  0xa5   :  { %1011 = vmatpush.bf16.msra.mxu3 %v4817_v35 }
  0xa6   :  { %973 = vmatpush.bf16.msra.mxu0 %v4819_v36 }
  0xa7   :  { %986 = vmatpush.bf16.msra.mxu1 %v4829_v40 }
  0xa8   :  { %999 = vmatpush.bf16.msra.mxu2 %v4889_v4 }
  0xa9   :  { %1012 = vmatpush.bf16.msra.mxu3 %v4854_v50 }
  0xaa   :  { %974 = vmatpush.bf16.msra.mxu0 %v4856_v52 }
  0xab   :  { %987 = vmatpush.bf16.msra.mxu1 %v4868_v57 }
  0xac   :  { %1000 = vmatpush.bf16.msra.mxu2 %v4913_v18 }
  0xad   :  { %1013 = vmatpush.bf16.msra.mxu3 %v4893_v5 }
  0xae   :  { %975 = vmatpush.bf16.msra.mxu0 %v4895_v6 }
  0xaf   :  { %988 = vmatpush.bf16.msra.mxu1 %v4904_v9 }
  0xb0   :  { %1001 = vmatpush.bf16.msra.mxu2 %v4929_v25 }
  0xb1   :  { %1014 = vmatpush.bf16.msra.mxu3 %v4923_v21  ;;  %848 = vmatmul.bf16.vlgmr.msrb.gmra.mxu0 %v6357_v30 }
  0xb2   :  { %861 = vmatmul.bf16.vlgmr.msrb.gmra.mxu1 %v6357_v30  ;;  %1097 = vmatpush.bf16.msrb.mxu0 %v4644_v39 }
  0xb3   :  { %874 = vmatmul.bf16.vlgmr.msrb.gmra.mxu2 %v6357_v30  ;;  %1110 = vmatpush.bf16.msrb.mxu1 %v4655_v43 }
  0xb4   :  { %887 = vmatmul.bf16.vlgmr.msrb.gmra.mxu3 %v6357_v30  ;;  %1123 = vmatpush.bf16.msrb.mxu2 %v4692_v55 }
  0xb5   :  { %1136 = vmatpush.bf16.msrb.mxu3 %v4667_v47 }
  0xb6   :  { %1098 = vmatpush.bf16.msrb.mxu0 %v4669_v48 }
  0xb7   :  { %1111 = vmatpush.bf16.msrb.mxu1 %v4679_v51 }
  0xb8   :  { %1124 = vmatpush.bf16.msrb.mxu2 %v4729_v3 }
  0xb9   :  { %1137 = vmatpush.bf16.msrb.mxu3 %v4709_v60 }
  0xba   :  { %1099 = vmatpush.bf16.msrb.mxu0 %v4711_v61 }
  0xbb   :  { %1112 = vmatpush.bf16.msrb.mxu1 %v4724_v1 }
  0xbc   :  { %1125 = vmatpush.bf16.msrb.mxu2 %v4765_v16 }
  0xbd   :  { %1138 = vmatpush.bf16.msrb.mxu3 %v4751_v11 }
  0xbe   :  { %1100 = vmatpush.bf16.msrb.mxu0 %v4753_v12 }
  0xbf   :  { %1113 = vmatpush.bf16.msrb.mxu1 %v4760_v14 }
  0xc0   :  { %1126 = vmatpush.bf16.msrb.mxu2 %v4813_v34 }
  0xc1   :  { %1139 = vmatpush.bf16.msrb.mxu3 %v4781_v22 }
  0xc2   :  { %1101 = vmatpush.bf16.msrb.mxu0 %v4783_v23 }
  0xc3   :  { %1114 = vmatpush.bf16.msrb.mxu1 %v4796_v28 }
  0xc4   :  { %1127 = vmatpush.bf16.msrb.mxu2 %v4841_v44 }
  0xc5   :  { %1140 = vmatpush.bf16.msrb.mxu3 %v4817_v35 }
  0xc6   :  { %1102 = vmatpush.bf16.msrb.mxu0 %v4819_v36 }
  0xc7   :  { %1115 = vmatpush.bf16.msrb.mxu1 %v4829_v40 }
  0xc8   :  { %1128 = vmatpush.bf16.msrb.mxu2 %v4889_v4 }
  0xc9   :  { %1141 = vmatpush.bf16.msrb.mxu3 %v4854_v50 }
  0xca   :  { %1103 = vmatpush.bf16.msrb.mxu0 %v4856_v52 }
  0xcb   :  { %1116 = vmatpush.bf16.msrb.mxu1 %v4868_v57 }
  0xcc   :  { %1129 = vmatpush.bf16.msrb.mxu2 %v4913_v18 }
  0xcd   :  { %1142 = vmatpush.bf16.msrb.mxu3 %v4893_v5 }
  0xce   :  { %1104 = vmatpush.bf16.msrb.mxu0 %v4895_v6 }
  0xcf   :  { %1117 = vmatpush.bf16.msrb.mxu1 %v4904_v9 }
  0xd0   :  { %1130 = vmatpush.bf16.msrb.mxu2 %v4929_v25 }
  0xd1   :  { %1143 = vmatpush.bf16.msrb.mxu3 %v4923_v21 }
  0xee   :  { %v534_v31 = vpop.f32.mrf.mxu0 }
  0xef   :  { %v563_v32 = vpop.f32.mrf.mxu1 }
  0xf6   :  { %v5007_v33 = vpop.f32.mrf.mxu2  ;;  %v5009_v38 = vpop.f32.mrf.mxu0 }
  0xf7   :  { %v621_v37 = vpop.f32.mrf.mxu3  ;;  %v5011_v41 = vpop.f32.mrf.mxu1 }
  0xfe   :  { %v5018_v46 = vpop.f32.mrf.mxu2  ;;  %v539_v54 = vpop.f32.mrf.mxu0 }
  0xff   :  { %6361 = vst [vmem:[#allocation19_spill] sm:$0xff] %v5018_v46  ;;  %v5022_v53 = vpop.f32.mrf.mxu3  ;;  %v5025_v56 = vadd.f32 %v539_v54, %v5016_v45  ;;  %v568_v58 = vpop.f32.mrf.mxu1 }
 0x100   :  { %v5028_v59 = vadd.f32 %v568_v58, %v5020_v49 }
 0x101   :  { %6362 = vst [vmem:[#allocation20_spill] sm:$0xff] %v5025_v56 }
 0x102   :  { %6363 = vst [vmem:[#allocation21_spill] sm:$0xff] %v5028_v59 }
 0x106   :  { %v597_v0 = vpop.f32.mrf.mxu2  ;;  %v5037_v8 = vpop.f32.mrf.mxu0 }
 0x107   :  { %v5035_v2 = vadd.f32 %v597_v0, %v5030_v62  ;;  %v626_v7 = vpop.f32.mrf.mxu3  ;;  %6365 = vst [vmem:[#allocation23_spill] sm:$0xff] %v5037_v8  ;;  %v5042_v13 = vpop.f32.mrf.mxu1 }
 0x108   :  { %v5040_v10 = vadd.f32 %v626_v7, %v5032_v63  ;;  %6367 = vst [vmem:[#allocation25_spill] sm:$0xff] %v5042_v13 }
 0x109   :  { %6364 = vst [vmem:[#allocation22_spill] sm:$0xff] %v5035_v2 }
 0x10a   :  { %6366 = vst [vmem:[#allocation24_spill] sm:$0xff] %v5040_v10 }
 0x10e   :  { %v5044_v15 = vpop.f32.mrf.mxu2  ;;  %v544_v19 = vpop.f32.mrf.mxu0 }
 0x10f   :  { %6368 = vst [vmem:[#allocation26_spill] sm:$0xff] %v5044_v15  ;;  %v5046_v17 = vpop.f32.mrf.mxu3  ;;  %v5049_v20 = vadd.f32 %v544_v19, %v5016_v45  ;;  %v573_v24 = vpop.f32.mrf.mxu1 }
 0x110   :  { %6369 = vst [vmem:[#allocation27_spill] sm:$0xff] %v5046_v17  ;;  %v5052_v26 = vadd.f32 %v573_v24, %v5020_v49 }
 0x111   :  { %6370 = vst [vmem:[#allocation28_spill] sm:$0xff] %v5049_v20 }
 0x112   :  { %6371 = vst [vmem:[#allocation29_spill] sm:$0xff] %v5052_v26 }
 0x116   :  { %v602_v27 = vpop.f32.mrf.mxu2  ;;  %v5057_v54 = vpop.f32.mrf.mxu0 }
 0x117   :  { %v5055_v29 = vadd.f32 %v602_v27, %v5030_v62  ;;  %v631_v42 = vpop.f32.mrf.mxu3  ;;  %6373 = vst [vmem:[#allocation31_spill] sm:$0xff] %v5057_v54  ;;  %v5062_v0 = vpop.f32.mrf.mxu1 }
 0x118   :  { %v5060_v58 = vadd.f32 %v631_v42, %v5032_v63  ;;  %6375 = vst [vmem:[#allocation33_spill] sm:$0xff] %v5062_v0 }
 0x119   :  { %6372 = vst [vmem:[#allocation30_spill] sm:$0xff] %v5055_v29 }
 0x11a   :  { %6374 = vst [vmem:[#allocation32_spill] sm:$0xff] %v5060_v58 }
 0x11e   :  { %v5064_v7 = vpop.f32.mrf.mxu2  ;;  %v549_v30 = vpop.f32.mrf.mxu0 }
 0x11f   :  { %6376 = vst [vmem:[#allocation34_spill] sm:$0xff] %v5064_v7  ;;  %v5066_v19 = vpop.f32.mrf.mxu3  ;;  %v5069_v24 = vadd.f32 %v549_v30, %v5016_v45  ;;  %v578_v26 = vpop.f32.mrf.mxu1 }
 0x120   :  { %6377 = vst [vmem:[#allocation35_spill] sm:$0xff] %v5066_v19  ;;  %v5072_v27 = vadd.f32 %v578_v26, %v5020_v49  ;;  %v535_v19 = vadd.f32 %v534_v31, %v5016_v45 }
 0x121   :  { %6378 = vst [vmem:[#allocation36_spill] sm:$0xff] %v5069_v24  ;;  %v564_v24 = vadd.f32 %v563_v32, %v5020_v49 }
 0x122   :  { %6379 = vst [vmem:[#allocation37_spill] sm:$0xff] %v5072_v27 }
 0x126   :  { %v607_v29 = vpop.f32.mrf.mxu2  ;;  %v5077_v58 = vpop.f32.mrf.mxu0 }
 0x127   :  { %v5075_v54 = vadd.f32 %v607_v29, %v5030_v62  ;;  %v636_v42 = vpop.f32.mrf.mxu3  ;;  %6381 = vst [vmem:[#allocation39_spill] sm:$0xff] %v5077_v58  ;;  %v5082_v7 = vpop.f32.mrf.mxu1 }
 0x128   :  { %v5080_v0 = vadd.f32 %v636_v42, %v5032_v63  ;;  %6383 = vst [vmem:[#allocation41_spill] sm:$0xff] %v5082_v7  ;;  %v622_v42 = vadd.f32 %v621_v37, %v5032_v63 }
 0x129   :  { %6380 = vst [vmem:[#allocation38_spill] sm:$0xff] %v5075_v54 }
 0x12a   :  { %6382 = vst [vmem:[#allocation40_spill] sm:$0xff] %v5080_v0 }
 0x12e   :  { %v5085_v30 = vpop.f32.mrf.mxu2  ;;  %v849_v27 = vpop.f32.mrf.mxu0 }
 0x12f   :  { %6384 = vst [vmem:[#allocation42_spill] sm:$0xff] %v5085_v30  ;;  %v5088_v26 = vpop.f32.mrf.mxu3  ;;  %v892_v20 = vadd.f32 %v849_v27, %v535_v19  ;;  %v862_v29 = vpop.f32.mrf.mxu1 }
 0x130   :  { %6385 = vst [vmem:[#allocation43_spill] sm:$0xff] %v5088_v26  ;;  %v893_v54 = vadd.f32 %v862_v29, %v564_v24 }
 0x131   :  { %v3782_v15 = vmul.f32 -1.442695, %v892_v20 }
 0x132   :  { %v3783_v17 = vmul.f32 -1.442695, %v893_v54 }
 0x133   :  { %4215 = vpow2.f32 %v3782_v15  ;;  %v593_v15 = vadd.f32 %v5007_v33, %v5030_v62 }
 0x134   :  { %4217 = vpow2.f32 %v3783_v17 }
 0x136   :  { %v875_v58 = vpop.f32.mrf.mxu2  ;;  %v851_v0 = vpop.f32.mrf.mxu0 }
 0x137   :  { %v888_v7 = vpop.f32.mrf.mxu3  ;;  %v864_v13 = vpop.f32.mrf.mxu1  ;;  %v894_v54 = vadd.f32 %v875_v58, %v593_v15 }
 0x138   :  { %v895_v31 = vadd.f32 %v888_v7, %v622_v42 }
 0x139   :  { %v4216_v30 = vpop.eup %4215 }
 0x13a   :  { %v3784_v8 = vmul.f32 -1.442695, %v895_v31  ;;  %v4218_v32 = vpop.eup %4217  ;;  %v899_v2 = vadd.f32 1.0, %v4216_v30 }
 0x13b   :  { %v918_v26 = vadd.f32 1.0, %v4218_v32 }
 0x13c   :  { %4219 = vpow2.f32 %v3784_v8  ;;  %v911_v30 = vand.u32 2147483648, %v899_v2  ;;  %v909_v31 = vand.u32 2147483647, %v899_v2  ;;  %vm905_vm3 = vweird.f32 %v899_v2 }
 0x13d   :  { %4221 = vrcp.f32 %v899_v2  ;;  %v930_v8 = vand.u32 2147483648, %v918_v26  ;;  %vm924_vm4 = vweird.f32 %v918_v26 }
 0x13e   :  { %4223 = vrcp.f32 %v918_v26  ;;  %v877_v19 = vpop.f32.mrf.mxu2  ;;  %v912_v58 = vor.u32 1.1754944e-38, %v911_v30  ;;  %vm910_vm6 = vcmp.eq.f32.partialorder %v909_v31, 8.507059e+37 }
 0x13f   :  { %v890_v20 = vpop.f32.mrf.mxu3  ;;  %v928_v19 = vand.u32 2147483647, %v918_v26 }
 0x141   :  { %vm929_vm8 = vcmp.eq.f32.partialorder %v928_v19, 8.507059e+37 }
 0x142   :  { %v4220_v17 = vpop.eup %4219 }
 0x143   :  { %v4222_v37 = vpop.eup %4221  ;;  %v938_v24 = vadd.f32 1.0, %v4220_v17  ;;  %v931_v17 = vor.u32 1.1754944e-38, %v930_v8 }
 0x144   :  { %v4224_v0 = vpop.eup %4223  ;;  %v901_v7 = vmul.f32 %v4222_v37, %v899_v2  ;;  %vm906_vm1 = vweird.f32 %v4222_v37 }
 0x145   :  { %v920_v13 = vmul.f32 %v4224_v0, %v918_v26  ;;  %4225 = vrcp.f32 %v938_v24  ;;  %vm925_vm2 = vweird.f32 %v4224_v0  ;;  %vm907_vm5 = vmor %vm905_vm3, %vm906_vm1  ;;  %v950_v30 = vand.u32 2147483648, %v938_v24 }
 0x146   :  { %v902_v27 = vsub.f32 1.0, %v901_v7  ;;  %4227 = vtanh.f32 %v894_v54  ;;  %vm926_vm7 = vmor %vm924_vm4, %vm925_vm2  ;;  %vm944_vm10 = vweird.f32 %v938_v24 }
 0x147   :  { %v921_v29 = vsub.f32 1.0, %v920_v13  ;;  %v951_v31 = vor.u32 1.1754944e-38, %v950_v30 }
 0x148   :  { %v903_v42 = vmul.f32 %v4222_v37, %v902_v27 }
 0x149   :  { %v922_v32 = vmul.f32 %v4224_v0, %v921_v29 }
 0x14a   :  { %v904_v33 = vadd.f32 %v4222_v37, %v903_v42 }
 0x14b   :  { %v4226_v20 = vpop.eup %4225  ;;  %v923_v15 = vadd.f32 %v4224_v0, %v922_v32 }
 0x14c   :  { %v908_v10 = vsel %vm907_vm5, %v4222_v37, %v904_v33  ;;  %v940_v7 = vmul.f32 %v4226_v20, %v938_v24  ;;  %v4228_v54 = vpop.eup %4227  ;;  %vm945_vm9 = vweird.f32 %v4226_v20  ;;  %v948_v37 = vand.u32 2147483647, %v938_v24 }
 0x14d   :  { %v913_v13 = vsel %vm910_vm6, %v912_v58, %v908_v10  ;;  %v927_v27 = vsel %vm926_vm7, %v4224_v0, %v923_v15  ;;  %vm946_vm11 = vmor %vm944_vm10, %vm945_vm9 }
 0x14e   :  { %v932_v59 = vsel %vm929_vm8, %v931_v17, %v927_v27  ;;  %v955_v29 = vmul.f32 %v4228_v54, %v913_v13  ;;  %v941_v56 = vsub.f32 1.0, %v940_v7  ;;  %vm949_vm12 = vcmp.eq.f32.partialorder %v948_v37, 8.507059e+37 }
 0x14f   :  { %v954_v46 = vmul.f32 0.0, %v932_v59  ;;  %v624_v17 = vadd.f32 %v5022_v53, %v5032_v63 }
 0x150   :  { %v942_v42 = vmul.f32 %v4226_v20, %v941_v56  ;;  %v566_v56 = vadd.f32 %v5011_v41, %v5020_v49 }
 0x151   :  { %v5093_v2 = vadd.f32 %v955_v29, %v954_v46  ;;  %v537_v46 = vadd.f32 %v5009_v38, %v5016_v45 }
 0x152   :  { %v943_v26 = vadd.f32 %v4226_v20, %v942_v42 }
 0x153   :  { %4229 = vtanh.f32 %v5093_v2 }
 0x154   :  { %v947_v8 = vsel %vm946_vm11, %v4226_v20, %v943_v26 }
 0x155   :  { %v952_v0 = vsel %vm949_vm12, %v951_v31, %v947_v8 }
 0x159   :  { %v4230_v10 = vpop.eup %4229 }
 0x15a   :  { %v958_v32 = vmul.f32 %v4230_v10, %v952_v0  ;;  %v6386_v10 = vld [vmem:[#allocation19_spill] sm:$0xff] }
 0x15b   :  { %v595_v53 = vadd.f32 %v6386_v10, %v5030_v62 }
 0x15c   :  { %959 = vst [vmem:[#allocation4] sm:$0xff] %v958_v32  ;;  %v967_v19 = vpack.c.bf16 %v958_v32, %v958_v32 }
 0x15e   :  { %976 = vmatmul.bf16.vlgmr.msra.gmra.mxu0 %v967_v19  ;;  %989 = vmatmul.bf16.vlgmr.msra.gmra.mxu1 %v967_v19 }
 0x15f   :  { %1002 = vmatmul.bf16.vlgmr.msra.gmra.mxu2 %v967_v19  ;;  %1015 = vmatmul.bf16.vlgmr.msra.gmra.mxu3 %v967_v19 }
 0x160   :  { %1226 = vmatpush.bf16.msra.mxu0 %v4644_v39  ;;  %1239 = vmatpush.bf16.msra.mxu1 %v4655_v43 }
 0x161   :  { %1252 = vmatpush.bf16.msra.mxu2 %v4692_v55  ;;  %1265 = vmatpush.bf16.msra.mxu3 %v4667_v47 }
 0x164   :  { %1227 = vmatpush.bf16.msra.mxu0 %v4669_v48  ;;  %1240 = vmatpush.bf16.msra.mxu1 %v4679_v51 }
 0x165   :  { %1253 = vmatpush.bf16.msra.mxu2 %v4729_v3  ;;  %1266 = vmatpush.bf16.msra.mxu3 %v4709_v60 }
 0x168   :  { %1228 = vmatpush.bf16.msra.mxu0 %v4711_v61  ;;  %1241 = vmatpush.bf16.msra.mxu1 %v4724_v1 }
 0x169   :  { %1254 = vmatpush.bf16.msra.mxu2 %v4765_v16  ;;  %1267 = vmatpush.bf16.msra.mxu3 %v4751_v11 }
 0x16c   :  { %1229 = vmatpush.bf16.msra.mxu0 %v4753_v12  ;;  %1242 = vmatpush.bf16.msra.mxu1 %v4760_v14 }
 0x16d   :  { %1255 = vmatpush.bf16.msra.mxu2 %v4813_v34  ;;  %1268 = vmatpush.bf16.msra.mxu3 %v4781_v22 }
 0x170   :  { %1230 = vmatpush.bf16.msra.mxu0 %v4783_v23  ;;  %1243 = vmatpush.bf16.msra.mxu1 %v4796_v28 }
 0x171   :  { %1256 = vmatpush.bf16.msra.mxu2 %v4841_v44  ;;  %1269 = vmatpush.bf16.msra.mxu3 %v4817_v35 }
 0x174   :  { %1231 = vmatpush.bf16.msra.mxu0 %v4819_v36  ;;  %1244 = vmatpush.bf16.msra.mxu1 %v4829_v40 }
 0x175   :  { %1257 = vmatpush.bf16.msra.mxu2 %v4889_v4  ;;  %1270 = vmatpush.bf16.msra.mxu3 %v4854_v50 }
 0x178   :  { %1232 = vmatpush.bf16.msra.mxu0 %v4856_v52  ;;  %1245 = vmatpush.bf16.msra.mxu1 %v4868_v57 }
 0x179   :  { %1258 = vmatpush.bf16.msra.mxu2 %v4913_v18  ;;  %1271 = vmatpush.bf16.msra.mxu3 %v4893_v5 }
 0x17c   :  { %1233 = vmatpush.bf16.msra.mxu0 %v4895_v6  ;;  %1246 = vmatpush.bf16.msra.mxu1 %v4904_v9 }
 0x17d   :  { %1259 = vmatpush.bf16.msra.mxu2 %v4929_v25  ;;  %1272 = vmatpush.bf16.msra.mxu3 %v4923_v21 }
 0x1db   :  { %v977_v59 = vpop.f32.mrf.mxu0  ;;  %v990_v24 = vpop.f32.mrf.mxu1 }
 0x1dc   :  { %v1020_v33 = vadd.f32 %v977_v59, %v537_v46  ;;  %v1021_v20 = vadd.f32 %v990_v24, %v566_v56 }
 0x1de   :  { %v3785_v58 = vmul.f32 -1.442695, %v1020_v33  ;;  %v3786_v15 = vmul.f32 -1.442695, %v1021_v20 }
 0x1e0   :  { %4231 = vpow2.f32 %v3785_v58 }
 0x1e1   :  { %4233 = vpow2.f32 %v3786_v15 }
 0x1e2   :  { %v1003_v7 = vpop.f32.mrf.mxu2  ;;  %v1016_v54 = vpop.f32.mrf.mxu3 }
 0x1e3   :  { %v1023_v13 = vadd.f32 %v1016_v54, %v624_v17  ;;  %v979_v27 = vpop.f32.mrf.mxu0  ;;  %v992_v29 = vpop.f32.mrf.mxu1  ;;  %v1022_v19 = vadd.f32 %v1003_v7, %v595_v53 }
 0x1e5   :  { %v3787_v38 = vmul.f32 -1.442695, %v1023_v13 }
 0x1e6   :  { %v4232_v42 = vpop.eup %4231 }
 0x1e7   :  { %v4234_v26 = vpop.eup %4233  ;;  %v1027_v41 = vadd.f32 1.0, %v4232_v42  ;;  %4235 = vpow2.f32 %v3787_v38 }
 0x1e8   :  { %v1046_v30 = vadd.f32 1.0, %v4234_v26 }
 0x1e9   :  { %4237 = vrcp.f32 %v1027_v41  ;;  %v1039_v20 = vand.u32 2147483648, %v1027_v41  ;;  %v1037_v17 = vand.u32 2147483647, %v1027_v41  ;;  %vm1033_vm15 = vweird.f32 %v1027_v41 }
 0x1ea   :  { %4239 = vrcp.f32 %v1046_v30  ;;  %v1005_v37 = vpop.f32.mrf.mxu2  ;;  %v1018_v8 = vpop.f32.mrf.mxu3  ;;  %v1058_v58 = vand.u32 2147483648, %v1046_v30  ;;  %v1056_v13 = vand.u32 2147483647, %v1046_v30  ;;  %vm1052_vm0 = vweird.f32 %v1046_v30 }
 0x1eb   :  { %v1040_v7 = vor.u32 1.1754944e-38, %v1039_v20  ;;  %vm1038_vm3 = vcmp.eq.f32.partialorder %v1037_v17, 8.507059e+37 }
 0x1ec   :  { %v1059_v26 = vor.u32 1.1754944e-38, %v1058_v58  ;;  %vm1057_vm4 = vcmp.eq.f32.partialorder %v1056_v13, 8.507059e+37  ;;  %v6387_v13 = vld [vmem:[#allocation20_spill] sm:$0xff] }
 0x1ed   :  { %v4236_v31 = vpop.eup %4235 }
 0x1ee   :  { %v1066_v0 = vadd.f32 1.0, %v4236_v31 }
 0x1ef   :  { %v4238_v32 = vpop.eup %4237 }
 0x1f0   :  { %v4240_v46 = vpop.eup %4239  ;;  %v1029_v56 = vmul.f32 %v4238_v32, %v1027_v41  ;;  %4241 = vrcp.f32 %v1066_v0  ;;  %vm1034_vm13 = vweird.f32 %v4238_v32  ;;  %vm1072_vm6 = vweird.f32 %v1066_v0 }
 0x1f1   :  { %v1048_v59 = vmul.f32 %v4240_v46, %v1046_v30  ;;  %4243 = vtanh.f32 %v1022_v19  ;;  %vm1053_vm14 = vweird.f32 %v4240_v46  ;;  %vm1035_vm1 = vmor %vm1033_vm15, %vm1034_vm13 }
 0x1f2   :  { %v1030_v24 = vsub.f32 1.0, %v1029_v56  ;;  %vm1054_vm2 = vmor %vm1052_vm0, %vm1053_vm14 }
 0x1f3   :  { %v1049_v33 = vsub.f32 1.0, %v1048_v59 }
 0x1f4   :  { %v1031_v15 = vmul.f32 %v4238_v32, %v1030_v24 }
 0x1f5   :  { %v1050_v54 = vmul.f32 %v4240_v46, %v1049_v33  ;;  %v1078_v33 = vand.u32 2147483648, %v1066_v0 }
 0x1f6   :  { %v4242_v27 = vpop.eup %4241  ;;  %v1032_v29 = vadd.f32 %v4238_v32, %v1031_v15 }
 0x1f7   :  { %v1051_v38 = vadd.f32 %v4240_v46, %v1050_v54  ;;  %v1068_v42 = vmul.f32 %v4242_v27, %v1066_v0  ;;  %v4244_v8 = vpop.eup %4243  ;;  %vm1073_vm5 = vweird.f32 %v4242_v27  ;;  %v1079_v58 = vor.u32 1.1754944e-38, %v1078_v33 }
 0x1f8   :  { %v1036_v37 = vsel %vm1035_vm1, %v4238_v32, %v1032_v29  ;;  %v1076_v32 = vand.u32 2147483647, %v1066_v0  ;;  %vm1074_vm7 = vmor %vm1072_vm6, %vm1073_vm5  ;;  %v6388_v29 = vld [vmem:[#allocation21_spill] sm:$0xff] }
 0x1f9   :  { %v1041_v31 = vsel %vm1038_vm3, %v1040_v7, %v1036_v37  ;;  %v1055_v10 = vsel %vm1054_vm2, %v4240_v46, %v1051_v38  ;;  %v1069_v53 = vsub.f32 1.0, %v1068_v42 }
 0x1fa   :  { %v1060_v19 = vsel %vm1057_vm4, %v1059_v26, %v1055_v10  ;;  %v1083_v56 = vmul.f32 %v4244_v8, %v1041_v31  ;;  %vm1077_vm8 = vcmp.eq.f32.partialorder %v1076_v32, 8.507059e+37  ;;  %v6389_v8 = vld [vmem:[#allocation24_spill] sm:$0xff] }
 0x1fb   :  { %v1082_v59 = vmul.f32 %v1060_v19, %v5093_v2  ;;  %v1070_v24 = vmul.f32 %v4242_v27, %v1069_v53 }
 0x1fd   :  { %v5137_v41 = vadd.f32 %v1083_v56, %v1082_v59  ;;  %v1071_v30 = vadd.f32 %v4242_v27, %v1070_v24 }
 0x1ff   :  { %4245 = vtanh.f32 %v5137_v41  ;;  %v1075_v20 = vsel %vm1074_vm7, %v4242_v27, %v1071_v30 }
 0x200   :  { %v1080_v15 = vsel %vm1077_vm8, %v1079_v58, %v1075_v20 }
 0x205   :  { %v4246_v46 = vpop.eup %4245 }
 0x206   :  { %v1086_v17 = vmul.f32 %v4246_v46, %v1080_v15  ;;  %v6390_v15 = vld [vmem:[#allocation22_spill] sm:$0xff] }
 0x208   :  { %1088 = vst [vmem:[#allocation4 + $0x8] sm:$0xff] %v1086_v17  ;;  %v1096_v54 = vpack.c.bf16 %v1086_v17, %v1086_v17 }
 0x20a   :  { %1105 = vmatmul.bf16.vlgmr.msrb.gmra.mxu0 %v1096_v54  ;;  %1118 = vmatmul.bf16.vlgmr.msrb.gmra.mxu1 %v1096_v54 }
 0x20b   :  { %1131 = vmatmul.bf16.vlgmr.msrb.gmra.mxu2 %v1096_v54  ;;  %1144 = vmatmul.bf16.vlgmr.msrb.gmra.mxu3 %v1096_v54 }
 0x20c   :  { %1355 = vmatpush.bf16.msrb.mxu0 %v4644_v39  ;;  %1368 = vmatpush.bf16.msrb.mxu1 %v4655_v43 }
 0x20d   :  { %1381 = vmatpush.bf16.msrb.mxu2 %v4692_v55  ;;  %1394 = vmatpush.bf16.msrb.mxu3 %v4667_v47 }
 0x210   :  { %1356 = vmatpush.bf16.msrb.mxu0 %v4669_v48  ;;  %1369 = vmatpush.bf16.msrb.mxu1 %v4679_v51 }
 0x211   :  { %1382 = vmatpush.bf16.msrb.mxu2 %v4729_v3  ;;  %1395 = vmatpush.bf16.msrb.mxu3 %v4709_v60 }
 0x214   :  { %1357 = vmatpush.bf16.msrb.mxu0 %v4711_v61  ;;  %1370 = vmatpush.bf16.msrb.mxu1 %v4724_v1 }
 0x215   :  { %1383 = vmatpush.bf16.msrb.mxu2 %v4765_v16  ;;  %1396 = vmatpush.bf16.msrb.mxu3 %v4751_v11 }
 0x218   :  { %1358 = vmatpush.bf16.msrb.mxu0 %v4753_v12  ;;  %1371 = vmatpush.bf16.msrb.mxu1 %v4760_v14 }
 0x219   :  { %1384 = vmatpush.bf16.msrb.mxu2 %v4813_v34  ;;  %1397 = vmatpush.bf16.msrb.mxu3 %v4781_v22 }
 0x21c   :  { %1359 = vmatpush.bf16.msrb.mxu0 %v4783_v23  ;;  %1372 = vmatpush.bf16.msrb.mxu1 %v4796_v28 }
 0x21d   :  { %1385 = vmatpush.bf16.msrb.mxu2 %v4841_v44  ;;  %1398 = vmatpush.bf16.msrb.mxu3 %v4817_v35 }
 0x220   :  { %1360 = vmatpush.bf16.msrb.mxu0 %v4819_v36  ;;  %1373 = vmatpush.bf16.msrb.mxu1 %v4829_v40 }
 0x221   :  { %1386 = vmatpush.bf16.msrb.mxu2 %v4889_v4  ;;  %1399 = vmatpush.bf16.msrb.mxu3 %v4854_v50 }
 0x224   :  { %1361 = vmatpush.bf16.msrb.mxu0 %v4856_v52  ;;  %1374 = vmatpush.bf16.msrb.mxu1 %v4868_v57 }
 0x225   :  { %1387 = vmatpush.bf16.msrb.mxu2 %v4913_v18  ;;  %1400 = vmatpush.bf16.msrb.mxu3 %v4893_v5 }
 0x228   :  { %1362 = vmatpush.bf16.msrb.mxu0 %v4895_v6  ;;  %1375 = vmatpush.bf16.msrb.mxu1 %v4904_v9 }
 0x229   :  { %1388 = vmatpush.bf16.msrb.mxu2 %v4929_v25  ;;  %1401 = vmatpush.bf16.msrb.mxu3 %v4923_v21 }
 0x287   :  { %v1106_v2 = vpop.f32.mrf.mxu0  ;;  %v1119_v0 = vpop.f32.mrf.mxu1 }
 0x288   :  { %v1149_v27 = vadd.f32 %v1106_v2, %v6387_v13  ;;  %v1150_v7 = vadd.f32 %v1119_v0, %v6388_v29 }
 0x28a   :  { %v3788_v38 = vmul.f32 -1.442695, %v1149_v27  ;;  %v3789_v42 = vmul.f32 -1.442695, %v1150_v7 }
 0x28c   :  { %4247 = vpow2.f32 %v3788_v38 }
 0x28d   :  { %4249 = vpow2.f32 %v3789_v42 }
 0x28e   :  { %v1132_v26 = vpop.f32.mrf.mxu2  ;;  %v1145_v37 = vpop.f32.mrf.mxu3 }
 0x28f   :  { %v1152_v31 = vadd.f32 %v1145_v37, %v6389_v8  ;;  %v1108_v10 = vpop.f32.mrf.mxu0  ;;  %v1121_v53 = vpop.f32.mrf.mxu1  ;;  %v1151_v17 = vadd.f32 %v1132_v26, %v6390_v15 }
 0x291   :  { %v3790_v19 = vmul.f32 -1.442695, %v1152_v31 }
 0x292   :  { %v4248_v56 = vpop.eup %4247 }
 0x293   :  { %v4250_v59 = vpop.eup %4249  ;;  %v1156_v24 = vadd.f32 1.0, %v4248_v56  ;;  %4251 = vpow2.f32 %v3790_v19 }
 0x294   :  { %v1175_v30 = vadd.f32 1.0, %v4250_v59 }
 0x295   :  { %4253 = vrcp.f32 %v1156_v24  ;;  %v1168_v29 = vand.u32 2147483648, %v1156_v24  ;;  %v1166_v42 = vand.u32 2147483647, %v1156_v24  ;;  %vm1162_vm11 = vweird.f32 %v1156_v24 }
 0x296   :  { %4255 = vrcp.f32 %v1175_v30  ;;  %v1134_v33 = vpop.f32.mrf.mxu2  ;;  %v1147_v32 = vpop.f32.mrf.mxu3  ;;  %v1187_v7 = vand.u32 2147483648, %v1175_v30  ;;  %v1185_v8 = vand.u32 2147483647, %v1175_v30  ;;  %vm1181_vm12 = vweird.f32 %v1175_v30 }
 0x297   :  { %v1169_v26 = vor.u32 1.1754944e-38, %v1168_v29  ;;  %vm1167_vm15 = vcmp.eq.f32.partialorder %v1166_v42, 8.507059e+37 }
 0x298   :  { %v1188_v56 = vor.u32 1.1754944e-38, %v1187_v7  ;;  %vm1186_vm0 = vcmp.eq.f32.partialorder %v1185_v8, 8.507059e+37  ;;  %v6392_v8 = vld [vmem:[#allocation25_spill] sm:$0xff] }
 0x299   :  { %v4252_v20 = vpop.eup %4251 }
 0x29a   :  { %v1195_v58 = vadd.f32 1.0, %v4252_v20 }
 0x29b   :  { %v4254_v46 = vpop.eup %4253 }
 0x29c   :  { %v4256_v54 = vpop.eup %4255  ;;  %v1158_v2 = vmul.f32 %v4254_v46, %v1156_v24  ;;  %4257 = vrcp.f32 %v1195_v58  ;;  %vm1163_vm9 = vweird.f32 %v4254_v46  ;;  %vm1201_vm2 = vweird.f32 %v1195_v58 }
 0x29d   :  { %v1177_v0 = vmul.f32 %v4256_v54, %v1175_v30  ;;  %4259 = vtanh.f32 %v1151_v17  ;;  %vm1182_vm10 = vweird.f32 %v4256_v54  ;;  %vm1164_vm13 = vmor %vm1162_vm11, %vm1163_vm9 }
 0x29e   :  { %v1159_v13 = vsub.f32 1.0, %v1158_v2  ;;  %vm1183_vm14 = vmor %vm1181_vm12, %vm1182_vm10 }
 0x29f   :  { %v1178_v27 = vsub.f32 1.0, %v1177_v0 }
 0x2a0   :  { %v1160_v38 = vmul.f32 %v4254_v46, %v1159_v13 }
 0x2a1   :  { %v1179_v37 = vmul.f32 %v4256_v54, %v1178_v27  ;;  %v1207_v27 = vand.u32 2147483648, %v1195_v58 }
 0x2a2   :  { %v4258_v31 = vpop.eup %4257  ;;  %v1161_v10 = vadd.f32 %v4254_v46, %v1160_v38 }
 0x2a3   :  { %v1180_v53 = vadd.f32 %v4256_v54, %v1179_v37  ;;  %v1197_v19 = vmul.f32 %v4258_v31, %v1195_v58  ;;  %v4260_v33 = vpop.eup %4259  ;;  %vm1202_vm1 = vweird.f32 %v4258_v31  ;;  %v1208_v7 = vor.u32 1.1754944e-38, %v1207_v27 }
 0x2a4   :  { %v1165_v59 = vsel %vm1164_vm13, %v4254_v46, %v1161_v10  ;;  %v1205_v46 = vand.u32 2147483647, %v1195_v58  ;;  %vm1203_vm3 = vmor %vm1201_vm2, %vm1202_vm1 }
 0x2a5   :  { %v1170_v32 = vsel %vm1167_vm15, %v1169_v26, %v1165_v59  ;;  %v1184_v20 = vsel %vm1183_vm14, %v4256_v54, %v1180_v53  ;;  %v1198_v15 = vsub.f32 1.0, %v1197_v19 }
 0x2a6   :  { %v1189_v17 = vsel %vm1186_vm0, %v1188_v56, %v1184_v20  ;;  %v1212_v2 = vmul.f32 %v4260_v33, %v1170_v32  ;;  %vm1206_vm4 = vcmp.eq.f32.partialorder %v1205_v46, 8.507059e+37  ;;  %v6393_v33 = vld [vmem:[#allocation27_spill] sm:$0xff] }
 0x2a7   :  { %v1211_v0 = vmul.f32 %v1189_v17, %v5137_v41  ;;  %v1199_v13 = vmul.f32 %v4258_v31, %v1198_v15  ;;  %v6391_v41 = vld [vmem:[#allocation23_spill] sm:$0xff]  ;;  %v629_v32 = vadd.f32 %v6393_v33, %v5032_v63 }
 0x2a8   :  { %v542_v58 = vadd.f32 %v6391_v41, %v5016_v45 }
 0x2a9   :  { %v5177_v24 = vadd.f32 %v1212_v2, %v1211_v0  ;;  %v1200_v30 = vadd.f32 %v4258_v31, %v1199_v13 }
 0x2ab   :  { %4261 = vtanh.f32 %v5177_v24  ;;  %v1204_v29 = vsel %vm1203_vm3, %v4258_v31, %v1200_v30  ;;  %v571_v31 = vadd.f32 %v6392_v8, %v5020_v49 }
 0x2ac   :  { %v1209_v38 = vsel %vm1206_vm4, %v1208_v7, %v1204_v29 }
 0x2b1   :  { %v4262_v54 = vpop.eup %4261 }
 0x2b2   :  { %v1215_v42 = vmul.f32 %v4262_v54, %v1209_v38 }
 0x2b4   :  { %1217 = vst [vmem:[#allocation4 + $0x10] sm:$0xff] %v1215_v42  ;;  %v1225_v37 = vpack.c.bf16 %v1215_v42, %v1215_v42  ;;  %v6394_v42 = vld [vmem:[#allocation26_spill] sm:$0xff] }
 0x2b6   :  { %1234 = vmatmul.bf16.vlgmr.msra.gmra.mxu0 %v1225_v37  ;;  %1247 = vmatmul.bf16.vlgmr.msra.gmra.mxu1 %v1225_v37 }
 0x2b7   :  { %1260 = vmatmul.bf16.vlgmr.msra.gmra.mxu2 %v1225_v37  ;;  %1273 = vmatmul.bf16.vlgmr.msra.gmra.mxu3 %v1225_v37  ;;  %v600_v37 = vadd.f32 %v6394_v42, %v5030_v62 }
 0x2b8   :  { %1484 = vmatpush.bf16.msra.mxu0 %v4644_v39  ;;  %1497 = vmatpush.bf16.msra.mxu1 %v4655_v43 }
 0x2b9   :  { %1510 = vmatpush.bf16.msra.mxu2 %v4692_v55  ;;  %1523 = vmatpush.bf16.msra.mxu3 %v4667_v47 }
 0x2bc   :  { %1485 = vmatpush.bf16.msra.mxu0 %v4669_v48  ;;  %1498 = vmatpush.bf16.msra.mxu1 %v4679_v51 }
 0x2bd   :  { %1511 = vmatpush.bf16.msra.mxu2 %v4729_v3  ;;  %1524 = vmatpush.bf16.msra.mxu3 %v4709_v60 }
 0x2c0   :  { %1486 = vmatpush.bf16.msra.mxu0 %v4711_v61  ;;  %1499 = vmatpush.bf16.msra.mxu1 %v4724_v1 }
 0x2c1   :  { %1512 = vmatpush.bf16.msra.mxu2 %v4765_v16  ;;  %1525 = vmatpush.bf16.msra.mxu3 %v4751_v11 }
 0x2c4   :  { %1487 = vmatpush.bf16.msra.mxu0 %v4753_v12  ;;  %1500 = vmatpush.bf16.msra.mxu1 %v4760_v14 }
 0x2c5   :  { %1513 = vmatpush.bf16.msra.mxu2 %v4813_v34  ;;  %1526 = vmatpush.bf16.msra.mxu3 %v4781_v22 }
 0x2c8   :  { %1488 = vmatpush.bf16.msra.mxu0 %v4783_v23  ;;  %1501 = vmatpush.bf16.msra.mxu1 %v4796_v28 }
 0x2c9   :  { %1514 = vmatpush.bf16.msra.mxu2 %v4841_v44  ;;  %1527 = vmatpush.bf16.msra.mxu3 %v4817_v35 }
 0x2cc   :  { %1489 = vmatpush.bf16.msra.mxu0 %v4819_v36  ;;  %1502 = vmatpush.bf16.msra.mxu1 %v4829_v40 }
 0x2cd   :  { %1515 = vmatpush.bf16.msra.mxu2 %v4889_v4  ;;  %1528 = vmatpush.bf16.msra.mxu3 %v4854_v50 }
 0x2d0   :  { %1490 = vmatpush.bf16.msra.mxu0 %v4856_v52  ;;  %1503 = vmatpush.bf16.msra.mxu1 %v4868_v57 }
 0x2d1   :  { %1516 = vmatpush.bf16.msra.mxu2 %v4913_v18  ;;  %1529 = vmatpush.bf16.msra.mxu3 %v4893_v5 }
 0x2d4   :  { %1491 = vmatpush.bf16.msra.mxu0 %v4895_v6  ;;  %1504 = vmatpush.bf16.msra.mxu1 %v4904_v9 }
 0x2d5   :  { %1517 = vmatpush.bf16.msra.mxu2 %v4929_v25  ;;  %1530 = vmatpush.bf16.msra.mxu3 %v4923_v21 }
 0x333   :  { %v1235_v10 = vpop.f32.mrf.mxu0  ;;  %v1248_v26 = vpop.f32.mrf.mxu1 }
 0x334   :  { %v1278_v53 = vadd.f32 %v1235_v10, %v542_v58  ;;  %v1279_v19 = vadd.f32 %v1248_v26, %v571_v31 }
 0x336   :  { %v3791_v56 = vmul.f32 -1.442695, %v1278_v53  ;;  %v3792_v59 = vmul.f32 -1.442695, %v1279_v19 }
 0x338   :  { %4263 = vpow2.f32 %v3791_v56 }
 0x339   :  { %4265 = vpow2.f32 %v3792_v59 }
 0x33a   :  { %v1261_v20 = vpop.f32.mrf.mxu2  ;;  %v1274_v15 = vpop.f32.mrf.mxu3 }
 0x33b   :  { %v1281_v17 = vadd.f32 %v1274_v15, %v629_v32  ;;  %v1237_v2 = vpop.f32.mrf.mxu0  ;;  %v1250_v0 = vpop.f32.mrf.mxu1  ;;  %v1280_v8 = vadd.f32 %v1261_v20, %v600_v37 }
 0x33d   :  { %v3793_v13 = vmul.f32 -1.442695, %v1281_v17 }
 0x33e   :  { %v4264_v30 = vpop.eup %4263 }
 0x33f   :  { %v4266_v27 = vpop.eup %4265  ;;  %v1285_v46 = vadd.f32 1.0, %v4264_v30  ;;  %4267 = vpow2.f32 %v3793_v13 }
 0x340   :  { %v1304_v29 = vadd.f32 1.0, %v4266_v27 }
 0x341   :  { %4269 = vrcp.f32 %v1285_v46  ;;  %v1297_v56 = vand.u32 2147483648, %v1285_v46  ;;  %v1295_v32 = vand.u32 2147483647, %v1285_v46  ;;  %vm1291_vm7 = vweird.f32 %v1285_v46 }
 0x342   :  { %4271 = vrcp.f32 %v1304_v29  ;;  %v1263_v7 = vpop.f32.mrf.mxu2  ;;  %v1276_v54 = vpop.f32.mrf.mxu3  ;;  %v1316_v59 = vand.u32 2147483648, %v1304_v29  ;;  %v1314_v17 = vand.u32 2147483647, %v1304_v29  ;;  %vm1310_vm8 = vweird.f32 %v1304_v29 }
 0x343   :  { %v1298_v20 = vor.u32 1.1754944e-38, %v1297_v56  ;;  %vm1296_vm11 = vcmp.eq.f32.partialorder %v1295_v32, 8.507059e+37 }
 0x344   :  { %v1317_v27 = vor.u32 1.1754944e-38, %v1316_v59  ;;  %vm1315_vm12 = vcmp.eq.f32.partialorder %v1314_v17, 8.507059e+37  ;;  %v6395_v17 = vld [vmem:[#allocation28_spill] sm:$0xff] }
 0x345   :  { %v4268_v38 = vpop.eup %4267 }
 0x346   :  { %v1324_v41 = vadd.f32 1.0, %v4268_v38 }
 0x347   :  { %v4270_v58 = vpop.eup %4269 }
 0x348   :  { %v4272_v31 = vpop.eup %4271  ;;  %v1287_v10 = vmul.f32 %v4270_v58, %v1285_v46  ;;  %4273 = vrcp.f32 %v1324_v41  ;;  %vm1292_vm5 = vweird.f32 %v4270_v58  ;;  %vm1330_vm14 = vweird.f32 %v1324_v41 }
 0x349   :  { %v1306_v26 = vmul.f32 %v4272_v31, %v1304_v29  ;;  %4275 = vtanh.f32 %v1280_v8  ;;  %vm1311_vm6 = vweird.f32 %v4272_v31  ;;  %vm1293_vm9 = vmor %vm1291_vm7, %vm1292_vm5 }
 0x34a   :  { %v1288_v53 = vsub.f32 1.0, %v1287_v10  ;;  %vm1312_vm10 = vmor %vm1310_vm8, %vm1311_vm6 }
 0x34b   :  { %v1307_v19 = vsub.f32 1.0, %v1306_v26 }
 0x34c   :  { %v1289_v33 = vmul.f32 %v4270_v58, %v1288_v53 }
 0x34d   :  { %v1308_v15 = vmul.f32 %v4272_v31, %v1307_v19  ;;  %v1336_v19 = vand.u32 2147483648, %v1324_v41 }
 0x34e   :  { %v4274_v2 = vpop.eup %4273  ;;  %v1290_v0 = vadd.f32 %v4270_v58, %v1289_v33 }
 0x34f   :  { %v1309_v13 = vadd.f32 %v4272_v31, %v1308_v15  ;;  %v1326_v30 = vmul.f32 %v4274_v2, %v1324_v41  ;;  %v4276_v54 = vpop.eup %4275  ;;  %vm1331_vm13 = vweird.f32 %v4274_v2  ;;  %v1337_v59 = vor.u32 1.1754944e-38, %v1336_v19 }
 0x350   :  { %v1294_v7 = vsel %vm1293_vm9, %v4270_v58, %v1290_v0  ;;  %v1334_v58 = vand.u32 2147483647, %v1324_v41  ;;  %vm1332_vm15 = vmor %vm1330_vm14, %vm1331_vm13  ;;  %v6396_v0 = vld [vmem:[#allocation29_spill] sm:$0xff] }
 0x351   :  { %v1299_v38 = vsel %vm1296_vm11, %v1298_v20, %v1294_v7  ;;  %v1313_v42 = vsel %vm1312_vm10, %v4272_v31, %v1309_v13  ;;  %v1327_v37 = vsub.f32 1.0, %v1326_v30 }
 0x352   :  { %v1318_v8 = vsel %vm1315_vm12, %v1317_v27, %v1313_v42  ;;  %v1341_v10 = vmul.f32 %v4276_v54, %v1299_v38  ;;  %vm1335_vm0 = vcmp.eq.f32.partialorder %v1334_v58, 8.507059e+37  ;;  %v6397_v54 = vld [vmem:[#allocation32_spill] sm:$0xff] }
 0x353   :  { %v1340_v26 = vmul.f32 %v1318_v8, %v5177_v24  ;;  %v1328_v53 = vmul.f32 %v4274_v2, %v1327_v37 }
 0x355   :  { %v5221_v46 = vadd.f32 %v1341_v10, %v1340_v26  ;;  %v1329_v29 = vadd.f32 %v4274_v2, %v1328_v53 }
 0x357   :  { %4277 = vtanh.f32 %v5221_v46  ;;  %v1333_v56 = vsel %vm1332_vm15, %v4274_v2, %v1329_v29 }
 0x358   :  { %v1338_v33 = vsel %vm1335_vm0, %v1337_v59, %v1333_v56 }
 0x35d   :  { %v4278_v31 = vpop.eup %4277 }
 0x35e   :  { %v5224_v32 = vmul.f32 %v4278_v31, %v1338_v33  ;;  %v6398_v33 = vld [vmem:[#allocation30_spill] sm:$0xff] }
 0x360   :  { %v1354_v24 = vpack.c.bf16 %v5224_v32, %v5224_v32 }
 0x362   :  { %1363 = vmatmul.bf16.vlgmr.msrb.gmra.mxu0 %v1354_v24  ;;  %1376 = vmatmul.bf16.vlgmr.msrb.gmra.mxu1 %v1354_v24 }
 0x363   :  { %1389 = vmatmul.bf16.vlgmr.msrb.gmra.mxu2 %v1354_v24  ;;  %1402 = vmatmul.bf16.vlgmr.msrb.gmra.mxu3 %v1354_v24 }
 0x364   :  { %1613 = vmatpush.bf16.msrb.mxu0 %v4644_v39  ;;  %1626 = vmatpush.bf16.msrb.mxu1 %v4655_v43 }
 0x365   :  { %1639 = vmatpush.bf16.msrb.mxu2 %v4692_v55  ;;  %1652 = vmatpush.bf16.msrb.mxu3 %v4667_v47 }
 0x368   :  { %1614 = vmatpush.bf16.msrb.mxu0 %v4669_v48  ;;  %1627 = vmatpush.bf16.msrb.mxu1 %v4679_v51 }
 0x369   :  { %1640 = vmatpush.bf16.msrb.mxu2 %v4729_v3  ;;  %1653 = vmatpush.bf16.msrb.mxu3 %v4709_v60 }
 0x36c   :  { %1615 = vmatpush.bf16.msrb.mxu0 %v4711_v61  ;;  %1628 = vmatpush.bf16.msrb.mxu1 %v4724_v1 }
 0x36d   :  { %1641 = vmatpush.bf16.msrb.mxu2 %v4765_v16  ;;  %1654 = vmatpush.bf16.msrb.mxu3 %v4751_v11 }
 0x370   :  { %1616 = vmatpush.bf16.msrb.mxu0 %v4753_v12  ;;  %1629 = vmatpush.bf16.msrb.mxu1 %v4760_v14 }
 0x371   :  { %1642 = vmatpush.bf16.msrb.mxu2 %v4813_v34  ;;  %1655 = vmatpush.bf16.msrb.mxu3 %v4781_v22 }
 0x374   :  { %1617 = vmatpush.bf16.msrb.mxu0 %v4783_v23  ;;  %1630 = vmatpush.bf16.msrb.mxu1 %v4796_v28 }
 0x375   :  { %1643 = vmatpush.bf16.msrb.mxu2 %v4841_v44  ;;  %1656 = vmatpush.bf16.msrb.mxu3 %v4817_v35 }
 0x378   :  { %1618 = vmatpush.bf16.msrb.mxu0 %v4819_v36  ;;  %1631 = vmatpush.bf16.msrb.mxu1 %v4829_v40 }
 0x379   :  { %1644 = vmatpush.bf16.msrb.mxu2 %v4889_v4  ;;  %1657 = vmatpush.bf16.msrb.mxu3 %v4854_v50 }
 0x37c   :  { %1619 = vmatpush.bf16.msrb.mxu0 %v4856_v52  ;;  %1632 = vmatpush.bf16.msrb.mxu1 %v4868_v57 }
 0x37d   :  { %1645 = vmatpush.bf16.msrb.mxu2 %v4913_v18  ;;  %1658 = vmatpush.bf16.msrb.mxu3 %v4893_v5 }
 0x380   :  { %1620 = vmatpush.bf16.msrb.mxu0 %v4895_v6  ;;  %1633 = vmatpush.bf16.msrb.mxu1 %v4904_v9 }
 0x381   :  { %1646 = vmatpush.bf16.msrb.mxu2 %v4929_v25  ;;  %1659 = vmatpush.bf16.msrb.mxu3 %v4923_v21 }
 0x3df   :  { %v1364_v41 = vpop.f32.mrf.mxu0  ;;  %v1377_v15 = vpop.f32.mrf.mxu1 }
 0x3e0   :  { %v1407_v2 = vadd.f32 %v1364_v41, %v6395_v17  ;;  %v1408_v20 = vadd.f32 %v1377_v15, %v6396_v0 }
 0x3e2   :  { %v3794_v13 = vmul.f32 -1.442695, %v1407_v2  ;;  %v3795_v30 = vmul.f32 -1.442695, %v1408_v20 }
 0x3e4   :  { %4279 = vpow2.f32 %v3794_v13 }
 0x3e5   :  { %4281 = vpow2.f32 %v3795_v30 }
 0x3e6   :  { %v1390_v27 = vpop.f32.mrf.mxu2  ;;  %v1403_v7 = vpop.f32.mrf.mxu3 }
 0x3e7   :  { %v1410_v38 = vadd.f32 %v1403_v7, %v6397_v54  ;;  %v1366_v42 = vpop.f32.mrf.mxu0  ;;  %v1379_v37 = vpop.f32.mrf.mxu1  ;;  %v1409_v24 = vadd.f32 %v1390_v27, %v6398_v33 }
 0x3e9   :  { %v3796_v8 = vmul.f32 -1.442695, %v1410_v38 }
 0x3ea   :  { %v4280_v10 = vpop.eup %4279 }
 0x3eb   :  { %v4282_v26 = vpop.eup %4281  ;;  %v1414_v53 = vadd.f32 1.0, %v4280_v10  ;;  %4283 = vpow2.f32 %v3796_v8 }
 0x3ec   :  { %v1433_v29 = vadd.f32 1.0, %v4282_v26 }
 0x3ed   :  { %4285 = vrcp.f32 %v1414_v53  ;;  %v1426_v20 = vand.u32 2147483648, %v1414_v53  ;;  %v1424_v7 = vand.u32 2147483647, %v1414_v53  ;;  %vm1420_vm3 = vweird.f32 %v1414_v53 }
 0x3ee   :  { %4287 = vrcp.f32 %v1433_v29  ;;  %v1392_v19 = vpop.f32.mrf.mxu2  ;;  %v1405_v58 = vpop.f32.mrf.mxu3  ;;  %v1445_v13 = vand.u32 2147483648, %v1433_v29  ;;  %v1443_v38 = vand.u32 2147483647, %v1433_v29  ;;  %vm1439_vm4 = vweird.f32 %v1433_v29 }
 0x3ef   :  { %v1427_v27 = vor.u32 1.1754944e-38, %v1426_v20  ;;  %vm1425_vm7 = vcmp.eq.f32.partialorder %v1424_v7, 8.507059e+37 }
 0x3f0   :  { %v1446_v26 = vor.u32 1.1754944e-38, %v1445_v13  ;;  %vm1444_vm8 = vcmp.eq.f32.partialorder %v1443_v38, 8.507059e+37 }
 0x3f1   :  { %v4284_v56 = vpop.eup %4283 }
 0x3f2   :  { %v1453_v59 = vadd.f32 1.0, %v4284_v56 }
 0x3f3   :  { %v4286_v31 = vpop.eup %4285 }
 0x3f4   :  { %v4288_v41 = vpop.eup %4287  ;;  %v1416_v15 = vmul.f32 %v4286_v31, %v1414_v53  ;;  %4289 = vrcp.f32 %v1453_v59  ;;  %vm1421_vm1 = vweird.f32 %v4286_v31  ;;  %v1465_v20 = vand.u32 2147483648, %v1453_v59 }
 0x3f5   :  { %v1435_v17 = vmul.f32 %v4288_v41, %v1433_v29  ;;  %4291 = vtanh.f32 %v1409_v24  ;;  %vm1440_vm2 = vweird.f32 %v4288_v41  ;;  %vm1422_vm5 = vmor %vm1420_vm3, %vm1421_vm1  ;;  %vm1459_vm10 = vweird.f32 %v1453_v59 }
 0x3f6   :  { %v1417_v2 = vsub.f32 1.0, %v1416_v15  ;;  %vm1441_vm6 = vmor %vm1439_vm4, %vm1440_vm2 }
 0x3f7   :  { %v1436_v0 = vsub.f32 1.0, %v1435_v17 }
 0x3f8   :  { %v1418_v30 = vmul.f32 %v4286_v31, %v1417_v2 }
 0x3f9   :  { %v1437_v54 = vmul.f32 %v4288_v41, %v1436_v0 }
 0x3fa   :  { %v4290_v42 = vpop.eup %4289  ;;  %v1419_v37 = vadd.f32 %v4286_v31, %v1418_v30  ;;  %v1466_v30 = vor.u32 1.1754944e-38, %v1465_v20 }
 0x3fb   :  { %v1438_v8 = vadd.f32 %v4288_v41, %v1437_v54  ;;  %v1455_v10 = vmul.f32 %v4290_v42, %v1453_v59  ;;  %v4292_v58 = vpop.eup %4291  ;;  %vm1460_vm9 = vweird.f32 %v4290_v42 }
 0x3fc   :  { %v1423_v19 = vsel %vm1422_vm5, %v4286_v31, %v1419_v37  ;;  %v1463_v31 = vand.u32 2147483647, %v1453_v59  ;;  %vm1461_vm11 = vmor %vm1459_vm10, %vm1460_vm9 }
 0x3fd   :  { %v1428_v56 = vsel %vm1425_vm7, %v1427_v27, %v1423_v19  ;;  %v1442_v33 = vsel %vm1441_vm6, %v4288_v41, %v1438_v8  ;;  %v1456_v24 = vsub.f32 1.0, %v1455_v10 }
 0x3fe   :  { %v1447_v15 = vsel %vm1444_vm8, %v1446_v26, %v1442_v33  ;;  %v1470_v17 = vmul.f32 %v4292_v58, %v1428_v56  ;;  %vm1464_vm12 = vcmp.eq.f32.partialorder %v1463_v31, 8.507059e+37 }
 0x3ff   :  { %v1469_v2 = vmul.f32 %v1447_v15, %v5221_v46  ;;  %v1457_v0 = vmul.f32 %v4290_v42, %v1456_v24 }
 0x401   :  { %v5265_v53 = vadd.f32 %v1470_v17, %v1469_v2  ;;  %v1458_v29 = vadd.f32 %v4290_v42, %v1457_v0 }
 0x403   :  { %4293 = vtanh.f32 %v5265_v53  ;;  %v1462_v13 = vsel %vm1461_vm11, %v4290_v42, %v1458_v29 }
 0x404   :  { %v1467_v7 = vsel %vm1464_vm12, %v1466_v30, %v1462_v13 }
 0x409   :  { %v4294_v41 = vpop.eup %4293 }
 0x40a   :  { %v5268_v54 = vmul.f32 %v4294_v41, %v1467_v7 }
 0x40c   :  { %v1483_v46 = vpack.c.bf16 %v5268_v54, %v5268_v54 }
 0x40e   :  { %1492 = vmatmul.bf16.vlgmr.msra.gmra.mxu0 %v1483_v46  ;;  %1505 = vmatmul.bf16.vlgmr.msra.gmra.mxu1 %v1483_v46 }
 0x40f   :  { %1518 = vmatmul.bf16.vlgmr.msra.gmra.mxu2 %v1483_v46  ;;  %1531 = vmatmul.bf16.vlgmr.msra.gmra.mxu3 %v1483_v46 }
 0x410   :  { %1742 = vmatpush.bf16.msra.mxu0 %v4644_v39  ;;  %1755 = vmatpush.bf16.msra.mxu1 %v4655_v43  ;;  %v6399_v39 = vld [vmem:[#allocation31_spill] sm:$0xff] }
 0x411   :  { %1768 = vmatpush.bf16.msra.mxu2 %v4692_v55  ;;  %1781 = vmatpush.bf16.msra.mxu3 %v4667_v47  ;;  %v547_v43 = vadd.f32 %v6399_v39, %v5016_v45  ;;  %v6400_v47 = vld [vmem:[#allocation33_spill] sm:$0xff] }
 0x414   :  { %1743 = vmatpush.bf16.msra.mxu0 %v4669_v48  ;;  %1756 = vmatpush.bf16.msra.mxu1 %v4679_v51  ;;  %v576_v48 = vadd.f32 %v6400_v47, %v5020_v49 }
 0x415   :  { %1769 = vmatpush.bf16.msra.mxu2 %v4729_v3  ;;  %1782 = vmatpush.bf16.msra.mxu3 %v4709_v60 }
 0x418   :  { %1744 = vmatpush.bf16.msra.mxu0 %v4711_v61  ;;  %1757 = vmatpush.bf16.msra.mxu1 %v4724_v1 }
 0x419   :  { %1770 = vmatpush.bf16.msra.mxu2 %v4765_v16  ;;  %1783 = vmatpush.bf16.msra.mxu3 %v4751_v11  ;;  %v6401_v11 = vld [vmem:[#allocation35_spill] sm:$0xff] }
 0x41c   :  { %1745 = vmatpush.bf16.msra.mxu0 %v4753_v12  ;;  %1758 = vmatpush.bf16.msra.mxu1 %v4760_v14  ;;  %v634_v12 = vadd.f32 %v6401_v11, %v5032_v63  ;;  %v4169_v11 = vld [vmem:[%s6351_s5 + $0xe4] sm:$0xf] }
 0x41d   :  { %1771 = vmatpush.bf16.msra.mxu2 %v4813_v34  ;;  %1784 = vmatpush.bf16.msra.mxu3 %v4781_v22 }
 0x420   :  { %1746 = vmatpush.bf16.msra.mxu0 %v4783_v23  ;;  %1759 = vmatpush.bf16.msra.mxu1 %v4796_v28 }
 0x421   :  { %1772 = vmatpush.bf16.msra.mxu2 %v4841_v44  ;;  %1785 = vmatpush.bf16.msra.mxu3 %v4817_v35 }
 0x424   :  { %1747 = vmatpush.bf16.msra.mxu0 %v4819_v36  ;;  %1760 = vmatpush.bf16.msra.mxu1 %v4829_v40 }
 0x425   :  { %1773 = vmatpush.bf16.msra.mxu2 %v4889_v4  ;;  %1786 = vmatpush.bf16.msra.mxu3 %v4854_v50  ;;  %v6402_v4 = vld [vmem:[#allocation34_spill] sm:$0xff] }
 0x428   :  { %1748 = vmatpush.bf16.msra.mxu0 %v4856_v52  ;;  %1761 = vmatpush.bf16.msra.mxu1 %v4868_v57 }
 0x429   :  { %1774 = vmatpush.bf16.msra.mxu2 %v4913_v18  ;;  %1787 = vmatpush.bf16.msra.mxu3 %v4893_v5  ;;  %v605_v5 = vadd.f32 %v6402_v4, %v5030_v62 }
 0x42c   :  { %1749 = vmatpush.bf16.msra.mxu0 %v4895_v6  ;;  %1762 = vmatpush.bf16.msra.mxu1 %v4904_v9 }
 0x42d   :  { %1775 = vmatpush.bf16.msra.mxu2 %v4929_v25  ;;  %1788 = vmatpush.bf16.msra.mxu3 %v4923_v21 }
 0x48b   :  { %v1493_v51 = vpop.f32.mrf.mxu0  ;;  %v1506_v55 = vpop.f32.mrf.mxu1 }
 0x48c   :  { %v1536_v60 = vadd.f32 %v1493_v51, %v547_v43  ;;  %v1537_v61 = vadd.f32 %v1506_v55, %v576_v48 }
 0x48e   :  { %v3797_v1 = vmul.f32 -1.442695, %v1536_v60  ;;  %v3798_v3 = vmul.f32 -1.442695, %v1537_v61 }
 0x490   :  { %4295 = vpow2.f32 %v3797_v1  ;;  %v3920_v1 = vld [vmem:[%s6351_s5 + $0xe0] sm:$0xf] }
 0x491   :  { %4297 = vpow2.f32 %v3798_v3  ;;  %v4171_v3 = vld [vmem:[%s6351_s5 + $0xec] sm:$0xf0] }
 0x492   :  { %v1519_v14 = vpop.f32.mrf.mxu2  ;;  %v1532_v16 = vpop.f32.mrf.mxu3 }
 0x493   :  { %v1539_v22 = vadd.f32 %v1532_v16, %v634_v12  ;;  %v1495_v23 = vpop.f32.mrf.mxu0  ;;  %v1508_v28 = vpop.f32.mrf.mxu1  ;;  %v1538_v18 = vadd.f32 %v1519_v14, %v605_v5  ;;  %v3921_v12 = vor.u32 %v4171_v3, %v3920_v1  ;;  %v3922_v14 = vld [vmem:[%s6351_s5 + $0xf0] sm:$0xf0]  ;;  %v3928_v16 = vld [vmem:[%s6351_s5 + $0xe8] sm:$0xf]  ;;  %v3904_v5 = vld [vmem:[%s6351_s5 + $0xc0] sm:$0xf] }
 0x494   :  { %v3925_v23 = vor.u32 %v4169_v11, %v3922_v14  ;;  %v4160_v1 = vld [vmem:[%s6351_s5 + $0x94] sm:$0xf0]  ;;  %v3882_v14 = vld [vmem:[%s6351_s5 + $0x98] sm:$0xf0] }
 0x495   :  { %v3799_v34 = vmul.f32 -1.442695, %v1539_v22  ;;  %v4172_v22 = vld [vmem:[%s6351_s5 + $0xf4] sm:$0xf0] }
 0x496   :  { %v4296_v35 = vpop.eup %4295  ;;  %v3929_v28 = vor.u32 %v4172_v22, %v3928_v16 }
 0x497   :  { %v4298_v36 = vpop.eup %4297  ;;  %v1543_v40 = vadd.f32 1.0, %v4296_v35  ;;  %4299 = vpow2.f32 %v3799_v34  ;;  %v4170_v34 = vld [vmem:[%s6351_s5 + $0xec] sm:$0xf]  ;;  %v3930_v35 = vld [vmem:[%s6351_s5 + $0xf8] sm:$0xf0] }
 0x498   :  { %v1562_v44 = vadd.f32 1.0, %v4298_v36 }
 0x499   :  { %4301 = vrcp.f32 %v1543_v40  ;;  %v1555_v37 = vand.u32 2147483648, %v1543_v40  ;;  %v1553_v10 = vand.u32 2147483647, %v1543_v40  ;;  %vm1549_vm15 = vweird.f32 %v1543_v40 }
 0x49a   :  { %4303 = vrcp.f32 %v1562_v44  ;;  %v1521_v50 = vpop.f32.mrf.mxu2  ;;  %v1534_v52 = vpop.f32.mrf.mxu3  ;;  %v1574_v27 = vand.u32 2147483648, %v1562_v44  ;;  %v1572_v19 = vand.u32 2147483647, %v1562_v44  ;;  %vm1568_vm0 = vweird.f32 %v1562_v44 }
 0x49b   :  { %v1556_v33 = vor.u32 1.1754944e-38, %v1555_v37  ;;  %vm1554_vm3 = vcmp.eq.f32.partialorder %v1553_v10, 8.507059e+37  ;;  %v6403_v50 = vld [vmem:[#allocation36_spill] sm:$0xff]  ;;  %v3914_v10 = vld [vmem:[%s6351_s5 + $0xd8] sm:$0xf0] }
 0x49c   :  { %v1575_v17 = vor.u32 1.1754944e-38, %v1574_v27  ;;  %vm1573_vm4 = vcmp.eq.f32.partialorder %v1572_v19, 8.507059e+37  ;;  %v4163_v19 = vld [vmem:[%s6351_s5 + $0xac] sm:$0xf0] }
 0x49d   :  { %v4300_v57 = vpop.eup %4299 }
 0x49e   :  { %v1582_v6 = vadd.f32 1.0, %v4300_v57  ;;  %v6404_v57 = vld [vmem:[#allocation37_spill] sm:$0xff] }
 0x49f   :  { %v4302_v9 = vpop.eup %4301 }
 0x4a0   :  { %v4304_v21 = vpop.eup %4303  ;;  %v1545_v25 = vmul.f32 %v4302_v9, %v1543_v40  ;;  %4305 = vrcp.f32 %v1582_v6  ;;  %vm1550_vm13 = vweird.f32 %v4302_v9  ;;  %v1594_v43 = vand.u32 2147483648, %v1582_v6 }
 0x4a1   :  { %v1564_v59 = vmul.f32 %v4304_v21, %v1562_v44  ;;  %4307 = vtanh.f32 %v1538_v18  ;;  %vm1569_vm14 = vweird.f32 %v4304_v21  ;;  %vm1551_vm1 = vmor %vm1549_vm15, %vm1550_vm13  ;;  %vm1588_vm6 = vweird.f32 %v1582_v6 }
 0x4a2   :  { %v1546_v38 = vsub.f32 1.0, %v1545_v25  ;;  %vm1570_vm2 = vmor %vm1568_vm0, %vm1569_vm14  ;;  %v1592_v47 = vand.u32 2147483647, %v1582_v6  ;;  %v1595_v51 = vor.u32 1.1754944e-38, %v1594_v43  ;;  %v3933_v44 = vor.u32 %v4170_v34, %v3930_v35  ;;  %v3912_v25 = vld [vmem:[%s6351_s5 + $0xc8] sm:$0xf] }
 0x4a3   :  { %v1565_v42 = vsub.f32 1.0, %v1564_v59  ;;  %v4168_v59 = vld [vmem:[%s6351_s5 + $0xd4] sm:$0xf0]  ;;  %v6405_v43 = vld [vmem:[#allocation40_spill] sm:$0xff] }
 0x4a4   :  { %v1547_v8 = vmul.f32 %v4302_v9, %v1546_v38  ;;  %vm1593_vm8 = vcmp.eq.f32.partialorder %v1592_v47, 8.507059e+37  ;;  %v3913_v27 = vor.u32 %v4168_v59, %v3912_v25  ;;  %v6406_v25 = vld [vmem:[#allocation38_spill] sm:$0xff] }
 0x4a5   :  { %v1566_v26 = vmul.f32 %v4304_v21, %v1565_v42 }
 0x4a6   :  { %v4306_v58 = vpop.eup %4305  ;;  %v1548_v56 = vadd.f32 %v4302_v9, %v1547_v8  ;;  %v4166_v8 = vld [vmem:[%s6351_s5 + $0xcc] sm:$0xf] }
 0x4a7   :  { %v1567_v24 = vadd.f32 %v4304_v21, %v1566_v26  ;;  %v1584_v15 = vmul.f32 %v4306_v58, %v1582_v6  ;;  %v4308_v0 = vpop.eup %4307  ;;  %vm1589_vm5 = vweird.f32 %v4306_v58  ;;  %v4167_v6 = vld [vmem:[%s6351_s5 + $0xcc] sm:$0xf0]  ;;  %v3888_v26 = vld [vmem:[%s6351_s5 + $0xa0] sm:$0xf] }
 0x4a8   :  { %v1552_v2 = vsel %vm1551_vm1, %v4302_v9, %v1548_v56  ;;  %vm1590_vm7 = vmor %vm1588_vm6, %vm1589_vm5  ;;  %v4165_v9 = vld [vmem:[%s6351_s5 + $0xc4] sm:$0xf]  ;;  %v3905_v18 = vor.u32 %v4167_v6, %v3904_v5  ;;  %v3889_v56 = vor.u32 %v4163_v19, %v3888_v26  ;;  %v4151_v26 = vld [vmem:[%s6351_s5 + $0x4c] sm:$0xf0] }
 0x4a9   :  { %v1557_v29 = vsel %vm1554_vm3, %v1556_v33, %v1552_v2  ;;  %v1571_v20 = vsel %vm1570_vm2, %v4304_v21, %v1567_v24  ;;  %v1585_v31 = vsub.f32 1.0, %v1584_v15  ;;  %v3906_v21 = vld [vmem:[%s6351_s5 + $0xd0] sm:$0xf0]  ;;  %v4161_v33 = vld [vmem:[%s6351_s5 + $0xa4] sm:$0xf] }
 0x4aa   :  { %v1576_v13 = vsel %vm1573_vm4, %v1575_v17, %v1571_v20  ;;  %v1599_v30 = vmul.f32 %v4308_v0, %v1557_v29  ;;  %v3909_v37 = vor.u32 %v4165_v9, %v3906_v21  ;;  %v3890_v24 = vld [vmem:[%s6351_s5 + $0xb0] sm:$0xf0]  ;;  %v3896_v15 = vld [vmem:[%s6351_s5 + $0xa8] sm:$0xf]  ;;  %v4164_v2 = vld [vmem:[%s6351_s5 + $0xb4] sm:$0xf0] }
 0x4ab   :  { %v1598_v41 = vmul.f32 %v1576_v13, %v5265_v53  ;;  %v1586_v7 = vmul.f32 %v4306_v58, %v1585_v31  ;;  %v3893_v17 = vor.u32 %v4161_v33, %v3890_v24  ;;  %v4162_v0 = vld [vmem:[%s6351_s5 + $0xac] sm:$0xf]  ;;  %v3898_v29 = vld [vmem:[%s6351_s5 + $0xb8] sm:$0xf0]  ;;  %v3897_v13 = vor.u32 %v4164_v2, %v3896_v15  ;;  %v3864_v9 = vld [vmem:[%s6351_s5 + $0x68] sm:$0xf] }
 0x4ac   :  { %v4149_v19 = vld [vmem:[%s6351_s5 + $0x44] sm:$0xf]  ;;  %v3842_v33 = vld [vmem:[%s6351_s5 + $0x50] sm:$0xf0]  ;;  %v3848_v24 = vld [vmem:[%s6351_s5 + $0x48] sm:$0xf] }
 0x4ad   :  { %v5313_v46 = vadd.f32 %v1599_v30, %v1598_v41  ;;  %v1587_v39 = vadd.f32 %v4306_v58, %v1586_v7  ;;  %v3901_v30 = vor.u32 %v4162_v0, %v3898_v29  ;;  %v3872_v41 = vld [vmem:[%s6351_s5 + $0x80] sm:$0xf]  ;;  %v4159_v7 = vld [vmem:[%s6351_s5 + $0x8c] sm:$0xf0]  ;;  %v4152_v15 = vld [vmem:[%s6351_s5 + $0x54] sm:$0xf0] }
 0x4ae   :  { %v4150_v0 = vld [vmem:[%s6351_s5 + $0x4c] sm:$0xf]  ;;  %v3850_v29 = vld [vmem:[%s6351_s5 + $0x58] sm:$0xf0] }
 0x4af   :  { %4309 = vtanh.f32 %v5313_v46  ;;  %v1591_v48 = vsel %vm1590_vm7, %v4306_v58, %v1587_v39  ;;  %v3917_v58 = vor.u32 %v4166_v8, %v3914_v10  ;;  %v4157_v39 = vld [vmem:[%s6351_s5 + $0x84] sm:$0xf] }
 0x4b0   :  { %v1596_v60 = vsel %vm1593_vm8, %v1595_v51, %v1591_v48 }
 0x4b5   :  { %v4310_v55 = vpop.eup %4309 }
 0x4b6   :  { %v5316_v61 = vmul.f32 %v4310_v55, %v1596_v60  ;;  %v3873_v55 = vor.u32 %v4159_v7, %v3872_v41  ;;  %v3874_v60 = vld [vmem:[%s6351_s5 + $0x90] sm:$0xf0]  ;;  %v4147_v41 = vld [vmem:[%s6351_s5 + $0x2c] sm:$0xf0] }
 0x4b7   :  { %v3877_v3 = vor.u32 %v4157_v39, %v3874_v60  ;;  %v3845_v39 = vor.u32 %v4149_v19, %v3842_v33  ;;  %v6409_v60 = vld [vmem:[#allocation39_spill] sm:$0xff] }
 0x4b8   :  { %v1612_v53 = vpack.c.bf16 %v5316_v61, %v5316_v61 }
 0x4ba   :  { %1621 = vmatmul.bf16.vlgmr.msrb.gmra.mxu0 %v1612_v53  ;;  %1634 = vmatmul.bf16.vlgmr.msrb.gmra.mxu1 %v1612_v53 }
 0x4bb   :  { %1647 = vmatmul.bf16.vlgmr.msrb.gmra.mxu2 %v1612_v53  ;;  %1660 = vmatmul.bf16.vlgmr.msrb.gmra.mxu3 %v1612_v53  ;;  %v3880_v53 = vld [vmem:[%s6351_s5 + $0x88] sm:$0xf] }
 0x4bc   :  { %2111 = vmatpush.bf16.msrb.mxu0 %v3921_v12  ;;  %2140 = vmatpush.bf16.msrb.mxu1 %v3925_v23  ;;  %v3881_v11 = vor.u32 %v4160_v1, %v3880_v53  ;;  %v4158_v12 = vld [vmem:[%s6351_s5 + $0x8c] sm:$0xf] }
 0x4bd   :  { %2169 = vmatpush.bf16.msrb.mxu2 %v3929_v28  ;;  %2198 = vmatpush.bf16.msrb.mxu3 %v3933_v44  ;;  %v3885_v23 = vor.u32 %v4158_v12, %v3882_v14  ;;  %v4148_v14 = vld [vmem:[%s6351_s5 + $0x34] sm:$0xf0] }
 0x4c0   :  { %2112 = vmatpush.bf16.msrb.mxu0 %v3905_v18  ;;  %2141 = vmatpush.bf16.msrb.mxu1 %v3909_v37  ;;  %v4156_v18 = vld [vmem:[%s6351_s5 + $0x74] sm:$0xf0]  ;;  %v3866_v37 = vld [vmem:[%s6351_s5 + $0x78] sm:$0xf0] }
 0x4c1   :  { %2170 = vmatpush.bf16.msrb.mxu2 %v3913_v27  ;;  %2199 = vmatpush.bf16.msrb.mxu3 %v3917_v58  ;;  %v3840_v27 = vld [vmem:[%s6351_s5 + $0x40] sm:$0xf] }
 0x4c4   :  { %2113 = vmatpush.bf16.msrb.mxu0 %v3889_v56  ;;  %2142 = vmatpush.bf16.msrb.mxu1 %v3893_v17  ;;  %v3841_v56 = vor.u32 %v4151_v26, %v3840_v27 }
 0x4c5   :  { %2171 = vmatpush.bf16.msrb.mxu2 %v3897_v13  ;;  %2200 = vmatpush.bf16.msrb.mxu3 %v3901_v30 }
 0x4c8   :  { %2114 = vmatpush.bf16.msrb.mxu0 %v3873_v55  ;;  %2143 = vmatpush.bf16.msrb.mxu1 %v3877_v3  ;;  %v3832_v3 = vld [vmem:[%s6351_s5 + $0x28] sm:$0xf] }
 0x4c9   :  { %2172 = vmatpush.bf16.msrb.mxu2 %v3881_v11  ;;  %2201 = vmatpush.bf16.msrb.mxu3 %v3885_v23 }
 0x537   :  { %v1622_v36 = vpop.f32.mrf.mxu0  ;;  %v1635_v40 = vpop.f32.mrf.mxu1 }
 0x538   :  { %v1665_v52 = vadd.f32 %v1622_v36, %v6403_v50  ;;  %v1666_v4 = vadd.f32 %v1635_v40, %v6404_v57  ;;  %v3856_v36 = vld [vmem:[%s6351_s5 + $0x60] sm:$0xf]  ;;  %v4155_v50 = vld [vmem:[%s6351_s5 + $0x6c] sm:$0xf0]  ;;  %v4153_v57 = vld [vmem:[%s6351_s5 + $0x64] sm:$0xf] }
 0x53a   :  { %v3800_v38 = vmul.f32 -1.442695, %v1665_v52  ;;  %v3801_v42 = vmul.f32 -1.442695, %v1666_v4  ;;  %v3857_v52 = vor.u32 %v4155_v50, %v3856_v36  ;;  %v3858_v4 = vld [vmem:[%s6351_s5 + $0x70] sm:$0xf0] }
 0x53b   :  { %v3861_v6 = vor.u32 %v4153_v57, %v3858_v4  ;;  %v4141_v50 = vld [vmem:[%s6351_s5 + $0x4] sm:$0xf] }
 0x53c   :  { %4311 = vpow2.f32 %v3800_v38  ;;  %2115 = vmatpush.bf16.msrb.mxu0 %v3857_v52  ;;  %v3865_v38 = vor.u32 %v4156_v18, %v3864_v9  ;;  %v4144_v9 = vld [vmem:[%s6351_s5 + $0x14] sm:$0xf0] }
 0x53d   :  { %4313 = vpow2.f32 %v3801_v42  ;;  %v4154_v42 = vld [vmem:[%s6351_s5 + $0x6c] sm:$0xf]  ;;  %2144 = vmatpush.bf16.msrb.mxu1 %v3861_v6  ;;  %v3816_v6 = vld [vmem:[%s6351_s5 + $0x8] sm:$0xf] }
 0x53e   :  { %v1648_v20 = vpop.f32.mrf.mxu2  ;;  %v1661_v31 = vpop.f32.mrf.mxu3  ;;  %v3869_v10 = vor.u32 %v4154_v42, %v3866_v37  ;;  %2173 = vmatpush.bf16.msrb.mxu2 %v3865_v38  ;;  %v4142_v38 = vld [vmem:[%s6351_s5 + $0xc] sm:$0xf]  ;;  %v3818_v42 = vld [vmem:[%s6351_s5 + $0x18] sm:$0xf0] }
 0x53f   :  { %v1668_v47 = vadd.f32 %v1661_v31, %v6405_v43  ;;  %v1624_v48 = vpop.f32.mrf.mxu0  ;;  %v1637_v51 = vpop.f32.mrf.mxu1  ;;  %v1667_v59 = vadd.f32 %v1648_v20, %v6406_v25  ;;  %v3824_v20 = vld [vmem:[%s6351_s5 + $0x20] sm:$0xf]  ;;  %v3849_v43 = vor.u32 %v4152_v15, %v3848_v24  ;;  %v3821_v33 = vor.u32 %v4142_v38, %v3818_v42 }
 0x540   :  { %2202 = vmatpush.bf16.msrb.mxu3 %v3869_v10  ;;  %2116 = vmatpush.bf16.msrb.mxu0 %v3841_v56  ;;  %v4145_v48 = vld [vmem:[%s6351_s5 + $0x24] sm:$0xf]  ;;  %v3826_v51 = vld [vmem:[%s6351_s5 + $0x30] sm:$0xf0]  ;;  %v3825_v1 = vor.u32 %v4147_v41, %v3824_v20  ;;  %v3817_v10 = vor.u32 %v4144_v9, %v3816_v6 }
 0x541   :  { %v3802_v16 = vmul.f32 -1.442695, %v1668_v47  ;;  %v3853_v47 = vor.u32 %v4150_v0, %v3850_v29  ;;  %2145 = vmatpush.bf16.msrb.mxu1 %v3845_v39  ;;  %v3829_v12 = vor.u32 %v4145_v48, %v3826_v51  ;;  %v1930_v39 = vld [vmem:[#allocation4] sm:$0xff]  ;;  %v1940_v48 = vpack.c.bf16 %v5316_v61, %v5268_v54  ;;  %v6410_v54 = vld [vmem:[#allocation41_spill] sm:$0xff] }
 0x542   :  { %v4312_v22 = vpop.eup %4311  ;;  %2174 = vmatpush.bf16.msrb.mxu2 %v3849_v43  ;;  %v4048_v51 = vld [vmem:[%s6352_s6 + $0xe0] sm:$0xf]  ;;  %v581_v61 = vadd.f32 %v6410_v54, %v5020_v49  ;;  %v4056_v49 = vld [vmem:[%s6352_s6 + $0xe8] sm:$0xf]  ;;  %v4034_v6 = vld [vmem:[%s6352_s6 + $0xd0] sm:$0xf0] }
 0x543   :  { %v4314_v28 = vpop.eup %4313  ;;  %v5419_v34 = vadd.f32 1.0, %v4312_v22  ;;  %4315 = vpow2.f32 %v3802_v16  ;;  %v4146_v16 = vld [vmem:[%s6351_s5 + $0x2c] sm:$0xf]  ;;  %v3834_v22 = vld [vmem:[%s6351_s5 + $0x38] sm:$0xf0]  ;;  %v6411_v38 = vld [vmem:[#allocation43_spill] sm:$0xff] }
 0x544   :  { %v5421_v35 = vadd.f32 1.0, %v4314_v28  ;;  %2203 = vmatpush.bf16.msrb.mxu3 %v3853_v47  ;;  %2117 = vmatpush.bf16.msrb.mxu0 %v3825_v1  ;;  %v3833_v28 = vor.u32 %v4148_v14, %v3832_v3  ;;  %v3837_v36 = vor.u32 %v4146_v16, %v3834_v22  ;;  %v4050_v3 = vld [vmem:[%s6352_s6 + $0xf0] sm:$0xf0]  ;;  %v639_v42 = vadd.f32 %v6411_v38, %v5032_v63 }
 0x545   :  { %4317 = vrcp.f32 %v5419_v34  ;;  %v1682_v5 = vand.u32 2147483647, %v5419_v34  ;;  %v1684_v30 = vand.u32 2147483648, %v5419_v34  ;;  %vm1678_vm13 = vweird.f32 %v5419_v34  ;;  %2146 = vmatpush.bf16.msrb.mxu1 %v3829_v12  ;;  %v4058_v12 = vld [vmem:[%s6352_s6 + $0xf8] sm:$0xf0] }
 0x546   :  { %4319 = vrcp.f32 %v5421_v35  ;;  %v1650_v40 = vpop.f32.mrf.mxu2  ;;  %v1663_v44 = vpop.f32.mrf.mxu3  ;;  %v1703_v13 = vand.u32 2147483648, %v5421_v35  ;;  %v1701_v53 = vand.u32 2147483647, %v5421_v35  ;;  %vm1697_vm12 = vweird.f32 %v5421_v35  ;;  %2175 = vmatpush.bf16.msrb.mxu2 %v3833_v28 }
 0x547   :  { %vm5500_vm9 = vcmp.eq.f32.partialorder %v1682_v5, 8.507059e+37  ;;  %v3808_v40 = vld [vmem:[%s6351_s5] sm:$0xf]  ;;  %v4143_v44 = vld [vmem:[%s6351_s5 + $0xc] sm:$0xf0]  ;;  %v1685_v25 = vor.u32 1.1754944e-38, %v1684_v30 }
 0x548   :  { %v3809_v4 = vor.u32 %v4143_v44, %v3808_v40  ;;  %v3810_v5 = vld [vmem:[%s6351_s5 + $0x10] sm:$0xf0]  ;;  %vm1702_vm0 = vcmp.eq.f32.partialorder %v1701_v53, 8.507059e+37  ;;  %2204 = vmatpush.bf16.msrb.mxu3 %v3837_v36  ;;  %v552_v53 = vadd.f32 %v6409_v60, %v5016_v45  ;;  %v4032_v44 = vld [vmem:[%s6352_s6 + $0xc0] sm:$0xf] }
 0x549   :  { %v4316_v21 = vpop.eup %4315  ;;  %v3813_v27 = vor.u32 %v4141_v50, %v3810_v5  ;;  %v4199_v50 = vld [vmem:[%s6352_s6 + $0xcc] sm:$0xf0]  ;;  %v4010_v60 = vld [vmem:[%s6352_s6 + $0x98] sm:$0xf0] }
 0x54a   :  { %v5454_v8 = vadd.f32 1.0, %v4316_v21  ;;  %v1704_v21 = vor.u32 1.1754944e-38, %v1703_v13  ;;  %2118 = vmatpush.bf16.msrb.mxu0 %v3809_v4  ;;  %2176 = vmatpush.bf16.msrb.mxu2 %v3817_v10  ;;  %v5622_v5 = vor.u32 %v4199_v50, %v4032_v44  ;;  %v4193_v10 = vld [vmem:[%s6352_s6 + $0xa4] sm:$0xf]  ;;  %v3994_v44 = vld [vmem:[%s6352_s6 + $0x78] sm:$0xf0] }
 0x54b   :  { %v5462_v58 = vpop.eup %4317  ;;  %2147 = vmatpush.bf16.msrb.mxu1 %v3813_v27  ;;  %v4195_v27 = vld [vmem:[%s6352_s6 + $0xac] sm:$0xf0]  ;;  %v6412_v50 = vld [vmem:[#allocation42_spill] sm:$0xff] }
 0x54c   :  { %v5473_v17 = vpop.eup %4319  ;;  %v1674_v2 = vmul.f32 %v5462_v58, %v5419_v34  ;;  %4321 = vrcp.f32 %v5454_v8  ;;  %vm1679_vm10 = vweird.f32 %v5462_v58  ;;  %2205 = vmatpush.bf16.msrb.mxu3 %v3821_v33  ;;  %vm1717_vm2 = vweird.f32 %v5454_v8  ;;  %v4018_v33 = vld [vmem:[%s6352_s6 + $0xb0] sm:$0xf0] }
 0x54d   :  { %v1693_v31 = vmul.f32 %v5473_v17, %v5421_v35  ;;  %4323 = vtanh.f32 %v1667_v59  ;;  %vm1698_vm11 = vweird.f32 %v5473_v17  ;;  %vm1680_vm14 = vmor %vm1678_vm13, %vm1679_vm10  ;;  %v1721_v29 = vand.u32 2147483647, %v5454_v8 }
 0x54e   :  { %v1675_v7 = vsub.f32 1.0, %v1674_v2  ;;  %vm1699_vm15 = vmor %vm1697_vm12, %vm1698_vm11 }
 0x54f   :  { %v1694_v55 = vsub.f32 1.0, %v1693_v31  ;;  %vm1722_vm4 = vcmp.eq.f32.partialorder %v1721_v29, 8.507059e+37 }
 0x550   :  { %v1676_v11 = vmul.f32 %v5462_v58, %v1675_v7  ;;  %v1931_v7 = vld [vmem:[#allocation4 + $0x8] sm:$0xff] }
 0x551   :  { %v1695_v23 = vmul.f32 %v5473_v17, %v1694_v55  ;;  %v1938_v43 = vpack.c.bf16 %v1931_v7, %v1930_v39  ;;  %v4203_v55 = vld [vmem:[%s6352_s6 + $0xec] sm:$0xf0] }
 0x552   :  { %v4322_v52 = vpop.eup %4321  ;;  %v1677_v57 = vadd.f32 %v5462_v58, %v1676_v11  ;;  %v5587_v1 = vor.u32 %v4203_v55, %v4048_v51  ;;  %v4202_v11 = vld [vmem:[%s6352_s6 + $0xec] sm:$0xf]  ;;  %v4191_v7 = vld [vmem:[%s6352_s6 + $0x8c] sm:$0xf0] }
 0x553   :  { %v4324_v18 = vpop.eup %4323  ;;  %v1696_v34 = vadd.f32 %v5473_v17, %v1695_v23  ;;  %v1713_v59 = vmul.f32 %v4322_v52, %v5454_v8  ;;  %vm1718_vm1 = vweird.f32 %v4322_v52  ;;  %v5600_v22 = vor.u32 %v4202_v11, %v4058_v12  ;;  %v4204_v23 = vld [vmem:[%s6352_s6 + $0xf4] sm:$0xf0]  ;;  %v4185_v11 = vld [vmem:[%s6352_s6 + $0x64] sm:$0xf] }
 0x554   :  { %v1681_v37 = vsel %vm1680_vm14, %v5462_v58, %v1677_v57  ;;  %vm1719_vm3 = vmor %vm1717_vm2, %vm1718_vm1  ;;  %v5609_v40 = vor.u32 %v4204_v23, %v4056_v49  ;;  %v4008_v49 = vld [vmem:[%s6352_s6 + $0x88] sm:$0xf] }
 0x555   :  { %v1686_v26 = vsel %vm5500_vm9, %v1685_v25, %v1681_v37  ;;  %v1700_v19 = vsel %vm1699_vm15, %v5473_v17, %v1696_v34  ;;  %v1714_v56 = vsub.f32 1.0, %v1713_v59  ;;  %v1723_v17 = vand.u32 2147483648, %v5454_v8  ;;  %v1932_v8 = vld [vmem:[#allocation4 + $0x10] sm:$0xff]  ;;  %v4040_v25 = vld [vmem:[%s6352_s6 + $0xc8] sm:$0xf] }
 0x556   :  { %v1705_v24 = vsel %vm1702_vm0, %v1704_v21, %v1700_v19  ;;  %v1728_v15 = vmul.f32 %v4324_v18, %v1686_v26  ;;  %v1939_v47 = vpack.c.bf16 %v5224_v32, %v1932_v8  ;;  %v4201_v32 = vld [vmem:[%s6352_s6 + $0xe4] sm:$0xf]  ;;  %v4198_v18 = vld [vmem:[%s6352_s6 + $0xcc] sm:$0xf]  ;;  %v4042_v21 = vld [vmem:[%s6352_s6 + $0xd8] sm:$0xf0] }
 0x557   :  { %v1727_v35 = vmul.f32 %v1705_v24, %v5313_v46  ;;  %v1715_v2 = vmul.f32 %v4322_v52, %v1714_v56  ;;  %v1724_v31 = vor.u32 1.1754944e-38, %v1723_v17  ;;  %v5598_v45 = vor.u32 %v4201_v32, %v4050_v3  ;;  %v4200_v59 = vld [vmem:[%s6352_s6 + $0xd4] sm:$0xf0]  ;;  %v4016_v37 = vld [vmem:[%s6352_s6 + $0xa0] sm:$0xf] }
 0x558   :  { %v5640_v34 = vor.u32 %v4198_v18, %v4042_v21  ;;  %v5657_v26 = vor.u32 %v4200_v59, %v4040_v25  ;;  %v5660_v63 = vor.u32 %v4195_v27, %v4016_v37  ;;  %v4194_v24 = vld [vmem:[%s6352_s6 + $0xac] sm:$0xf]  ;;  %v5671_v17 = vor.u32 %v4193_v10, %v4018_v33  ;;  %v4189_v8 = vld [vmem:[%s6352_s6 + $0x84] sm:$0xf]  ;;  %v4187_v3 = vld [vmem:[%s6352_s6 + $0x6c] sm:$0xf0] }
 0x559   :  { %v5561_v58 = vadd.f32 %v1728_v15, %v1727_v35  ;;  %v1716_v0 = vadd.f32 %v4322_v52, %v1715_v2  ;;  %v4026_v15 = vld [vmem:[%s6352_s6 + $0xb8] sm:$0xf0]  ;;  %v4181_v25 = vld [vmem:[%s6352_s6 + $0x44] sm:$0xf]  ;;  %v3970_v59 = vld [vmem:[%s6352_s6 + $0x50] sm:$0xf0] }
 0x55a   :  { %v5673_v29 = vor.u32 %v4194_v24, %v4026_v15  ;;  %v5773_v27 = vor.u32 %v4181_v25, %v3970_v59  ;;  %v4182_v10 = vld [vmem:[%s6352_s6 + $0x4c] sm:$0xf]  ;;  %v3992_v24 = vld [vmem:[%s6352_s6 + $0x68] sm:$0xf]  ;;  %v4188_v15 = vld [vmem:[%s6352_s6 + $0x74] sm:$0xf0] }
 0x55b   :  { %4325 = vtanh.f32 %v5561_v58  ;;  %v1720_v20 = vsel %vm1719_vm3, %v4322_v52, %v1716_v0  ;;  %v4197_v52 = vld [vmem:[%s6352_s6 + $0xc4] sm:$0xf] }
 0x55c   :  { %v1725_v13 = vsel %vm1722_vm4, %v1724_v31, %v1720_v20  ;;  %v5628_v9 = vor.u32 %v4197_v52, %v4034_v6  ;;  %v4024_v20 = vld [vmem:[%s6352_s6 + $0xa8] sm:$0xf]  ;;  %v4196_v31 = vld [vmem:[%s6352_s6 + $0xb4] sm:$0xf0]  ;;  %v610_v52 = vadd.f32 %v6412_v50, %v5030_v62  ;;  %v4183_v62 = vld [vmem:[%s6352_s6 + $0x4c] sm:$0xf0] }
 0x561   :  { %v4326_v46 = vpop.eup %4325 }
 0x562   :  { %v5567_v30 = vmul.f32 %v4326_v46, %v1725_v13  ;;  %v5683_v46 = vor.u32 %v4196_v31, %v4024_v20  ;;  %v3952_v31 = vld [vmem:[%s6352_s6 + $0x20] sm:$0xf] }
 0x564   :  { %v1741_v41 = vpack.c.bf16 %v5567_v30, %v5567_v30 }
 0x566   :  { %1750 = vmatmul.bf16.vlgmr.msra.gmra.mxu0 %v1741_v41  ;;  %1763 = vmatmul.bf16.vlgmr.msra.gmra.mxu1 %v1741_v41 }
 0x567   :  { %1776 = vmatmul.bf16.vlgmr.msra.gmra.mxu2 %v1741_v41  ;;  %1789 = vmatmul.bf16.vlgmr.msra.gmra.mxu3 %v1741_v41  ;;  %v4000_v41 = vld [vmem:[%s6352_s6 + $0x80] sm:$0xf] }
 0x568   :  { %2423 = vmatpush.bf16.msra.mxu0 %v5587_v1  ;;  %2436 = vmatpush.bf16.msra.mxu1 %v5598_v45 }
 0x569   :  { %2462 = vmatpush.bf16.msra.mxu3 %v5600_v22  ;;  %2449 = vmatpush.bf16.msra.mxu2 %v5609_v40 }
 0x56c   :  { %2424 = vmatpush.bf16.msra.mxu0 %v5622_v5  ;;  %2437 = vmatpush.bf16.msra.mxu1 %v5628_v9 }
 0x56d   :  { %2463 = vmatpush.bf16.msra.mxu3 %v5640_v34  ;;  %2450 = vmatpush.bf16.msra.mxu2 %v5657_v26 }
 0x570   :  { %2425 = vmatpush.bf16.msra.mxu0 %v5660_v63  ;;  %2438 = vmatpush.bf16.msra.mxu1 %v5671_v17 }
 0x571   :  { %2464 = vmatpush.bf16.msra.mxu3 %v5673_v29  ;;  %2451 = vmatpush.bf16.msra.mxu2 %v5683_v46 }
 0x576   :  { %2119 = vmatmul.bf16.vlgmr.msrb.gmra.mxu0 %v1938_v43  ;;  %2148 = vmatmul.bf16.vlgmr.msrb.gmra.mxu1 %v1938_v43 }
 0x577   :  { %2177 = vmatmul.bf16.vlgmr.msrb.gmra.mxu2 %v1938_v43  ;;  %2206 = vmatmul.bf16.vlgmr.msrb.gmra.mxu3 %v1938_v43  ;;  %v5693_v43 = vor.u32 %v4191_v7, %v4000_v41  ;;  %v4184_v41 = vld [vmem:[%s6352_s6 + $0x54] sm:$0xf0] }
 0x579   :  { %2426 = vmatpush.bf16.msra.mxu0 %v5693_v43 }
 0x586   :  { %2124 = vmatmul.bf16.gmra.mxu0 %v1939_v47  ;;  %2153 = vmatmul.bf16.gmra.mxu1 %v1939_v47 }
 0x587   :  { %2182 = vmatmul.bf16.gmra.mxu2 %v1939_v47  ;;  %2211 = vmatmul.bf16.gmra.mxu3 %v1939_v47  ;;  %v4002_v47 = vld [vmem:[%s6352_s6 + $0x90] sm:$0xf0] }
 0x588   :  { %v5706_v32 = vor.u32 %v4189_v8, %v4002_v47  ;;  %v5813_v8 = vor.u32 %v4188_v15, %v3992_v24  ;;  %v4179_v47 = vld [vmem:[%s6352_s6 + $0x2c] sm:$0xf0] }
 0x58a   :  { %2439 = vmatpush.bf16.msra.mxu1 %v5706_v32 }
 0x596   :  { %2129 = vmatmul.bf16.gmra.mxu0 %v1940_v48  ;;  %2158 = vmatmul.bf16.gmra.mxu1 %v1940_v48 }
 0x597   :  { %2187 = vmatmul.bf16.gmra.mxu2 %v1940_v48  ;;  %2216 = vmatmul.bf16.gmra.mxu3 %v1940_v48  ;;  %v4190_v48 = vld [vmem:[%s6352_s6 + $0x8c] sm:$0xf] }
 0x598   :  { %v5715_v54 = vor.u32 %v4190_v48, %v4010_v60  ;;  %v4177_v48 = vld [vmem:[%s6352_s6 + $0x24] sm:$0xf] }
 0x59a   :  { %2465 = vmatpush.bf16.msra.mxu3 %v5715_v54 }
 0x5e3   :  { %v1751_v14 = vpop.f32.mrf.mxu0  ;;  %v1764_v16 = vpop.f32.mrf.mxu1 }
 0x5e4   :  { %v1794_v28 = vadd.f32 %v1751_v14, %v552_v53  ;;  %v1795_v36 = vadd.f32 %v1764_v16, %v581_v61  ;;  %v3984_v61 = vld [vmem:[%s6352_s6 + $0x60] sm:$0xf]  ;;  %v3986_v16 = vld [vmem:[%s6352_s6 + $0x70] sm:$0xf0] }
 0x5e5   :  { %v5736_v23 = vor.u32 %v4187_v3, %v3984_v61  ;;  %v3954_v3 = vld [vmem:[%s6352_s6 + $0x30] sm:$0xf0] }
 0x5e6   :  { %v3803_v57 = vmul.f32 -1.442695, %v1794_v28  ;;  %v3804_v4 = vmul.f32 -1.442695, %v1795_v36  ;;  %v5738_v28 = vor.u32 %v4185_v11, %v3986_v16  ;;  %v4186_v36 = vld [vmem:[%s6352_s6 + $0x6c] sm:$0xf]  ;;  %v5846_v50 = vor.u32 %v4177_v48, %v3954_v3 }
 0x5e7   :  { %2427 = vmatpush.bf16.msra.mxu0 %v5736_v23  ;;  %v5756_v18 = vor.u32 %v4186_v36, %v3994_v44  ;;  %v3962_v16 = vld [vmem:[%s6352_s6 + $0x38] sm:$0xf0]  ;;  %v5844_v44 = vor.u32 %v4179_v47, %v3952_v31  ;;  %v4174_v31 = vld [vmem:[%s6352_s6 + $0xc] sm:$0xf] }
 0x5e8   :  { %4327 = vpow2.f32 %v3803_v57  ;;  %v4192_v57 = vld [vmem:[%s6352_s6 + $0x94] sm:$0xf0]  ;;  %2440 = vmatpush.bf16.msra.mxu1 %v5738_v28 }
 0x5e9   :  { %4329 = vpow2.f32 %v3804_v4  ;;  %v3968_v4 = vld [vmem:[%s6352_s6 + $0x40] sm:$0xf]  ;;  %v5758_v21 = vor.u32 %v4192_v57, %v4008_v49  ;;  %2466 = vmatpush.bf16.msra.mxu3 %v5756_v18  ;;  %v3960_v49 = vld [vmem:[%s6352_s6 + $0x28] sm:$0xf] }
 0x5ea   :  { %v1777_v19 = vpop.f32.mrf.mxu2  ;;  %v1790_v56 = vpop.f32.mrf.mxu3  ;;  %v5771_v37 = vor.u32 %v4183_v62, %v3968_v4  ;;  %v3936_v57 = vld [vmem:[%s6352_s6] sm:$0xf]  ;;  %v4175_v4 = vld [vmem:[%s6352_s6 + $0xc] sm:$0xf0] }
 0x5eb   :  { %v1797_v35 = vadd.f32 %v1790_v56, %v639_v42  ;;  %v1753_v2 = vpop.f32.mrf.mxu0  ;;  %v1766_v0 = vpop.f32.mrf.mxu1  ;;  %v1796_v38 = vadd.f32 %v1777_v19, %v610_v52  ;;  %v3978_v56 = vld [vmem:[%s6352_s6 + $0x58] sm:$0xf0]  ;;  %2452 = vmatpush.bf16.msra.mxu2 %v5758_v21 }
 0x5ec   :  { %v5785_v19 = vor.u32 %v4182_v10, %v3978_v56  ;;  %2428 = vmatpush.bf16.msra.mxu0 %v5771_v37  ;;  %2441 = vmatpush.bf16.msra.mxu1 %v5773_v27  ;;  %v3938_v10 = vld [vmem:[%s6352_s6 + $0x10] sm:$0xf0]  ;;  %v4180_v56 = vld [vmem:[%s6352_s6 + $0x34] sm:$0xf0] }
 0x5ed   :  { %v3805_v13 = vmul.f32 -1.442695, %v1797_v35 }
 0x5ee   :  { %v4328_v39 = vpop.eup %4327  ;;  %2467 = vmatpush.bf16.msra.mxu3 %v5785_v19 }
 0x5ef   :  { %v4330_v51 = vpop.eup %4329  ;;  %v5704_v55 = vadd.f32 1.0, %v4328_v39  ;;  %4331 = vpow2.f32 %v3805_v13  ;;  %v3976_v13 = vld [vmem:[%s6352_s6 + $0x48] sm:$0xf]  ;;  %2453 = vmatpush.bf16.msra.mxu2 %v5813_v8 }
 0x5f0   :  { %v5712_v53 = vadd.f32 1.0, %v4330_v51  ;;  %2429 = vmatpush.bf16.msra.mxu0 %v5844_v44  ;;  %2442 = vmatpush.bf16.msra.mxu1 %v5846_v50 }
 0x5f1   :  { %4333 = vrcp.f32 %v5704_v55  ;;  %v1811_v0 = vand.u32 2147483647, %v5704_v55  ;;  %v1813_v39 = vand.u32 2147483648, %v5704_v55  ;;  %vm1807_vm5 = vweird.f32 %v5704_v55 }
 0x5f2   :  { %4335 = vrcp.f32 %v5712_v53  ;;  %v1779_v12 = vpop.f32.mrf.mxu2  ;;  %v1792_v14 = vpop.f32.mrf.mxu3  ;;  %v1832_v60 = vand.u32 2147483648, %v5712_v53  ;;  %v1830_v61 = vand.u32 2147483647, %v5712_v53  ;;  %vm1826_vm8 = vweird.f32 %v5712_v53 }
 0x5f3   :  { %v5832_v12 = vor.u32 %v4184_v41, %v3976_v13  ;;  %v4178_v14 = vld [vmem:[%s6352_s6 + $0x2c] sm:$0xf]  ;;  %vm5861_vm9 = vcmp.eq.f32.partialorder %v1811_v0, 8.507059e+37  ;;  %v2120_v59 = vpop.f32.mrf.mxu0 }
 0x5f4   :  { %v5848_v52 = vor.u32 %v4178_v14, %v3962_v16  ;;  %v1833_v24 = vor.u32 1.1754944e-38, %v1832_v60  ;;  %vm1831_vm12 = vcmp.eq.f32.partialorder %v1830_v61, 8.507059e+37 }
 0x5f5   :  { %v4332_v6 = vpop.eup %4331  ;;  %2454 = vmatpush.bf16.msra.mxu2 %v5832_v12 }
 0x5f6   :  { %v5769_v42 = vadd.f32 1.0, %v4332_v6  ;;  %v4173_v6 = vld [vmem:[%s6352_s6 + $0x4] sm:$0xf]  ;;  %2468 = vmatpush.bf16.msra.mxu3 %v5848_v52 }
 0x5f7   :  { %v5781_v33 = vpop.eup %4333 }
 0x5f8   :  { %v5793_v35 = vpop.eup %4335  ;;  %v1803_v2 = vmul.f32 %v5781_v33, %v5704_v55  ;;  %4337 = vrcp.f32 %v5769_v42  ;;  %vm1808_vm7 = vweird.f32 %v5781_v33  ;;  %v3946_v55 = vld [vmem:[%s6352_s6 + $0x18] sm:$0xf0]  ;;  %vm1846_vm14 = vweird.f32 %v5769_v42 }
 0x5f9   :  { %v1822_v20 = vmul.f32 %v5793_v35, %v5712_v53  ;;  %4339 = vtanh.f32 %v1796_v38  ;;  %vm1827_vm6 = vweird.f32 %v5793_v35  ;;  %v1814_v38 = vor.u32 1.1754944e-38, %v1813_v39  ;;  %vm5875_vm10 = vmor %vm1807_vm5, %vm1808_vm7 }
 0x5fa   :  { %v1804_v7 = vsub.f32 1.0, %v1803_v2  ;;  %vm1828_vm11 = vmor %vm1826_vm8, %vm1827_vm6  ;;  %v5902_v39 = vor.u32 %v4180_v56, %v3960_v49  ;;  %v5913_v60 = vor.u32 %v4174_v31, %v3946_v55  ;;  %v2207_v56 = vpop.f32.mrf.mxu3 }
 0x5fb   :  { %v1823_v51 = vsub.f32 1.0, %v1822_v20  ;;  %v5883_v20 = vor.u32 %v4175_v4, %v3936_v57 }
 0x5fc   :  { %v1805_v11 = vmul.f32 %v5781_v33, %v1804_v7  ;;  %v5900_v7 = vor.u32 %v4173_v6, %v3938_v10  ;;  %2455 = vmatpush.bf16.msra.mxu2 %v5902_v39  ;;  %2469 = vmatpush.bf16.msra.mxu3 %v5913_v60  ;;  %v2178_v10 = vpop.f32.mrf.mxu2 }
 0x5fd   :  { %v1824_v36 = vmul.f32 %v5793_v35, %v1823_v51  ;;  %v3944_v51 = vld [vmem:[%s6352_s6 + $0x8] sm:$0xf]  ;;  %2430 = vmatpush.bf16.msra.mxu0 %v5883_v20 }
 0x5fe   :  { %v4338_v62 = vpop.eup %4337  ;;  %v1806_v25 = vadd.f32 %v5781_v33, %v1805_v11  ;;  %2443 = vmatpush.bf16.msra.mxu1 %v5900_v7 }
 0x5ff   :  { %v1825_v2 = vadd.f32 %v5793_v35, %v1824_v36  ;;  %v1842_v0 = vmul.f32 %v4338_v62, %v5769_v42  ;;  %v4340_v13 = vpop.eup %4339  ;;  %vm1847_vm13 = vweird.f32 %v4338_v62  ;;  %v1850_v36 = vand.u32 2147483647, %v5769_v42 }
 0x600   :  { %v1810_v41 = vsel %vm5875_vm10, %v5781_v33, %v1806_v25  ;;  %v4176_v33 = vld [vmem:[%s6352_s6 + $0x14] sm:$0xf0]  ;;  %2587 = vmatpush.bf16.msrb.mxu3 %v5600_v22  ;;  %vm1848_vm15 = vmor %vm1846_vm14, %vm1847_vm13 }
 0x601   :  { %v1815_v47 = vsel %vm5861_vm9, %v1814_v38, %v1810_v41  ;;  %v1829_v48 = vsel %vm1828_vm11, %v5793_v35, %v1825_v2  ;;  %v1843_v53 = vsub.f32 1.0, %v1842_v0  ;;  %v5919_v35 = vor.u32 %v4176_v33, %v3944_v51  ;;  %2548 = vmatpush.bf16.msrb.mxu0 %v5587_v1  ;;  %v2149_v38 = vpop.f32.mrf.mxu1 }
 0x602   :  { %v1834_v61 = vsel %vm1831_vm12, %v1833_v24, %v1829_v48  ;;  %v1857_v3 = vmul.f32 %v4340_v13, %v1815_v47  ;;  %2561 = vmatpush.bf16.msrb.mxu1 %v5598_v45  ;;  %vm1851_vm0 = vcmp.eq.f32.partialorder %v1850_v36, 8.507059e+37  ;;  %v6001_v24 = vpop.f32.mrf.mxu0  ;;  %v6007_v0 = vpop.f32.mrf.mxu3 }
 0x603   :  { %v1856_v11 = vmul.f32 %v1834_v61, %v5561_v58  ;;  %v1844_v14 = vmul.f32 %v4338_v62, %v1843_v53  ;;  %v1852_v58 = vand.u32 2147483648, %v5769_v42  ;;  %2456 = vmatpush.bf16.msra.mxu2 %v5919_v35 }
 0x604   :  { %2588 = vmatpush.bf16.msrb.mxu3 %v5640_v34  ;;  %v6005_v2 = vpop.f32.mrf.mxu2 }
 0x605   :  { %v1858_v16 = vadd.f32 %v1857_v3, %v1856_v11  ;;  %v1845_v49 = vadd.f32 %v4338_v62, %v1844_v14  ;;  %2549 = vmatpush.bf16.msrb.mxu0 %v5622_v5  ;;  %v1853_v4 = vor.u32 1.1754944e-38, %v1852_v58  ;;  %6418 = vst [vmem:[#allocation19_spill] sm:$0xff] %v6005_v2 }
 0x606   :  { %2562 = vmatpush.bf16.msrb.mxu1 %v5628_v9 }
 0x607   :  { %4341 = vtanh.f32 %v1858_v16  ;;  %1864 = vst [vmem:[%s6356_s10] sm:$0xff] %v1858_v16  ;;  %2574 = vmatpush.bf16.msrb.mxu2 %v5609_v40  ;;  %v1849_v57 = vsel %vm1848_vm15, %v4338_v62, %v1845_v49 }
 0x608   :  { %v1854_v25 = vsel %vm1851_vm0, %v1853_v4, %v1849_v57  ;;  %2589 = vmatpush.bf16.msrb.mxu3 %v5673_v29 }
 0x609   :  { %2550 = vmatpush.bf16.msrb.mxu0 %v5660_v63  ;;  %v6003_v15 = vpop.f32.mrf.mxu1 }
 0x60a   :  { %2563 = vmatpush.bf16.msrb.mxu1 %v5671_v17  ;;  %v6009_v31 = vpop.f32.mrf.mxu0  ;;  %v6015_v41 = vpop.f32.mrf.mxu3 }
 0x60b   :  { %2575 = vmatpush.bf16.msrb.mxu2 %v5657_v26  ;;  %6419 = vst [vmem:[#allocation20_spill] sm:$0xff] %v6009_v31 }
 0x60c   :  { %2590 = vmatpush.bf16.msrb.mxu3 %v5715_v54  ;;  %v6013_v13 = vpop.f32.mrf.mxu2  ;;  %6422 = vst [vmem:[#allocation22_spill] sm:$0xff] %v6015_v41 }
 0x60d   :  { %v4342_v6 = vpop.eup %4341  ;;  %2551 = vmatpush.bf16.msrb.mxu0 %v5693_v43  ;;  %6421 = vst [vmem:[#allocation24_spill] sm:$0xff] %v6013_v13 }
 0x60e   :  { %v1860_v42 = vmul.f32 %v4342_v6, %v1854_v25  ;;  %2564 = vmatpush.bf16.msrb.mxu1 %v5706_v32  ;;  %v1929_v25 = vld [vmem:[%s6353_s7] sm:$0xf] }
 0x60f   :  { %2576 = vmatpush.bf16.msrb.mxu2 %v5683_v46 }
 0x610   :  { %1863 = vst [vmem:[%s6355_s9] sm:$0xff] %v1860_v42  ;;  %v1941_v62 = vpack.c.bf16 %v1860_v42, %v5567_v30  ;;  %2591 = vmatpush.bf16.msrb.mxu3 %v5756_v18  ;;  %v6417_v30 = vmov 0  }
 0x611   :  { %2552 = vmatpush.bf16.msrb.mxu0 %v5736_v23  ;;  %v6011_v55 = vpop.f32.mrf.mxu1 }
 0x612   :  { %2134 = vmatmul.bf16.gmra.mxu0 %v1941_v62  ;;  %2163 = vmatmul.bf16.gmra.mxu1 %v1941_v62  ;;  %6420 = vst [vmem:[#allocation21_spill] sm:$0xff] %v6011_v55  ;;  %v6017_v47 = vpop.f32.mrf.mxu0  ;;  %v6023_v51 = vpop.f32.mrf.mxu3 }
 0x613   :  { %2192 = vmatmul.bf16.gmra.mxu2 %v1941_v62  ;;  %2221 = vmatmul.bf16.gmra.mxu3 %v1941_v62  ;;  %6423 = vst [vmem:[#allocation23_spill] sm:$0xff] %v6017_v47 }
 0x614   :  { %2577 = vmatpush.bf16.msrb.mxu2 %v5758_v21  ;;  %2565 = vmatpush.bf16.msrb.mxu1 %v5738_v28  ;;  %v6021_v53 = vpop.f32.mrf.mxu2  ;;  %6426 = vst [vmem:[#allocation26_spill] sm:$0xff] %v6023_v51 }
 0x615   :  { %2553 = vmatpush.bf16.msrb.mxu0 %v5771_v37  ;;  %2592 = vmatpush.bf16.msrb.mxu3 %v5785_v19  ;;  %6425 = vst [vmem:[#allocation27_spill] sm:$0xff] %v6021_v53 }
 0x618   :  { %2578 = vmatpush.bf16.msrb.mxu2 %v5813_v8  ;;  %2566 = vmatpush.bf16.msrb.mxu1 %v5773_v27 }
 0x619   :  { %2554 = vmatpush.bf16.msrb.mxu0 %v5844_v44  ;;  %2593 = vmatpush.bf16.msrb.mxu3 %v5848_v52  ;;  %v6019_v48 = vpop.f32.mrf.mxu1 }
 0x61a   :  { %6424 = vst [vmem:[#allocation25_spill] sm:$0xff] %v6019_v48  ;;  %v6025_v33 = vpop.f32.mrf.mxu0  ;;  %v6031_v11 = vpop.f32.mrf.mxu3 }
 0x61b   :  { %6427 = vst [vmem:[#allocation28_spill] sm:$0xff] %v6025_v33 }
 0x61c   :  { %2579 = vmatpush.bf16.msrb.mxu2 %v5832_v12  ;;  %2567 = vmatpush.bf16.msrb.mxu1 %v5846_v50  ;;  %v6029_v3 = vpop.f32.mrf.mxu2  ;;  %6430 = vst [vmem:[#allocation30_spill] sm:$0xff] %v6031_v11  ;;  %v6066_v11 = vperm.slane %v1929_v25, 3 }
 0x61d   :  { %2555 = vmatpush.bf16.msrb.mxu0 %v5883_v20  ;;  %2594 = vmatpush.bf16.msrb.mxu3 %v5913_v60  ;;  %6429 = vst [vmem:[#allocation32_spill] sm:$0xff] %v6029_v3 }
 0x620   :  { %2580 = vmatpush.bf16.msrb.mxu2 %v5902_v39  ;;  %2568 = vmatpush.bf16.msrb.mxu1 %v5900_v7 }
 0x621   :  { %v6027_v61 = vpop.f32.mrf.mxu1 }
 0x622   :  { %2431 = vmatmul.bf16.vlgmr.msra.gmra.mxu0 %v6417_v30  ;;  %2444 = vmatmul.bf16.vlgmr.msra.gmra.mxu1 %v6417_v30  ;;  %6428 = vst [vmem:[#allocation29_spill] sm:$0xff] %v6027_v61  ;;  %v6033_v14 = vpop.f32.mrf.mxu0  ;;  %v6039_v58 = vpop.f32.mrf.mxu3  ;;  %v2208_v61 = vadd.f32 %v2207_v56, %v6066_v11 }
 0x623   :  { %2457 = vmatmul.bf16.vlgmr.msra.gmra.mxu2 %v6417_v30  ;;  %2470 = vmatmul.bf16.vlgmr.msra.gmra.mxu3 %v6417_v30  ;;  %6431 = vst [vmem:[#allocation31_spill] sm:$0xff] %v6033_v14  ;;  %v6056_v30 = vperm.slane %v1929_v25, 0 }
 0x624   :  { %2581 = vmatpush.bf16.msrb.mxu2 %v5919_v35  ;;  %2673 = vmatpush.bf16.msra.mxu0 %v5587_v1  ;;  %v6037_v49 = vpop.f32.mrf.mxu2  ;;  %6434 = vst [vmem:[#allocation34_spill] sm:$0xff] %v6039_v58 }
 0x625   :  { %2686 = vmatpush.bf16.msra.mxu1 %v5598_v45  ;;  %2712 = vmatpush.bf16.msra.mxu3 %v5600_v22  ;;  %6433 = vst [vmem:[#allocation35_spill] sm:$0xff] %v6037_v49  ;;  %v6058_v49 = vperm.slane %v1929_v25, 1 }
 0x628   :  { %2699 = vmatpush.bf16.msra.mxu2 %v5609_v40  ;;  %2674 = vmatpush.bf16.msra.mxu0 %v5622_v5 }
 0x629   :  { %2687 = vmatpush.bf16.msra.mxu1 %v5628_v9  ;;  %2713 = vmatpush.bf16.msra.mxu3 %v5640_v34  ;;  %v6035_v16 = vpop.f32.mrf.mxu1 }
 0x62a   :  { %6432 = vst [vmem:[#allocation33_spill] sm:$0xff] %v6035_v16 }
 0x62c   :  { %2700 = vmatpush.bf16.msra.mxu2 %v5657_v26  ;;  %2675 = vmatpush.bf16.msra.mxu0 %v5660_v63 }
 0x62d   :  { %2688 = vmatpush.bf16.msra.mxu1 %v5671_v17  ;;  %2714 = vmatpush.bf16.msra.mxu3 %v5673_v29 }
 0x630   :  { %2701 = vmatpush.bf16.msra.mxu2 %v5683_v46  ;;  %2676 = vmatpush.bf16.msra.mxu0 %v5693_v43 }
 0x631   :  { %2689 = vmatpush.bf16.msra.mxu1 %v5706_v32  ;;  %2715 = vmatpush.bf16.msra.mxu3 %v5715_v54 }
 0x634   :  { %2702 = vmatpush.bf16.msra.mxu2 %v5758_v21  ;;  %2677 = vmatpush.bf16.msra.mxu0 %v5736_v23 }
 0x635   :  { %2690 = vmatpush.bf16.msra.mxu1 %v5738_v28  ;;  %2716 = vmatpush.bf16.msra.mxu3 %v5756_v18 }
 0x638   :  { %2703 = vmatpush.bf16.msra.mxu2 %v5813_v8  ;;  %2678 = vmatpush.bf16.msra.mxu0 %v5771_v37 }
 0x639   :  { %2691 = vmatpush.bf16.msra.mxu1 %v5773_v27  ;;  %2717 = vmatpush.bf16.msra.mxu3 %v5785_v19 }
 0x63c   :  { %2704 = vmatpush.bf16.msra.mxu2 %v5832_v12  ;;  %2679 = vmatpush.bf16.msra.mxu0 %v5844_v44 }
 0x63d   :  { %2692 = vmatpush.bf16.msra.mxu1 %v5846_v50  ;;  %2718 = vmatpush.bf16.msra.mxu3 %v5848_v52 }
 0x640   :  { %2705 = vmatpush.bf16.msra.mxu2 %v5902_v39  ;;  %2680 = vmatpush.bf16.msra.mxu0 %v5883_v20 }
 0x641   :  { %2693 = vmatpush.bf16.msra.mxu1 %v5900_v7  ;;  %2719 = vmatpush.bf16.msra.mxu3 %v5913_v60 }
 0x644   :  { %2706 = vmatpush.bf16.msra.mxu2 %v5919_v35 }
 0x68f   :  { %v6041_v36 = vpop.f32.mrf.mxu0  ;;  %v6043_v57 = vpop.f32.mrf.mxu1 }
 0x690   :  { %6435 = vst [vmem:[#allocation36_spill] sm:$0xff] %v6041_v36  ;;  %v2121_v36 = vadd.f32 %v2120_v59, %v6056_v30 }
 0x691   :  { %6436 = vst [vmem:[#allocation37_spill] sm:$0xff] %v6043_v57  ;;  %v2150_v57 = vadd.f32 %v2149_v38, %v6058_v49 }
 0x696   :  { %v6045_v4 = vpop.f32.mrf.mxu2  ;;  %v6047_v6 = vpop.f32.mrf.mxu3 }
 0x697   :  { %6437 = vst [vmem:[#allocation40_spill] sm:$0xff] %v6045_v4  ;;  %v6052_v42 = vpop.f32.mrf.mxu0  ;;  %v6054_v62 = vpop.f32.mrf.mxu1 }
 0x698   :  { %6438 = vst [vmem:[#allocation38_spill] sm:$0xff] %v6047_v6 }
 0x699   :  { %6439 = vst [vmem:[#allocation39_spill] sm:$0xff] %v6052_v42 }
 0x69a   :  { %6440 = vst [vmem:[#allocation41_spill] sm:$0xff] %v6054_v62 }
 0x69e   :  { %v6062_v58 = vpop.f32.mrf.mxu2  ;;  %v6064_v4 = vpop.f32.mrf.mxu3 }
 0x69f   :  { %6441 = vst [vmem:[#allocation43_spill] sm:$0xff] %v6062_v58  ;;  %v2432_v6 = vpop.f32.mrf.mxu0  ;;  %v2445_v16 = vpop.f32.mrf.mxu1 }
 0x6a0   :  { %6442 = vst [vmem:[#allocation42_spill] sm:$0xff] %v6064_v4  ;;  %v2475_v14 = vadd.f32 %v2432_v6, %v2121_v36  ;;  %v2476_v3 = vadd.f32 %v2445_v16, %v2150_v57  ;;  %v6069_v16 = vperm.slane %v1929_v25, 2 }
 0x6a2   :  { %v4062_v42 = vmul.f32 -1.442695, %v2475_v14  ;;  %v4063_v62 = vmul.f32 -1.442695, %v2476_v3  ;;  %6443 = vst [vmem:[#allocation44_spill] sm:$0xff] %v6069_v16  ;;  %v2179_v56 = vadd.f32 %v2178_v10, %v6069_v16 }
 0x6a4   :  { %4343 = vpow2.f32 %v4062_v42 }
 0x6a5   :  { %4345 = vpow2.f32 %v4063_v62 }
 0x6a6   :  { %v2458_v33 = vpop.f32.mrf.mxu2  ;;  %v2471_v59 = vpop.f32.mrf.mxu3 }
 0x6a7   :  { %v2478_v53 = vadd.f32 %v2471_v59, %v2208_v61  ;;  %v2434_v38 = vpop.f32.mrf.mxu0  ;;  %v2447_v51 = vpop.f32.mrf.mxu1  ;;  %v2477_v61 = vadd.f32 %v2458_v33, %v2179_v56 }
 0x6a9   :  { %v4064_v58 = vmul.f32 -1.442695, %v2478_v53 }
 0x6aa   :  { %v4344_v48 = vpop.eup %4343 }
 0x6ab   :  { %v4346_v4 = vpop.eup %4345  ;;  %v2482_v47 = vadd.f32 1.0, %v4344_v48  ;;  %4347 = vpow2.f32 %v4064_v58 }
 0x6ac   :  { %v2501_v36 = vadd.f32 1.0, %v4346_v4 }
 0x6ad   :  { %4349 = vrcp.f32 %v2482_v47  ;;  %v2494_v58 = vand.u32 2147483648, %v2482_v47  ;;  %v2492_v38 = vand.u32 2147483647, %v2482_v47  ;;  %vm2488_vm3 = vweird.f32 %v2482_v47 }
 0x6ae   :  { %4351 = vrcp.f32 %v2501_v36  ;;  %v2473_v3 = vpop.f32.mrf.mxu3  ;;  %v2460_v14 = vpop.f32.mrf.mxu2  ;;  %v2513_v4 = vand.u32 2147483648, %v2501_v36  ;;  %vm2507_vm4 = vweird.f32 %v2501_v36 }
 0x6af   :  { %v2511_v14 = vand.u32 2147483647, %v2501_v36  ;;  %v2495_v33 = vor.u32 1.1754944e-38, %v2494_v58  ;;  %vm2493_vm6 = vcmp.eq.f32.partialorder %v2492_v38, 8.507059e+37 }
 0x6b0   :  { %v2514_v41 = vor.u32 1.1754944e-38, %v2513_v4 }
 0x6b1   :  { %v4348_v57 = vpop.eup %4347  ;;  %vm2512_vm8 = vcmp.eq.f32.partialorder %v2511_v14, 8.507059e+37 }
 0x6b2   :  { %v2521_v6 = vadd.f32 1.0, %v4348_v57 }
 0x6b3   :  { %v4350_v42 = vpop.eup %4349 }
 0x6b4   :  { %v4352_v62 = vpop.eup %4351  ;;  %v2484_v51 = vmul.f32 %v4350_v42, %v2482_v47  ;;  %4353 = vrcp.f32 %v2521_v6  ;;  %vm2489_vm1 = vweird.f32 %v4350_v42  ;;  %vm2527_vm10 = vweird.f32 %v2521_v6 }
 0x6b5   :  { %v2503_v53 = vmul.f32 %v4352_v62, %v2501_v36  ;;  %4355 = vtanh.f32 %v2477_v61  ;;  %vm2508_vm2 = vweird.f32 %v4352_v62  ;;  %vm2490_vm5 = vmor %vm2488_vm3, %vm2489_vm1  ;;  %v2533_v36 = vand.u32 2147483648, %v2521_v6 }
 0x6b6   :  { %v2485_v59 = vsub.f32 1.0, %v2484_v51  ;;  %vm2509_vm7 = vmor %vm2507_vm4, %vm2508_vm2 }
 0x6b7   :  { %v2504_v48 = vsub.f32 1.0, %v2503_v53  ;;  %v2534_v4 = vor.u32 1.1754944e-38, %v2533_v36 }
 0x6b8   :  { %v2486_v25 = vmul.f32 %v4350_v42, %v2485_v59 }
 0x6b9   :  { %v2505_v3 = vmul.f32 %v4352_v62, %v2504_v48 }
 0x6ba   :  { %v4354_v13 = vpop.eup %4353  ;;  %v2487_v10 = vadd.f32 %v4350_v42, %v2486_v25 }
 0x6bb   :  { %v2506_v57 = vadd.f32 %v4352_v62, %v2505_v3  ;;  %v2523_v56 = vmul.f32 %v4354_v13, %v2521_v6  ;;  %v4356_v61 = vpop.eup %4355  ;;  %vm2528_vm9 = vweird.f32 %v4354_v13 }
 0x6bc   :  { %v2491_v51 = vsel %vm2490_vm5, %v4350_v42, %v2487_v10  ;;  %v2531_v42 = vand.u32 2147483647, %v2521_v6  ;;  %vm2529_vm11 = vmor %vm2527_vm10, %vm2528_vm9 }
 0x6bd   :  { %v2496_v53 = vsel %vm2493_vm6, %v2495_v33, %v2491_v51  ;;  %v2510_v59 = vsel %vm2509_vm7, %v4352_v62, %v2506_v57  ;;  %v2524_v55 = vsub.f32 1.0, %v2523_v56  ;;  %v2210_v33 = vadd.f32 %v6007_v0, %v6066_v11 }
 0x6be   :  { %v2515_v48 = vsel %vm2512_vm8, %v2514_v41, %v2510_v59  ;;  %v2538_v31 = vmul.f32 %v4356_v61, %v2496_v53  ;;  %vm2532_vm12 = vcmp.eq.f32.partialorder %v2531_v42, 8.507059e+37 }
 0x6bf   :  { %v2537_v2 = vmul.f32 0.0, %v2515_v48  ;;  %v2525_v16 = vmul.f32 %v4354_v13, %v2524_v55 }
 0x6c1   :  { %v6072_v25 = vadd.f32 %v2538_v31, %v2537_v2  ;;  %v2526_v47 = vadd.f32 %v4354_v13, %v2525_v16  ;;  %v2123_v2 = vadd.f32 %v6001_v24, %v6056_v30  ;;  %v2152_v31 = vadd.f32 %v6003_v15, %v6058_v49 }
 0x6c3   :  { %4357 = vtanh.f32 %v6072_v25  ;;  %v2530_v58 = vsel %vm2529_vm11, %v4354_v13, %v2526_v47 }
 0x6c4   :  { %v2535_v38 = vsel %vm2532_vm12, %v2534_v4, %v2530_v58  ;;  %v6444_v4 = vld [vmem:[#allocation44_spill] sm:$0xff] }
 0x6c9   :  { %v4358_v62 = vpop.eup %4357 }
 0x6ca   :  { %v2541_v3 = vmul.f32 %v4358_v62, %v2535_v38  ;;  %v6445_v62 = vld [vmem:[#allocation19_spill] sm:$0xff] }
 0x6cb   :  { %v2181_v0 = vadd.f32 %v6445_v62, %v6444_v4 }
 0x6cc   :  { %2542 = vst [vmem:[#allocation4] sm:$0xff] %v2541_v3  ;;  %v2547_v41 = vpack.c.bf16 %v2541_v3, %v2541_v3 }
 0x6ce   :  { %2556 = vmatmul.bf16.vlgmr.msrb.gmra.mxu0 %v2547_v41  ;;  %2569 = vmatmul.bf16.vlgmr.msrb.gmra.mxu1 %v2547_v41 }
 0x6cf   :  { %2582 = vmatmul.bf16.vlgmr.msrb.gmra.mxu2 %v2547_v41  ;;  %2595 = vmatmul.bf16.vlgmr.msrb.gmra.mxu3 %v2547_v41 }
 0x6d0   :  { %2798 = vmatpush.bf16.msrb.mxu0 %v5587_v1  ;;  %2811 = vmatpush.bf16.msrb.mxu1 %v5598_v45 }
 0x6d1   :  { %2824 = vmatpush.bf16.msrb.mxu2 %v5609_v40  ;;  %2837 = vmatpush.bf16.msrb.mxu3 %v5600_v22 }
 0x6d4   :  { %2799 = vmatpush.bf16.msrb.mxu0 %v5622_v5  ;;  %2812 = vmatpush.bf16.msrb.mxu1 %v5628_v9 }
 0x6d5   :  { %2825 = vmatpush.bf16.msrb.mxu2 %v5657_v26  ;;  %2838 = vmatpush.bf16.msrb.mxu3 %v5640_v34 }
 0x6d8   :  { %2800 = vmatpush.bf16.msrb.mxu0 %v5660_v63  ;;  %2813 = vmatpush.bf16.msrb.mxu1 %v5671_v17 }
 0x6d9   :  { %2826 = vmatpush.bf16.msrb.mxu2 %v5683_v46  ;;  %2839 = vmatpush.bf16.msrb.mxu3 %v5673_v29 }
 0x6dc   :  { %2801 = vmatpush.bf16.msrb.mxu0 %v5693_v43  ;;  %2814 = vmatpush.bf16.msrb.mxu1 %v5706_v32 }
 0x6dd   :  { %2827 = vmatpush.bf16.msrb.mxu2 %v5758_v21  ;;  %2840 = vmatpush.bf16.msrb.mxu3 %v5715_v54 }
 0x6e0   :  { %2802 = vmatpush.bf16.msrb.mxu0 %v5736_v23  ;;  %2815 = vmatpush.bf16.msrb.mxu1 %v5738_v28 }
 0x6e1   :  { %2828 = vmatpush.bf16.msrb.mxu2 %v5813_v8  ;;  %2841 = vmatpush.bf16.msrb.mxu3 %v5756_v18 }
 0x6e4   :  { %2803 = vmatpush.bf16.msrb.mxu0 %v5771_v37  ;;  %2816 = vmatpush.bf16.msrb.mxu1 %v5773_v27 }
 0x6e5   :  { %2829 = vmatpush.bf16.msrb.mxu2 %v5832_v12  ;;  %2842 = vmatpush.bf16.msrb.mxu3 %v5785_v19 }
 0x6e8   :  { %2804 = vmatpush.bf16.msrb.mxu0 %v5844_v44  ;;  %2817 = vmatpush.bf16.msrb.mxu1 %v5846_v50 }
 0x6e9   :  { %2830 = vmatpush.bf16.msrb.mxu2 %v5902_v39  ;;  %2843 = vmatpush.bf16.msrb.mxu3 %v5848_v52 }
 0x6ec   :  { %2805 = vmatpush.bf16.msrb.mxu0 %v5883_v20  ;;  %2818 = vmatpush.bf16.msrb.mxu1 %v5900_v7 }
 0x6ed   :  { %2831 = vmatpush.bf16.msrb.mxu2 %v5919_v35  ;;  %2844 = vmatpush.bf16.msrb.mxu3 %v5913_v60 }
 0x74b   :  { %v2557_v55 = vpop.f32.mrf.mxu0  ;;  %v2570_v13 = vpop.f32.mrf.mxu1 }
 0x74c   :  { %v2600_v16 = vadd.f32 %v2557_v55, %v2123_v2  ;;  %v2601_v6 = vadd.f32 %v2570_v13, %v2152_v31 }
 0x74e   :  { %v4065_v14 = vmul.f32 -1.442695, %v2600_v16  ;;  %v4066_v10 = vmul.f32 -1.442695, %v2601_v6 }
 0x750   :  { %4359 = vpow2.f32 %v4065_v14 }
 0x751   :  { %4361 = vpow2.f32 %v4066_v10 }
 0x752   :  { %v2583_v57 = vpop.f32.mrf.mxu2  ;;  %v2596_v56 = vpop.f32.mrf.mxu3 }
 0x753   :  { %v2603_v51 = vadd.f32 %v2596_v56, %v2210_v33  ;;  %v2559_v61 = vpop.f32.mrf.mxu0  ;;  %v2572_v53 = vpop.f32.mrf.mxu1  ;;  %v2602_v41 = vadd.f32 %v2583_v57, %v2181_v0 }
 0x755   :  { %v4067_v24 = vmul.f32 -1.442695, %v2603_v51 }
 0x756   :  { %v4360_v59 = vpop.eup %4359 }
 0x757   :  { %v4362_v48 = vpop.eup %4361  ;;  %v2607_v15 = vadd.f32 1.0, %v4360_v59  ;;  %4363 = vpow2.f32 %v4067_v24 }
 0x758   :  { %v2626_v47 = vadd.f32 1.0, %v4362_v48 }
 0x759   :  { %4365 = vrcp.f32 %v2607_v15  ;;  %v2619_v6 = vand.u32 2147483648, %v2607_v15  ;;  %v2617_v33 = vand.u32 2147483647, %v2607_v15  ;;  %vm2613_vm15 = vweird.f32 %v2607_v15 }
 0x75a   :  { %4367 = vrcp.f32 %v2626_v47  ;;  %v2585_v36 = vpop.f32.mrf.mxu2  ;;  %v2598_v42 = vpop.f32.mrf.mxu3  ;;  %v2638_v14 = vand.u32 2147483648, %v2626_v47  ;;  %v2636_v51 = vand.u32 2147483647, %v2626_v47  ;;  %vm2632_vm0 = vweird.f32 %v2626_v47 }
 0x75b   :  { %v2620_v57 = vor.u32 1.1754944e-38, %v2619_v6  ;;  %vm2618_vm3 = vcmp.eq.f32.partialorder %v2617_v33, 8.507059e+37 }
 0x75c   :  { %v2639_v48 = vor.u32 1.1754944e-38, %v2638_v14  ;;  %vm2637_vm4 = vcmp.eq.f32.partialorder %v2636_v51, 8.507059e+37  ;;  %v6447_v51 = vld [vmem:[#allocation21_spill] sm:$0xff] }
 0x75d   :  { %v4364_v58 = vpop.eup %4363 }
 0x75e   :  { %v2646_v38 = vadd.f32 1.0, %v4364_v58 }
 0x75f   :  { %v4366_v3 = vpop.eup %4365 }
 0x760   :  { %v4368_v2 = vpop.eup %4367  ;;  %v2609_v31 = vmul.f32 %v4366_v3, %v2607_v15  ;;  %4369 = vrcp.f32 %v2646_v38  ;;  %vm2614_vm13 = vweird.f32 %v4366_v3  ;;  %vm2652_vm6 = vweird.f32 %v2646_v38 }
 0x761   :  { %v2628_v55 = vmul.f32 %v4368_v2, %v2626_v47  ;;  %4371 = vtanh.f32 %v2602_v41  ;;  %vm2633_vm14 = vweird.f32 %v4368_v2  ;;  %vm2615_vm1 = vmor %vm2613_vm15, %vm2614_vm13 }
 0x762   :  { %v2610_v13 = vsub.f32 1.0, %v2609_v31  ;;  %vm2634_vm2 = vmor %vm2632_vm0, %vm2633_vm14 }
 0x763   :  { %v2629_v16 = vsub.f32 1.0, %v2628_v55 }
 0x764   :  { %v2611_v10 = vmul.f32 %v4366_v3, %v2610_v13 }
 0x765   :  { %v2630_v56 = vmul.f32 %v4368_v2, %v2629_v16  ;;  %v2658_v16 = vand.u32 2147483648, %v2646_v38 }
 0x766   :  { %v4370_v61 = vpop.eup %4369  ;;  %v2612_v53 = vadd.f32 %v4366_v3, %v2611_v10 }
 0x767   :  { %v2631_v24 = vadd.f32 %v4368_v2, %v2630_v56  ;;  %v2648_v59 = vmul.f32 %v4370_v61, %v2646_v38  ;;  %v4372_v42 = vpop.eup %4371  ;;  %vm2653_vm5 = vweird.f32 %v4370_v61  ;;  %v2659_v14 = vor.u32 1.1754944e-38, %v2658_v16 }
 0x768   :  { %v2616_v36 = vsel %vm2615_vm1, %v4366_v3, %v2612_v53  ;;  %v2656_v3 = vand.u32 2147483647, %v2646_v38  ;;  %vm2654_vm7 = vmor %vm2652_vm6, %vm2653_vm5 }
 0x769   :  { %v2621_v58 = vsel %vm2618_vm3, %v2620_v57, %v2616_v36  ;;  %v2635_v62 = vsel %vm2634_vm2, %v4368_v2, %v2631_v24  ;;  %v2649_v0 = vsub.f32 1.0, %v2648_v59 }
 0x76a   :  { %v2640_v41 = vsel %vm2637_vm4, %v2639_v48, %v2635_v62  ;;  %v2663_v31 = vmul.f32 %v4372_v42, %v2621_v58  ;;  %vm2657_vm8 = vcmp.eq.f32.partialorder %v2656_v3, 8.507059e+37  ;;  %v6448_v42 = vld [vmem:[#allocation22_spill] sm:$0xff] }
 0x76b   :  { %v2662_v55 = vmul.f32 %v2640_v41, %v6072_v25  ;;  %v2650_v13 = vmul.f32 %v4370_v61, %v2649_v0  ;;  %v6446_v25 = vld [vmem:[#allocation20_spill] sm:$0xff]  ;;  %v2213_v58 = vadd.f32 %v6448_v42, %v6066_v11 }
 0x76c   :  { %v2126_v38 = vadd.f32 %v6446_v25, %v6056_v30 }
 0x76d   :  { %v6116_v15 = vadd.f32 %v2663_v31, %v2662_v55  ;;  %v2651_v47 = vadd.f32 %v4370_v61, %v2650_v13 }
 0x76f   :  { %4373 = vtanh.f32 %v6116_v15  ;;  %v2655_v6 = vsel %vm2654_vm7, %v4370_v61, %v2651_v47  ;;  %v2155_v61 = vadd.f32 %v6447_v51, %v6058_v49 }
 0x770   :  { %v2660_v10 = vsel %vm2657_vm8, %v2659_v14, %v2655_v6 }
 0x775   :  { %v4374_v2 = vpop.eup %4373 }
 0x776   :  { %v2666_v33 = vmul.f32 %v4374_v2, %v2660_v10 }
 0x778   :  { %2667 = vst [vmem:[#allocation4 + $0x8] sm:$0xff] %v2666_v33  ;;  %v2672_v56 = vpack.c.bf16 %v2666_v33, %v2666_v33  ;;  %v6449_v33 = vld [vmem:[#allocation24_spill] sm:$0xff] }
 0x77a   :  { %2681 = vmatmul.bf16.vlgmr.msra.gmra.mxu0 %v2672_v56  ;;  %2694 = vmatmul.bf16.vlgmr.msra.gmra.mxu1 %v2672_v56 }
 0x77b   :  { %2707 = vmatmul.bf16.vlgmr.msra.gmra.mxu2 %v2672_v56  ;;  %2720 = vmatmul.bf16.vlgmr.msra.gmra.mxu3 %v2672_v56  ;;  %v2184_v56 = vadd.f32 %v6449_v33, %v6444_v4 }
 0x77c   :  { %2923 = vmatpush.bf16.msra.mxu0 %v5587_v1  ;;  %2936 = vmatpush.bf16.msra.mxu1 %v5598_v45 }
 0x77d   :  { %2949 = vmatpush.bf16.msra.mxu2 %v5609_v40  ;;  %2962 = vmatpush.bf16.msra.mxu3 %v5600_v22 }
 0x780   :  { %2924 = vmatpush.bf16.msra.mxu0 %v5622_v5  ;;  %2937 = vmatpush.bf16.msra.mxu1 %v5628_v9 }
 0x781   :  { %2950 = vmatpush.bf16.msra.mxu2 %v5657_v26  ;;  %2963 = vmatpush.bf16.msra.mxu3 %v5640_v34 }
 0x784   :  { %2925 = vmatpush.bf16.msra.mxu0 %v5660_v63  ;;  %2938 = vmatpush.bf16.msra.mxu1 %v5671_v17 }
 0x785   :  { %2951 = vmatpush.bf16.msra.mxu2 %v5683_v46  ;;  %2964 = vmatpush.bf16.msra.mxu3 %v5673_v29 }
 0x788   :  { %2926 = vmatpush.bf16.msra.mxu0 %v5693_v43  ;;  %2939 = vmatpush.bf16.msra.mxu1 %v5706_v32 }
 0x789   :  { %2952 = vmatpush.bf16.msra.mxu2 %v5758_v21  ;;  %2965 = vmatpush.bf16.msra.mxu3 %v5715_v54 }
 0x78c   :  { %2927 = vmatpush.bf16.msra.mxu0 %v5736_v23  ;;  %2940 = vmatpush.bf16.msra.mxu1 %v5738_v28 }
 0x78d   :  { %2953 = vmatpush.bf16.msra.mxu2 %v5813_v8  ;;  %2966 = vmatpush.bf16.msra.mxu3 %v5756_v18 }
 0x790   :  { %2928 = vmatpush.bf16.msra.mxu0 %v5771_v37  ;;  %2941 = vmatpush.bf16.msra.mxu1 %v5773_v27 }
 0x791   :  { %2954 = vmatpush.bf16.msra.mxu2 %v5832_v12  ;;  %2967 = vmatpush.bf16.msra.mxu3 %v5785_v19 }
 0x794   :  { %2929 = vmatpush.bf16.msra.mxu0 %v5844_v44  ;;  %2942 = vmatpush.bf16.msra.mxu1 %v5846_v50 }
 0x795   :  { %2955 = vmatpush.bf16.msra.mxu2 %v5902_v39  ;;  %2968 = vmatpush.bf16.msra.mxu3 %v5848_v52 }
 0x798   :  { %2930 = vmatpush.bf16.msra.mxu0 %v5883_v20  ;;  %2943 = vmatpush.bf16.msra.mxu1 %v5900_v7 }
 0x799   :  { %2956 = vmatpush.bf16.msra.mxu2 %v5919_v35  ;;  %2969 = vmatpush.bf16.msra.mxu3 %v5913_v60 }
 0x7f7   :  { %v2682_v53 = vpop.f32.mrf.mxu0  ;;  %v2695_v57 = vpop.f32.mrf.mxu1 }
 0x7f8   :  { %v2725_v24 = vadd.f32 %v2682_v53, %v2126_v38  ;;  %v2726_v59 = vadd.f32 %v2695_v57, %v2155_v61 }
 0x7fa   :  { %v4068_v48 = vmul.f32 -1.442695, %v2725_v24  ;;  %v4069_v36 = vmul.f32 -1.442695, %v2726_v59 }
 0x7fc   :  { %4375 = vpow2.f32 %v4068_v48 }
 0x7fd   :  { %4377 = vpow2.f32 %v4069_v36 }
 0x7fe   :  { %v2708_v62 = vpop.f32.mrf.mxu2  ;;  %v2721_v0 = vpop.f32.mrf.mxu3 }
 0x7ff   :  { %v2728_v41 = vadd.f32 %v2721_v0, %v2213_v58  ;;  %v2684_v31 = vpop.f32.mrf.mxu0  ;;  %v2697_v55 = vpop.f32.mrf.mxu1  ;;  %v2727_v51 = vadd.f32 %v2708_v62, %v2184_v56 }
 0x801   :  { %v4070_v13 = vmul.f32 -1.442695, %v2728_v41 }
 0x802   :  { %v4376_v47 = vpop.eup %4375 }
 0x803   :  { %v4378_v16 = vpop.eup %4377  ;;  %v2732_v3 = vadd.f32 1.0, %v4376_v47  ;;  %4379 = vpow2.f32 %v4070_v13 }
 0x804   :  { %v2751_v6 = vadd.f32 1.0, %v4378_v16 }
 0x805   :  { %4381 = vrcp.f32 %v2732_v3  ;;  %v2744_v48 = vand.u32 2147483648, %v2732_v3  ;;  %v2742_v58 = vand.u32 2147483647, %v2732_v3  ;;  %vm2738_vm11 = vweird.f32 %v2732_v3 }
 0x806   :  { %4383 = vrcp.f32 %v2751_v6  ;;  %v2710_v14 = vpop.f32.mrf.mxu2  ;;  %v2723_v2 = vpop.f32.mrf.mxu3  ;;  %v2763_v36 = vand.u32 2147483648, %v2751_v6  ;;  %v2761_v41 = vand.u32 2147483647, %v2751_v6  ;;  %vm2757_vm12 = vweird.f32 %v2751_v6 }
 0x807   :  { %v2745_v62 = vor.u32 1.1754944e-38, %v2744_v48  ;;  %vm2743_vm15 = vcmp.eq.f32.partialorder %v2742_v58, 8.507059e+37 }
 0x808   :  { %v2764_v16 = vor.u32 1.1754944e-38, %v2763_v36  ;;  %vm2762_vm0 = vcmp.eq.f32.partialorder %v2761_v41, 8.507059e+37  ;;  %v6451_v41 = vld [vmem:[#allocation25_spill] sm:$0xff] }
 0x809   :  { %v4380_v10 = vpop.eup %4379 }
 0x80a   :  { %v2771_v25 = vadd.f32 1.0, %v4380_v10 }
 0x80b   :  { %v4382_v38 = vpop.eup %4381 }
 0x80c   :  { %v4384_v61 = vpop.eup %4383  ;;  %v2734_v53 = vmul.f32 %v4382_v38, %v2732_v3  ;;  %4385 = vrcp.f32 %v2771_v25  ;;  %vm2739_vm9 = vweird.f32 %v4382_v38  ;;  %vm2777_vm2 = vweird.f32 %v2771_v25 }
 0x80d   :  { %v2753_v57 = vmul.f32 %v4384_v61, %v2751_v6  ;;  %4387 = vtanh.f32 %v2727_v51  ;;  %vm2758_vm10 = vweird.f32 %v4384_v61  ;;  %vm2740_vm13 = vmor %vm2738_vm11, %vm2739_vm9 }
 0x80e   :  { %v2735_v24 = vsub.f32 1.0, %v2734_v53  ;;  %vm2759_vm14 = vmor %vm2757_vm12, %vm2758_vm10 }
 0x80f   :  { %v2754_v59 = vsub.f32 1.0, %v2753_v57 }
 0x810   :  { %v2736_v42 = vmul.f32 %v4382_v38, %v2735_v24 }
 0x811   :  { %v2755_v0 = vmul.f32 %v4384_v61, %v2754_v59  ;;  %v2783_v59 = vand.u32 2147483648, %v2771_v25 }
 0x812   :  { %v4386_v31 = vpop.eup %4385  ;;  %v2737_v55 = vadd.f32 %v4382_v38, %v2736_v42 }
 0x813   :  { %v2756_v13 = vadd.f32 %v4384_v61, %v2755_v0  ;;  %v2773_v47 = vmul.f32 %v4386_v31, %v2771_v25  ;;  %v4388_v2 = vpop.eup %4387  ;;  %vm2778_vm1 = vweird.f32 %v4386_v31  ;;  %v2784_v36 = vor.u32 1.1754944e-38, %v2783_v59 }
 0x814   :  { %v2741_v14 = vsel %vm2740_vm13, %v4382_v38, %v2737_v55  ;;  %v2781_v38 = vand.u32 2147483647, %v2771_v25  ;;  %vm2779_vm3 = vmor %vm2777_vm2, %vm2778_vm1 }
 0x815   :  { %v2746_v10 = vsel %vm2743_vm15, %v2745_v62, %v2741_v14  ;;  %v2760_v33 = vsel %vm2759_vm14, %v4384_v61, %v2756_v13  ;;  %v2774_v56 = vsub.f32 1.0, %v2773_v47 }
 0x816   :  { %v2765_v51 = vsel %vm2762_vm0, %v2764_v16, %v2760_v33  ;;  %v2788_v53 = vmul.f32 %v4388_v2, %v2746_v10  ;;  %vm2782_vm4 = vcmp.eq.f32.partialorder %v2781_v38, 8.507059e+37  ;;  %v6452_v2 = vld [vmem:[#allocation26_spill] sm:$0xff] }
 0x817   :  { %v2787_v57 = vmul.f32 %v2765_v51, %v6116_v15  ;;  %v2775_v24 = vmul.f32 %v4386_v31, %v2774_v56  ;;  %v6450_v15 = vld [vmem:[#allocation23_spill] sm:$0xff]  ;;  %v2215_v10 = vadd.f32 %v6452_v2, %v6066_v11 }
 0x818   :  { %v2128_v25 = vadd.f32 %v6450_v15, %v6056_v30 }
 0x819   :  { %v6160_v3 = vadd.f32 %v2788_v53, %v2787_v57  ;;  %v2776_v6 = vadd.f32 %v4386_v31, %v2775_v24 }
 0x81b   :  { %4389 = vtanh.f32 %v6160_v3  ;;  %v2780_v48 = vsel %vm2779_vm3, %v4386_v31, %v2776_v6  ;;  %v2157_v31 = vadd.f32 %v6451_v41, %v6058_v49 }
 0x81c   :  { %v2785_v42 = vsel %vm2782_vm4, %v2784_v36, %v2780_v48 }
 0x821   :  { %v4390_v61 = vpop.eup %4389 }
 0x822   :  { %v2791_v58 = vmul.f32 %v4390_v61, %v2785_v42 }
 0x824   :  { %2792 = vst [vmem:[#allocation4 + $0x10] sm:$0xff] %v2791_v58  ;;  %v2797_v0 = vpack.c.bf16 %v2791_v58, %v2791_v58  ;;  %v6453_v58 = vld [vmem:[#allocation27_spill] sm:$0xff] }
 0x826   :  { %2806 = vmatmul.bf16.vlgmr.msrb.gmra.mxu0 %v2797_v0  ;;  %2819 = vmatmul.bf16.vlgmr.msrb.gmra.mxu1 %v2797_v0 }
 0x827   :  { %2832 = vmatmul.bf16.vlgmr.msrb.gmra.mxu2 %v2797_v0  ;;  %2845 = vmatmul.bf16.vlgmr.msrb.gmra.mxu3 %v2797_v0  ;;  %v2186_v0 = vadd.f32 %v6453_v58, %v6444_v4 }
 0x828   :  { %3048 = vmatpush.bf16.msrb.mxu0 %v5587_v1  ;;  %3061 = vmatpush.bf16.msrb.mxu1 %v5598_v45 }
 0x829   :  { %3074 = vmatpush.bf16.msrb.mxu2 %v5609_v40  ;;  %3087 = vmatpush.bf16.msrb.mxu3 %v5600_v22 }
 0x82c   :  { %3049 = vmatpush.bf16.msrb.mxu0 %v5622_v5  ;;  %3062 = vmatpush.bf16.msrb.mxu1 %v5628_v9 }
 0x82d   :  { %3075 = vmatpush.bf16.msrb.mxu2 %v5657_v26  ;;  %3088 = vmatpush.bf16.msrb.mxu3 %v5640_v34 }
 0x830   :  { %3050 = vmatpush.bf16.msrb.mxu0 %v5660_v63  ;;  %3063 = vmatpush.bf16.msrb.mxu1 %v5671_v17 }
 0x831   :  { %3076 = vmatpush.bf16.msrb.mxu2 %v5683_v46  ;;  %3089 = vmatpush.bf16.msrb.mxu3 %v5673_v29 }
 0x834   :  { %3051 = vmatpush.bf16.msrb.mxu0 %v5693_v43  ;;  %3064 = vmatpush.bf16.msrb.mxu1 %v5706_v32 }
 0x835   :  { %3077 = vmatpush.bf16.msrb.mxu2 %v5758_v21  ;;  %3090 = vmatpush.bf16.msrb.mxu3 %v5715_v54 }
 0x838   :  { %3052 = vmatpush.bf16.msrb.mxu0 %v5736_v23  ;;  %3065 = vmatpush.bf16.msrb.mxu1 %v5738_v28 }
 0x839   :  { %3078 = vmatpush.bf16.msrb.mxu2 %v5813_v8  ;;  %3091 = vmatpush.bf16.msrb.mxu3 %v5756_v18 }
 0x83c   :  { %3053 = vmatpush.bf16.msrb.mxu0 %v5771_v37  ;;  %3066 = vmatpush.bf16.msrb.mxu1 %v5773_v27 }
 0x83d   :  { %3079 = vmatpush.bf16.msrb.mxu2 %v5832_v12  ;;  %3092 = vmatpush.bf16.msrb.mxu3 %v5785_v19 }
 0x840   :  { %3054 = vmatpush.bf16.msrb.mxu0 %v5844_v44  ;;  %3067 = vmatpush.bf16.msrb.mxu1 %v5846_v50 }
 0x841   :  { %3080 = vmatpush.bf16.msrb.mxu2 %v5902_v39  ;;  %3093 = vmatpush.bf16.msrb.mxu3 %v5848_v52 }
 0x844   :  { %3055 = vmatpush.bf16.msrb.mxu0 %v5883_v20  ;;  %3068 = vmatpush.bf16.msrb.mxu1 %v5900_v7 }
 0x845   :  { %3081 = vmatpush.bf16.msrb.mxu2 %v5919_v35  ;;  %3094 = vmatpush.bf16.msrb.mxu3 %v5913_v60 }
 0x8a3   :  { %v2807_v55 = vpop.f32.mrf.mxu0  ;;  %v2820_v62 = vpop.f32.mrf.mxu1 }
 0x8a4   :  { %v2850_v13 = vadd.f32 %v2807_v55, %v2128_v25  ;;  %v2851_v47 = vadd.f32 %v2820_v62, %v2157_v31 }
 0x8a6   :  { %v4071_v16 = vmul.f32 -1.442695, %v2850_v13  ;;  %v4072_v14 = vmul.f32 -1.442695, %v2851_v47 }
 0x8a8   :  { %4391 = vpow2.f32 %v4071_v16 }
 0x8a9   :  { %4393 = vpow2.f32 %v4072_v14 }
 0x8aa   :  { %v2833_v33 = vpop.f32.mrf.mxu2  ;;  %v2846_v56 = vpop.f32.mrf.mxu3 }
 0x8ab   :  { %v2853_v51 = vadd.f32 %v2846_v56, %v2215_v10  ;;  %v2809_v53 = vpop.f32.mrf.mxu0  ;;  %v2822_v57 = vpop.f32.mrf.mxu1  ;;  %v2852_v41 = vadd.f32 %v2833_v33, %v2186_v0 }
 0x8ad   :  { %v4073_v24 = vmul.f32 -1.442695, %v2853_v51 }
 0x8ae   :  { %v4392_v6 = vpop.eup %4391 }
 0x8af   :  { %v4394_v59 = vpop.eup %4393  ;;  %v2857_v38 = vadd.f32 1.0, %v4392_v6  ;;  %4395 = vpow2.f32 %v4073_v24 }
 0x8b0   :  { %v2876_v48 = vadd.f32 1.0, %v4394_v59 }
 0x8b1   :  { %4397 = vrcp.f32 %v2857_v38  ;;  %v2869_v16 = vand.u32 2147483648, %v2857_v38  ;;  %v2867_v10 = vand.u32 2147483647, %v2857_v38  ;;  %vm2863_vm7 = vweird.f32 %v2857_v38 }
 0x8b2   :  { %4399 = vrcp.f32 %v2876_v48  ;;  %v2835_v36 = vpop.f32.mrf.mxu2  ;;  %v2848_v61 = vpop.f32.mrf.mxu3  ;;  %v2888_v14 = vand.u32 2147483648, %v2876_v48  ;;  %v2886_v51 = vand.u32 2147483647, %v2876_v48  ;;  %vm2882_vm8 = vweird.f32 %v2876_v48 }
 0x8b3   :  { %v2870_v33 = vor.u32 1.1754944e-38, %v2869_v16  ;;  %vm2868_vm11 = vcmp.eq.f32.partialorder %v2867_v10, 8.507059e+37 }
 0x8b4   :  { %v2889_v59 = vor.u32 1.1754944e-38, %v2888_v14  ;;  %vm2887_vm12 = vcmp.eq.f32.partialorder %v2886_v51, 8.507059e+37  ;;  %v6455_v51 = vld [vmem:[#allocation29_spill] sm:$0xff] }
 0x8b5   :  { %v4396_v42 = vpop.eup %4395 }
 0x8b6   :  { %v2896_v15 = vadd.f32 1.0, %v4396_v42 }
 0x8b7   :  { %v4398_v25 = vpop.eup %4397 }
 0x8b8   :  { %v4400_v31 = vpop.eup %4399  ;;  %v2859_v55 = vmul.f32 %v4398_v25, %v2857_v38  ;;  %4401 = vrcp.f32 %v2896_v15  ;;  %vm2864_vm5 = vweird.f32 %v4398_v25  ;;  %vm2902_vm14 = vweird.f32 %v2896_v15 }
 0x8b9   :  { %v2878_v62 = vmul.f32 %v4400_v31, %v2876_v48  ;;  %4403 = vtanh.f32 %v2852_v41  ;;  %vm2883_vm6 = vweird.f32 %v4400_v31  ;;  %vm2865_vm9 = vmor %vm2863_vm7, %vm2864_vm5 }
 0x8ba   :  { %v2860_v13 = vsub.f32 1.0, %v2859_v55  ;;  %vm2884_vm10 = vmor %vm2882_vm8, %vm2883_vm6 }
 0x8bb   :  { %v2879_v47 = vsub.f32 1.0, %v2878_v62 }
 0x8bc   :  { %v2861_v2 = vmul.f32 %v4398_v25, %v2860_v13 }
 0x8bd   :  { %v2880_v56 = vmul.f32 %v4400_v31, %v2879_v47  ;;  %v2908_v47 = vand.u32 2147483648, %v2896_v15 }
 0x8be   :  { %v4402_v53 = vpop.eup %4401  ;;  %v2862_v57 = vadd.f32 %v4398_v25, %v2861_v2 }
 0x8bf   :  { %v2881_v24 = vadd.f32 %v4400_v31, %v2880_v56  ;;  %v2898_v6 = vmul.f32 %v4402_v53, %v2896_v15  ;;  %v4404_v61 = vpop.eup %4403  ;;  %vm2903_vm13 = vweird.f32 %v4402_v53  ;;  %v2909_v14 = vor.u32 1.1754944e-38, %v2908_v47 }
 0x8c0   :  { %v2866_v36 = vsel %vm2865_vm9, %v4398_v25, %v2862_v57  ;;  %v2906_v25 = vand.u32 2147483647, %v2896_v15  ;;  %vm2904_vm15 = vmor %vm2902_vm14, %vm2903_vm13 }
 0x8c1   :  { %v2871_v42 = vsel %vm2868_vm11, %v2870_v33, %v2866_v36  ;;  %v2885_v58 = vsel %vm2884_vm10, %v4400_v31, %v2881_v24  ;;  %v2899_v0 = vsub.f32 1.0, %v2898_v6 }
 0x8c2   :  { %v2890_v41 = vsel %vm2887_vm12, %v2889_v59, %v2885_v58  ;;  %v2913_v55 = vmul.f32 %v4404_v61, %v2871_v42  ;;  %vm2907_vm0 = vcmp.eq.f32.partialorder %v2906_v25, 8.507059e+37  ;;  %v6456_v61 = vld [vmem:[#allocation30_spill] sm:$0xff] }
 0x8c3   :  { %v2912_v62 = vmul.f32 %v2890_v41, %v6160_v3  ;;  %v2900_v13 = vmul.f32 %v4402_v53, %v2899_v0  ;;  %v6454_v3 = vld [vmem:[#allocation28_spill] sm:$0xff]  ;;  %v2218_v42 = vadd.f32 %v6456_v61, %v6066_v11 }
 0x8c4   :  { %v2131_v15 = vadd.f32 %v6454_v3, %v6056_v30 }
 0x8c5   :  { %v6204_v38 = vadd.f32 %v2913_v55, %v2912_v62  ;;  %v2901_v48 = vadd.f32 %v4402_v53, %v2900_v13 }
 0x8c7   :  { %4405 = vtanh.f32 %v6204_v38  ;;  %v2905_v16 = vsel %vm2904_vm15, %v4402_v53, %v2901_v48  ;;  %v2160_v53 = vadd.f32 %v6455_v51, %v6058_v49 }
 0x8c8   :  { %v2910_v2 = vsel %vm2907_vm0, %v2909_v14, %v2905_v16 }
 0x8cd   :  { %v4406_v31 = vpop.eup %4405 }
 0x8ce   :  { %v2916_v10 = vmul.f32 %v4406_v31, %v2910_v2 }
 0x8d0   :  { %2917 = vst [vmem:[#allocation4 + $0x18] sm:$0xff] %v2916_v10  ;;  %v2922_v56 = vpack.c.bf16 %v2916_v10, %v2916_v10  ;;  %v6457_v10 = vld [vmem:[#allocation32_spill] sm:$0xff] }
 0x8d2   :  { %2931 = vmatmul.bf16.vlgmr.msra.gmra.mxu0 %v2922_v56  ;;  %2944 = vmatmul.bf16.vlgmr.msra.gmra.mxu1 %v2922_v56 }
 0x8d3   :  { %2957 = vmatmul.bf16.vlgmr.msra.gmra.mxu2 %v2922_v56  ;;  %2970 = vmatmul.bf16.vlgmr.msra.gmra.mxu3 %v2922_v56  ;;  %v2189_v56 = vadd.f32 %v6457_v10, %v6444_v4 }
 0x8d4   :  { %3173 = vmatpush.bf16.msra.mxu0 %v5587_v1  ;;  %3186 = vmatpush.bf16.msra.mxu1 %v5598_v45 }
 0x8d5   :  { %3199 = vmatpush.bf16.msra.mxu2 %v5609_v40  ;;  %3212 = vmatpush.bf16.msra.mxu3 %v5600_v22 }
 0x8d8   :  { %3174 = vmatpush.bf16.msra.mxu0 %v5622_v5  ;;  %3187 = vmatpush.bf16.msra.mxu1 %v5628_v9 }
 0x8d9   :  { %3200 = vmatpush.bf16.msra.mxu2 %v5657_v26  ;;  %3213 = vmatpush.bf16.msra.mxu3 %v5640_v34 }
 0x8dc   :  { %3175 = vmatpush.bf16.msra.mxu0 %v5660_v63  ;;  %3188 = vmatpush.bf16.msra.mxu1 %v5671_v17 }
 0x8dd   :  { %3201 = vmatpush.bf16.msra.mxu2 %v5683_v46  ;;  %3214 = vmatpush.bf16.msra.mxu3 %v5673_v29 }
 0x8e0   :  { %3176 = vmatpush.bf16.msra.mxu0 %v5693_v43  ;;  %3189 = vmatpush.bf16.msra.mxu1 %v5706_v32 }
 0x8e1   :  { %3202 = vmatpush.bf16.msra.mxu2 %v5758_v21  ;;  %3215 = vmatpush.bf16.msra.mxu3 %v5715_v54 }
 0x8e4   :  { %3177 = vmatpush.bf16.msra.mxu0 %v5736_v23  ;;  %3190 = vmatpush.bf16.msra.mxu1 %v5738_v28 }
 0x8e5   :  { %3203 = vmatpush.bf16.msra.mxu2 %v5813_v8  ;;  %3216 = vmatpush.bf16.msra.mxu3 %v5756_v18 }
 0x8e8   :  { %3178 = vmatpush.bf16.msra.mxu0 %v5771_v37  ;;  %3191 = vmatpush.bf16.msra.mxu1 %v5773_v27 }
 0x8e9   :  { %3204 = vmatpush.bf16.msra.mxu2 %v5832_v12  ;;  %3217 = vmatpush.bf16.msra.mxu3 %v5785_v19 }
 0x8ec   :  { %3179 = vmatpush.bf16.msra.mxu0 %v5844_v44  ;;  %3192 = vmatpush.bf16.msra.mxu1 %v5846_v50 }
 0x8ed   :  { %3205 = vmatpush.bf16.msra.mxu2 %v5902_v39  ;;  %3218 = vmatpush.bf16.msra.mxu3 %v5848_v52 }
 0x8f0   :  { %3180 = vmatpush.bf16.msra.mxu0 %v5883_v20  ;;  %3193 = vmatpush.bf16.msra.mxu1 %v5900_v7 }
 0x8f1   :  { %3206 = vmatpush.bf16.msra.mxu2 %v5919_v35  ;;  %3219 = vmatpush.bf16.msra.mxu3 %v5913_v60 }
 0x94f   :  { %v2932_v57 = vpop.f32.mrf.mxu0  ;;  %v2945_v33 = vpop.f32.mrf.mxu1 }
 0x950   :  { %v2975_v24 = vadd.f32 %v2932_v57, %v2131_v15  ;;  %v2976_v6 = vadd.f32 %v2945_v33, %v2160_v53 }
 0x952   :  { %v4074_v59 = vmul.f32 -1.442695, %v2975_v24  ;;  %v4075_v36 = vmul.f32 -1.442695, %v2976_v6 }
 0x954   :  { %4407 = vpow2.f32 %v4074_v59 }
 0x955   :  { %4409 = vpow2.f32 %v4075_v36 }
 0x956   :  { %v2958_v58 = vpop.f32.mrf.mxu2  ;;  %v2971_v0 = vpop.f32.mrf.mxu3 }
 0x957   :  { %v2978_v41 = vadd.f32 %v2971_v0, %v2218_v42  ;;  %v2934_v55 = vpop.f32.mrf.mxu0  ;;  %v2947_v62 = vpop.f32.mrf.mxu1  ;;  %v2977_v51 = vadd.f32 %v2958_v58, %v2189_v56 }
 0x959   :  { %v4076_v13 = vmul.f32 -1.442695, %v2978_v41 }
 0x95a   :  { %v4408_v48 = vpop.eup %4407 }
 0x95b   :  { %v4410_v47 = vpop.eup %4409  ;;  %v2982_v25 = vadd.f32 1.0, %v4408_v48  ;;  %4411 = vpow2.f32 %v4076_v13 }
 0x95c   :  { %v3001_v16 = vadd.f32 1.0, %v4410_v47 }
 0x95d   :  { %4413 = vrcp.f32 %v2982_v25  ;;  %v2994_v59 = vand.u32 2147483648, %v2982_v25  ;;  %v2992_v42 = vand.u32 2147483647, %v2982_v25  ;;  %vm2988_vm3 = vweird.f32 %v2982_v25 }
 0x95e   :  { %4415 = vrcp.f32 %v3001_v16  ;;  %v2960_v14 = vpop.f32.mrf.mxu2  ;;  %v2973_v31 = vpop.f32.mrf.mxu3  ;;  %v3013_v36 = vand.u32 2147483648, %v3001_v16  ;;  %v3011_v41 = vand.u32 2147483647, %v3001_v16  ;;  %vm3007_vm4 = vweird.f32 %v3001_v16 }
 0x95f   :  { %v2995_v58 = vor.u32 1.1754944e-38, %v2994_v59  ;;  %vm2993_vm7 = vcmp.eq.f32.partialorder %v2992_v42, 8.507059e+37 }
 0x960   :  { %v3014_v47 = vor.u32 1.1754944e-38, %v3013_v36  ;;  %vm3012_vm8 = vcmp.eq.f32.partialorder %v3011_v41, 8.507059e+37 }
 0x961   :  { %v4412_v2 = vpop.eup %4411 }
 0x962   :  { %v3021_v3 = vadd.f32 1.0, %v4412_v2 }
 0x963   :  { %v4414_v15 = vpop.eup %4413 }
 0x964   :  { %v4416_v53 = vpop.eup %4415  ;;  %v2984_v57 = vmul.f32 %v4414_v15, %v2982_v25  ;;  %4417 = vrcp.f32 %v3021_v3  ;;  %vm2989_vm1 = vweird.f32 %v4414_v15  ;;  %vm3027_vm10 = vweird.f32 %v3021_v3 }
 0x965   :  { %v3003_v33 = vmul.f32 %v4416_v53, %v3001_v16  ;;  %4419 = vtanh.f32 %v2977_v51  ;;  %vm3008_vm2 = vweird.f32 %v4416_v53  ;;  %vm2990_vm5 = vmor %vm2988_vm3, %vm2989_vm1 }
 0x966   :  { %v2985_v24 = vsub.f32 1.0, %v2984_v57  ;;  %vm3009_vm6 = vmor %vm3007_vm4, %vm3008_vm2 }
 0x967   :  { %v3004_v6 = vsub.f32 1.0, %v3003_v33 }
 0x968   :  { %v2986_v61 = vmul.f32 %v4414_v15, %v2985_v24 }
 0x969   :  { %v3005_v0 = vmul.f32 %v4416_v53, %v3004_v6  ;;  %v3033_v6 = vand.u32 2147483648, %v3021_v3 }
 0x96a   :  { %v4418_v55 = vpop.eup %4417  ;;  %v2987_v62 = vadd.f32 %v4414_v15, %v2986_v61 }
 0x96b   :  { %v3006_v13 = vadd.f32 %v4416_v53, %v3005_v0  ;;  %v3023_v48 = vmul.f32 %v4418_v55, %v3021_v3  ;;  %v4420_v31 = vpop.eup %4419  ;;  %vm3028_vm9 = vweird.f32 %v4418_v55  ;;  %v3034_v36 = vor.u32 1.1754944e-38, %v3033_v6 }
 0x96c   :  { %v2991_v14 = vsel %vm2990_vm5, %v4414_v15, %v2987_v62  ;;  %v3031_v15 = vand.u32 2147483647, %v3021_v3  ;;  %vm3029_vm11 = vmor %vm3027_vm10, %vm3028_vm9 }
 0x96d   :  { %v2996_v2 = vsel %vm2993_vm7, %v2995_v58, %v2991_v14  ;;  %v3010_v10 = vsel %vm3009_vm6, %v4416_v53, %v3006_v13  ;;  %v3024_v56 = vsub.f32 1.0, %v3023_v48 }
 0x96e   :  { %v3015_v51 = vsel %vm3012_vm8, %v3014_v47, %v3010_v10  ;;  %v3038_v57 = vmul.f32 %v4420_v31, %v2996_v2  ;;  %vm3032_vm12 = vcmp.eq.f32.partialorder %v3031_v15, 8.507059e+37 }
 0x96f   :  { %v3037_v33 = vmul.f32 %v3015_v51, %v6204_v38  ;;  %v3025_v24 = vmul.f32 %v4418_v55, %v3024_v56 }
 0x971   :  { %v6248_v25 = vadd.f32 %v3038_v57, %v3037_v33  ;;  %v3026_v16 = vadd.f32 %v4418_v55, %v3025_v24 }
 0x973   :  { %4421 = vtanh.f32 %v6248_v25  ;;  %v3030_v59 = vsel %vm3029_vm11, %v4418_v55, %v3026_v16 }
 0x974   :  { %v3035_v61 = vsel %vm3032_vm12, %v3034_v36, %v3030_v59 }
 0x979   :  { %v4422_v53 = vpop.eup %4421 }
 0x97a   :  { %v3041_v42 = vmul.f32 %v4422_v53, %v3035_v61 }
 0x97c   :  { %3042 = vst [vmem:[#allocation4 + $0x20] sm:$0xff] %v3041_v42  ;;  %v3047_v0 = vpack.c.bf16 %v3041_v42, %v3041_v42 }
 0x97e   :  { %3056 = vmatmul.bf16.vlgmr.msrb.gmra.mxu0 %v3047_v0  ;;  %3069 = vmatmul.bf16.vlgmr.msrb.gmra.mxu1 %v3047_v0 }
 0x97f   :  { %3082 = vmatmul.bf16.vlgmr.msrb.gmra.mxu2 %v3047_v0  ;;  %3095 = vmatmul.bf16.vlgmr.msrb.gmra.mxu3 %v3047_v0 }
 0x980   :  { %3298 = vmatpush.bf16.msrb.mxu0 %v5587_v1  ;;  %3311 = vmatpush.bf16.msrb.mxu1 %v5598_v45  ;;  %v6458_v1 = vld [vmem:[#allocation31_spill] sm:$0xff] }
 0x981   :  { %3324 = vmatpush.bf16.msrb.mxu2 %v5609_v40  ;;  %3337 = vmatpush.bf16.msrb.mxu3 %v5600_v22  ;;  %v2133_v45 = vadd.f32 %v6458_v1, %v6056_v30  ;;  %v6459_v22 = vld [vmem:[#allocation33_spill] sm:$0xff] }
 0x982   :  { %v2162_v40 = vadd.f32 %v6459_v22, %v6058_v49 }
 0x984   :  { %3299 = vmatpush.bf16.msrb.mxu0 %v5622_v5  ;;  %3312 = vmatpush.bf16.msrb.mxu1 %v5628_v9 }
 0x985   :  { %3325 = vmatpush.bf16.msrb.mxu2 %v5657_v26  ;;  %3338 = vmatpush.bf16.msrb.mxu3 %v5640_v34 }
 0x988   :  { %3300 = vmatpush.bf16.msrb.mxu0 %v5660_v63  ;;  %3313 = vmatpush.bf16.msrb.mxu1 %v5671_v17 }
 0x989   :  { %3326 = vmatpush.bf16.msrb.mxu2 %v5683_v46  ;;  %3339 = vmatpush.bf16.msrb.mxu3 %v5673_v29  ;;  %v6460_v29 = vld [vmem:[#allocation34_spill] sm:$0xff] }
 0x98a   :  { %v2220_v46 = vadd.f32 %v6460_v29, %v6066_v11 }
 0x98c   :  { %3301 = vmatpush.bf16.msrb.mxu0 %v5693_v43  ;;  %3314 = vmatpush.bf16.msrb.mxu1 %v5706_v32 }
 0x98d   :  { %3327 = vmatpush.bf16.msrb.mxu2 %v5758_v21  ;;  %3340 = vmatpush.bf16.msrb.mxu3 %v5715_v54 }
 0x990   :  { %3302 = vmatpush.bf16.msrb.mxu0 %v5736_v23  ;;  %3315 = vmatpush.bf16.msrb.mxu1 %v5738_v28 }
 0x991   :  { %3328 = vmatpush.bf16.msrb.mxu2 %v5813_v8  ;;  %3341 = vmatpush.bf16.msrb.mxu3 %v5756_v18 }
 0x994   :  { %3303 = vmatpush.bf16.msrb.mxu0 %v5771_v37  ;;  %3316 = vmatpush.bf16.msrb.mxu1 %v5773_v27 }
 0x995   :  { %3329 = vmatpush.bf16.msrb.mxu2 %v5832_v12  ;;  %3342 = vmatpush.bf16.msrb.mxu3 %v5785_v19 }
 0x998   :  { %3304 = vmatpush.bf16.msrb.mxu0 %v5844_v44  ;;  %3317 = vmatpush.bf16.msrb.mxu1 %v5846_v50  ;;  %v6461_v50 = vld [vmem:[#allocation35_spill] sm:$0xff] }
 0x999   :  { %3330 = vmatpush.bf16.msrb.mxu2 %v5902_v39  ;;  %3343 = vmatpush.bf16.msrb.mxu3 %v5848_v52  ;;  %v2191_v52 = vadd.f32 %v6461_v50, %v6444_v4 }
 0x99c   :  { %3305 = vmatpush.bf16.msrb.mxu0 %v5883_v20  ;;  %3318 = vmatpush.bf16.msrb.mxu1 %v5900_v7 }
 0x99d   :  { %3331 = vmatpush.bf16.msrb.mxu2 %v5919_v35  ;;  %3344 = vmatpush.bf16.msrb.mxu3 %v5913_v60 }
 0x9fb   :  { %v3057_v5 = vpop.f32.mrf.mxu0  ;;  %v3070_v9 = vpop.f32.mrf.mxu1 }
 0x9fc   :  { %v3100_v34 = vadd.f32 %v3057_v5, %v2133_v45  ;;  %v3101_v26 = vadd.f32 %v3070_v9, %v2162_v40 }
 0x9fe   :  { %v4077_v63 = vmul.f32 -1.442695, %v3100_v34  ;;  %v4078_v17 = vmul.f32 -1.442695, %v3101_v26 }
 0xa00   :  { %4423 = vpow2.f32 %v4077_v63  ;;  %v6463_v63 = vld [vmem:[#allocation37_spill] sm:$0xff] }
 0xa01   :  { %4425 = vpow2.f32 %v4078_v17  ;;  %v2165_v17 = vadd.f32 %v6463_v63, %v6058_v49 }
 0xa02   :  { %v3083_v43 = vpop.f32.mrf.mxu2  ;;  %v3096_v32 = vpop.f32.mrf.mxu3 }
 0xa03   :  { %v3103_v54 = vadd.f32 %v3096_v32, %v2220_v46  ;;  %v3059_v23 = vpop.f32.mrf.mxu0  ;;  %v3072_v28 = vpop.f32.mrf.mxu1  ;;  %v3102_v39 = vadd.f32 %v3083_v43, %v2191_v52 }
 0xa04   :  { %v6464_v28 = vld [vmem:[#allocation38_spill] sm:$0xff] }
 0xa05   :  { %v4079_v18 = vmul.f32 -1.442695, %v3103_v54 }
 0xa06   :  { %v4424_v21 = vpop.eup %4423 }
 0xa07   :  { %v4426_v37 = vpop.eup %4425  ;;  %v3107_v27 = vadd.f32 1.0, %v4424_v21  ;;  %4427 = vpow2.f32 %v4079_v18  ;;  %v2223_v18 = vadd.f32 %v6464_v28, %v6066_v11 }
 0xa08   :  { %v3126_v19 = vadd.f32 1.0, %v4426_v37 }
 0xa09   :  { %4429 = vrcp.f32 %v3107_v27  ;;  %v3119_v55 = vand.u32 2147483648, %v3107_v27  ;;  %v3117_v13 = vand.u32 2147483647, %v3107_v27  ;;  %vm3113_vm15 = vweird.f32 %v3107_v27 }
 0xa0a   :  { %4431 = vrcp.f32 %v3126_v19  ;;  %v3085_v8 = vpop.f32.mrf.mxu2  ;;  %v3098_v12 = vpop.f32.mrf.mxu3  ;;  %v3138_v62 = vand.u32 2147483648, %v3126_v19  ;;  %v3136_v47 = vand.u32 2147483647, %v3126_v19  ;;  %vm3132_vm0 = vweird.f32 %v3126_v19 }
 0xa0b   :  { %v3120_v2 = vor.u32 1.1754944e-38, %v3119_v55  ;;  %vm3118_vm3 = vcmp.eq.f32.partialorder %v3117_v13, 8.507059e+37 }
 0xa0c   :  { %v3139_v51 = vor.u32 1.1754944e-38, %v3138_v62  ;;  %vm3137_vm4 = vcmp.eq.f32.partialorder %v3136_v47, 8.507059e+37 }
 0xa0d   :  { %v4428_v44 = vpop.eup %4427 }
 0xa0e   :  { %v3146_v20 = vadd.f32 1.0, %v4428_v44 }
 0xa0f   :  { %v4430_v7 = vpop.eup %4429 }
 0xa10   :  { %v4432_v60 = vpop.eup %4431  ;;  %v3109_v35 = vmul.f32 %v4430_v7, %v3107_v27  ;;  %4433 = vrcp.f32 %v3146_v20  ;;  %vm3114_vm13 = vweird.f32 %v4430_v7  ;;  %v3158_v0 = vand.u32 2147483648, %v3146_v20 }
 0xa11   :  { %v3128_v38 = vmul.f32 %v4432_v60, %v3126_v19  ;;  %4435 = vtanh.f32 %v3102_v39  ;;  %vm3133_vm14 = vweird.f32 %v4432_v60  ;;  %vm3115_vm1 = vmor %vm3113_vm15, %vm3114_vm13  ;;  %vm3152_vm6 = vweird.f32 %v3146_v20 }
 0xa12   :  { %v3110_v3 = vsub.f32 1.0, %v3109_v35  ;;  %vm3134_vm2 = vmor %vm3132_vm0, %vm3133_vm14  ;;  %v3156_v1 = vand.u32 2147483647, %v3146_v20  ;;  %v3159_v22 = vor.u32 1.1754944e-38, %v3158_v0  ;;  %v6465_v35 = vld [vmem:[#allocation40_spill] sm:$0xff] }
 0xa13   :  { %v3129_v41 = vsub.f32 1.0, %v3128_v38  ;;  %v2194_v38 = vadd.f32 %v6465_v35, %v6444_v4 }
 0xa14   :  { %v3111_v58 = vmul.f32 %v4430_v7, %v3110_v3  ;;  %vm3157_vm8 = vcmp.eq.f32.partialorder %v3156_v1, 8.507059e+37 }
 0xa15   :  { %v3130_v48 = vmul.f32 %v4432_v60, %v3129_v41 }
 0xa16   :  { %v4434_v14 = vpop.eup %4433  ;;  %v3112_v31 = vadd.f32 %v4430_v7, %v3111_v58 }
 0xa17   :  { %v3131_v10 = vadd.f32 %v4432_v60, %v3130_v48  ;;  %v3148_v56 = vmul.f32 %v4434_v14, %v3146_v20  ;;  %v4436_v33 = vpop.eup %4435  ;;  %vm3153_vm5 = vweird.f32 %v4434_v14 }
 0xa18   :  { %v3116_v57 = vsel %vm3115_vm1, %v4430_v7, %v3112_v31  ;;  %vm3154_vm7 = vmor %vm3152_vm6, %vm3153_vm5 }
 0xa19   :  { %v3121_v24 = vsel %vm3118_vm3, %v3120_v2, %v3116_v57  ;;  %v3135_v16 = vsel %vm3134_vm2, %v4432_v60, %v3131_v10  ;;  %v3149_v6 = vsub.f32 1.0, %v3148_v56 }
 0xa1a   :  { %v3140_v15 = vsel %vm3137_vm4, %v3139_v51, %v3135_v16  ;;  %v3163_v59 = vmul.f32 %v4436_v33, %v3121_v24 }
 0xa1b   :  { %v3162_v36 = vmul.f32 %v3140_v15, %v6248_v25  ;;  %v3150_v53 = vmul.f32 %v4434_v14, %v3149_v6  ;;  %v6462_v25 = vld [vmem:[#allocation36_spill] sm:$0xff] }
 0xa1c   :  { %v2136_v26 = vadd.f32 %v6462_v25, %v6056_v30 }
 0xa1d   :  { %v6292_v61 = vadd.f32 %v3163_v59, %v3162_v36  ;;  %v3151_v42 = vadd.f32 %v4434_v14, %v3150_v53 }
 0xa1f   :  { %4437 = vtanh.f32 %v6292_v61  ;;  %v3155_v45 = vsel %vm3154_vm7, %v4434_v14, %v3151_v42 }
 0xa20   :  { %v3160_v5 = vsel %vm3157_vm8, %v3159_v22, %v3155_v45 }
 0xa25   :  { %v4438_v40 = vpop.eup %4437 }
 0xa26   :  { %v3166_v9 = vmul.f32 %v4438_v40, %v3160_v5 }
 0xa28   :  { %3167 = vst [vmem:[#allocation4 + $0x28] sm:$0xff] %v3166_v9  ;;  %v3172_v34 = vpack.c.bf16 %v3166_v9, %v3166_v9 }
 0xa2a   :  { %3181 = vmatmul.bf16.vlgmr.msra.gmra.mxu0 %v3172_v34  ;;  %3194 = vmatmul.bf16.vlgmr.msra.gmra.mxu1 %v3172_v34 }
 0xa2b   :  { %3207 = vmatmul.bf16.vlgmr.msra.gmra.mxu2 %v3172_v34  ;;  %3220 = vmatmul.bf16.vlgmr.msra.gmra.mxu3 %v3172_v34 }
 0xaa7   :  { %v3182_v29 = vpop.f32.mrf.mxu0  ;;  %v3195_v46 = vpop.f32.mrf.mxu1 }
 0xaa8   :  { %v3225_v43 = vadd.f32 %v3182_v29, %v2136_v26  ;;  %v3226_v32 = vadd.f32 %v3195_v46, %v2165_v17 }
 0xaaa   :  { %v4080_v54 = vmul.f32 -1.442695, %v3225_v43  ;;  %v4081_v23 = vmul.f32 -1.442695, %v3226_v32 }
 0xaac   :  { %4439 = vpow2.f32 %v4080_v54  ;;  %v6467_v54 = vld [vmem:[#allocation41_spill] sm:$0xff] }
 0xaad   :  { %4441 = vpow2.f32 %v4081_v23  ;;  %v2167_v23 = vadd.f32 %v6467_v54, %v6058_v49  ;;  %v3425_v54 = vld [vmem:[#allocation4 + $0x1] ss:$8 sm:$0xf] }
 0xaae   :  { %v3208_v21 = vpop.f32.mrf.mxu2  ;;  %v3221_v37 = vpop.f32.mrf.mxu3 }
 0xaaf   :  { %v3228_v27 = vadd.f32 %v3221_v37, %v2223_v18  ;;  %v3184_v19 = vpop.f32.mrf.mxu0  ;;  %v3197_v8 = vpop.f32.mrf.mxu1  ;;  %v3227_v55 = vadd.f32 %v3208_v21, %v2194_v38 }
 0xab0   :  { %v6468_v8 = vld [vmem:[#allocation42_spill] sm:$0xff] }
 0xab1   :  { %v4082_v12 = vmul.f32 -1.442695, %v3228_v27 }
 0xab2   :  { %v4440_v44 = vpop.eup %4439 }
 0xab3   :  { %v4442_v50 = vpop.eup %4441  ;;  %v3232_v52 = vadd.f32 1.0, %v4440_v44  ;;  %4443 = vpow2.f32 %v4082_v12  ;;  %v2225_v12 = vadd.f32 %v6468_v8, %v6066_v11 }
 0xab4   :  { %v3251_v20 = vadd.f32 1.0, %v4442_v50 }
 0xab5   :  { %4445 = vrcp.f32 %v3232_v52  ;;  %v3244_v14 = vand.u32 2147483648, %v3232_v52  ;;  %v3242_v10 = vand.u32 2147483647, %v3232_v52  ;;  %vm3238_vm11 = vweird.f32 %v3232_v52 }
 0xab6   :  { %4447 = vrcp.f32 %v3251_v20  ;;  %v3210_v7 = vpop.f32.mrf.mxu2  ;;  %v3223_v39 = vpop.f32.mrf.mxu3  ;;  %v3263_v31 = vand.u32 2147483648, %v3251_v20  ;;  %v3261_v51 = vand.u32 2147483647, %v3251_v20  ;;  %vm3257_vm12 = vweird.f32 %v3251_v20 }
 0xab7   :  { %v3245_v24 = vor.u32 1.1754944e-38, %v3244_v14  ;;  %vm3243_vm15 = vcmp.eq.f32.partialorder %v3242_v10, 8.507059e+37 }
 0xab8   :  { %v3264_v15 = vor.u32 1.1754944e-38, %v3263_v31  ;;  %vm3262_vm0 = vcmp.eq.f32.partialorder %v3261_v51, 8.507059e+37 }
 0xab9   :  { %v4444_v60 = vpop.eup %4443 }
 0xaba   :  { %v3271_v3 = vadd.f32 1.0, %v4444_v60 }
 0xabb   :  { %v4446_v41 = vpop.eup %4445 }
 0xabc   :  { %v4448_v62 = vpop.eup %4447  ;;  %v3234_v58 = vmul.f32 %v4446_v41, %v3232_v52  ;;  %4449 = vrcp.f32 %v3271_v3  ;;  %vm3239_vm9 = vweird.f32 %v4446_v41  ;;  %v3283_v34 = vand.u32 2147483648, %v3271_v3 }
 0xabd   :  { %v3253_v13 = vmul.f32 %v4448_v62, %v3251_v20  ;;  %4451 = vtanh.f32 %v3227_v55  ;;  %vm3258_vm10 = vweird.f32 %v4448_v62  ;;  %vm3240_vm13 = vmor %vm3238_vm11, %vm3239_vm9  ;;  %vm3277_vm2 = vweird.f32 %v3271_v3  ;;  %v6469_v55 = vld [vmem:[#allocation43_spill] sm:$0xff] }
 0xabe   :  { %v3235_v48 = vsub.f32 1.0, %v3234_v58  ;;  %vm3259_vm14 = vmor %vm3257_vm12, %vm3258_vm10  ;;  %v3281_v25 = vand.u32 2147483647, %v3271_v3  ;;  %v3284_v63 = vor.u32 1.1754944e-38, %v3283_v34  ;;  %v2196_v11 = vadd.f32 %v6469_v55, %v6444_v4 }
 0xabf   :  { %v3254_v47 = vsub.f32 1.0, %v3253_v13 }
 0xac0   :  { %v3236_v2 = vmul.f32 %v4446_v41, %v3235_v48  ;;  %vm3282_vm4 = vcmp.eq.f32.partialorder %v3281_v25, 8.507059e+37 }
 0xac1   :  { %v3255_v56 = vmul.f32 %v4448_v62, %v3254_v47 }
 0xac2   :  { %v4450_v57 = vpop.eup %4449  ;;  %v3237_v33 = vadd.f32 %v4446_v41, %v3236_v2 }
 0xac3   :  { %v3256_v16 = vadd.f32 %v4448_v62, %v3255_v56  ;;  %v3273_v6 = vmul.f32 %v4450_v57, %v3271_v3  ;;  %v4452_v36 = vpop.eup %4451  ;;  %vm3278_vm1 = vweird.f32 %v4450_v57 }
 0xac4   :  { %v3241_v59 = vsel %vm3240_vm13, %v4446_v41, %v3237_v33  ;;  %vm3279_vm3 = vmor %vm3277_vm2, %vm3278_vm1 }
 0xac5   :  { %v3246_v53 = vsel %vm3243_vm15, %v3245_v24, %v3241_v59  ;;  %v3260_v42 = vsel %vm3259_vm14, %v4448_v62, %v3256_v16  ;;  %v3274_v0 = vsub.f32 1.0, %v3273_v6 }
 0xac6   :  { %v3265_v1 = vsel %vm3262_vm0, %v3264_v15, %v3260_v42  ;;  %v3288_v45 = vmul.f32 %v4452_v36, %v3246_v53 }
 0xac7   :  { %v3287_v22 = vmul.f32 %v3265_v1, %v6292_v61  ;;  %v3275_v40 = vmul.f32 %v4450_v57, %v3274_v0  ;;  %v6466_v61 = vld [vmem:[#allocation39_spill] sm:$0xff] }
 0xac8   :  { %v2138_v32 = vadd.f32 %v6466_v61, %v6056_v30 }
 0xac9   :  { %v6304_v5 = vadd.f32 %v3288_v45, %v3287_v22  ;;  %v3276_v9 = vadd.f32 %v4450_v57, %v3275_v40 }
 0xacb   :  { %4453 = vtanh.f32 %v6304_v5  ;;  %v3280_v26 = vsel %vm3279_vm3, %v4450_v57, %v3276_v9 }
 0xacc   :  { %v3285_v29 = vsel %vm3282_vm4, %v3284_v63, %v3280_v26 }
 0xad1   :  { %v4454_v17 = vpop.eup %4453 }
 0xad2   :  { %v3291_v46 = vmul.f32 %v4454_v17, %v3285_v29 }
 0xad4   :  { %3292 = vst [vmem:[#allocation4 + $0x30] sm:$0xff] %v3291_v46  ;;  %v3297_v43 = vpack.c.bf16 %v3291_v46, %v3291_v46 }
 0xad6   :  { %3306 = vmatmul.bf16.vlgmr.msrb.gmra.mxu0 %v3297_v43  ;;  %3319 = vmatmul.bf16.vlgmr.msrb.gmra.mxu1 %v3297_v43 }
 0xad7   :  { %3332 = vmatmul.bf16.vlgmr.msrb.gmra.mxu2 %v3297_v43  ;;  %3345 = vmatmul.bf16.vlgmr.msrb.gmra.mxu3 %v3297_v43 }
 0xb53   :  { %v3307_v28 = vpop.f32.mrf.mxu0  ;;  %v3320_v18 = vpop.f32.mrf.mxu1 }
 0xb54   :  { %v3350_v21 = vadd.f32 %v3307_v28, %v2138_v32  ;;  %v3351_v37 = vadd.f32 %v3320_v18, %v2167_v23  ;;  %v3431_v23 = vld [vmem:[#allocation4 + $0x2] ss:$8 sm:$0xf]  ;;  %v3437_v28 = vld [vmem:[#allocation4 + $0x3] ss:$8 sm:$0xf] }
 0xb55   :  { %v3443_v18 = vld [vmem:[#allocation4 + $0x4] ss:$8 sm:$0xf] }
 0xb56   :  { %v4083_v27 = vmul.f32 -1.442695, %v3350_v21  ;;  %v4084_v19 = vmul.f32 -1.442695, %v3351_v37 }
 0xb58   :  { %4455 = vpow2.f32 %v4083_v27  ;;  %v3449_v27 = vld [vmem:[#allocation4 + $0x5] ss:$8 sm:$0xf] }
 0xb59   :  { %4457 = vpow2.f32 %v4084_v19 }
 0xb5a   :  { %v3333_v44 = vpop.f32.mrf.mxu2  ;;  %v3346_v50 = vpop.f32.mrf.mxu3 }
 0xb5b   :  { %v3353_v52 = vadd.f32 %v3346_v50, %v2225_v12  ;;  %v3309_v20 = vpop.f32.mrf.mxu0  ;;  %v3322_v7 = vpop.f32.mrf.mxu1  ;;  %v3352_v13 = vadd.f32 %v3333_v44, %v2196_v11 }
 0xb5d   :  { %v4085_v30 = vmul.f32 -1.442695, %v3353_v52 }
 0xb5e   :  { %v4456_v39 = vpop.eup %4455 }
 0xb5f   :  { %v4458_v60 = vpop.eup %4457  ;;  %v3357_v49 = vadd.f32 1.0, %v4456_v39  ;;  %4459 = vpow2.f32 %v4085_v30 }
 0xb60   :  { %v3376_v35 = vadd.f32 1.0, %v4458_v60 }
 0xb61   :  { %4461 = vrcp.f32 %v3357_v49  ;;  %v3369_v10 = vand.u32 2147483648, %v3357_v49  ;;  %v3367_v57 = vand.u32 2147483647, %v3357_v49  ;;  %vm3363_vm7 = vweird.f32 %v3357_v49 }
 0xb62   :  { %4463 = vrcp.f32 %v3376_v35  ;;  %v3335_v38 = vpop.f32.mrf.mxu2  ;;  %v3348_v3 = vpop.f32.mrf.mxu3  ;;  %v3388_v56 = vand.u32 2147483648, %v3376_v35  ;;  %v3386_v24 = vand.u32 2147483647, %v3376_v35  ;;  %vm3382_vm8 = vweird.f32 %v3376_v35 }
 0xb63   :  { %v3370_v6 = vor.u32 1.1754944e-38, %v3369_v10  ;;  %vm3368_vm11 = vcmp.eq.f32.partialorder %v3367_v57, 8.507059e+37  ;;  %v3461_v38 = vld [vmem:[#allocation4 + $0x7] ss:$8 sm:$0xf] }
 0xb64   :  { %v3389_v36 = vor.u32 1.1754944e-38, %v3388_v56  ;;  %vm3387_vm12 = vcmp.eq.f32.partialorder %v3386_v24, 8.507059e+37 }
 0xb65   :  { %v4460_v41 = vpop.eup %4459 }
 0xb66   :  { %v3396_v62 = vadd.f32 1.0, %v4460_v41 }
 0xb67   :  { %v4462_v58 = vpop.eup %4461 }
 0xb68   :  { %v4464_v48 = vpop.eup %4463  ;;  %v3359_v47 = vmul.f32 %v4462_v58, %v3357_v49  ;;  %4465 = vrcp.f32 %v3396_v62  ;;  %vm3364_vm5 = vweird.f32 %v4462_v58  ;;  %v3408_v63 = vand.u32 2147483648, %v3396_v62  ;;  %v3455_v49 = vld [vmem:[#allocation4 + $0x6] ss:$8 sm:$0xf] }
 0xb69   :  { %v3378_v14 = vmul.f32 %v4464_v48, %v3376_v35  ;;  %4467 = vtanh.f32 %v3352_v13  ;;  %vm3383_vm6 = vweird.f32 %v4464_v48  ;;  %vm3365_vm9 = vmor %vm3363_vm7, %vm3364_vm5  ;;  %vm3402_vm14 = vweird.f32 %v3396_v62 }
 0xb6a   :  { %v3360_v31 = vsub.f32 1.0, %v3359_v47  ;;  %vm3384_vm10 = vmor %vm3382_vm8, %vm3383_vm6  ;;  %v3406_v17 = vand.u32 2147483647, %v3396_v62  ;;  %v3409_v46 = vor.u32 1.1754944e-38, %v3408_v63 }
 0xb6b   :  { %v3379_v2 = vsub.f32 1.0, %v3378_v14 }
 0xb6c   :  { %v3361_v51 = vmul.f32 %v4462_v58, %v3360_v31  ;;  %vm3407_vm0 = vcmp.eq.f32.partialorder %v3406_v17, 8.507059e+37 }
 0xb6d   :  { %v3380_v33 = vmul.f32 %v4464_v48, %v3379_v2 }
 0xb6e   :  { %v4466_v16 = vpop.eup %4465  ;;  %v3362_v4 = vadd.f32 %v4462_v58, %v3361_v51 }
 0xb6f   :  { %v3381_v15 = vadd.f32 %v4464_v48, %v3380_v33  ;;  %v3398_v59 = vmul.f32 %v4466_v16, %v3396_v62  ;;  %v4468_v42 = vpop.eup %4467  ;;  %vm3403_vm13 = vweird.f32 %v4466_v16 }
 0xb70   :  { %v3366_v53 = vsel %vm3365_vm9, %v4462_v58, %v3362_v4  ;;  %vm3404_vm15 = vmor %vm3402_vm14, %vm3403_vm13 }
 0xb71   :  { %v3371_v0 = vsel %vm3368_vm11, %v3370_v6, %v3366_v53  ;;  %v3385_v1 = vsel %vm3384_vm10, %v4464_v48, %v3381_v15  ;;  %v3399_v45 = vsub.f32 1.0, %v3398_v59 }
 0xb72   :  { %v3390_v22 = vsel %vm3387_vm12, %v3389_v36, %v3385_v1  ;;  %v3413_v40 = vmul.f32 %v4468_v42, %v3371_v0 }
 0xb73   :  { %v3412_v9 = vmul.f32 %v3390_v22, %v6304_v5  ;;  %v3400_v34 = vmul.f32 %v4466_v16, %v3399_v45  ;;  %v3420_v5 = vld [vmem:[#allocation4] ss:$8 sm:$0xf] }
 0xb75   :  { %v3414_v25 = vadd.f32 %v3413_v40, %v3412_v9  ;;  %v3401_v26 = vadd.f32 %v4466_v16, %v3400_v34 }
 0xb77   :  { %4469 = vtanh.f32 %v3414_v25  ;;  %3419 = vst [vmem:[%s6356_s10 + $0x8] sm:$0xff] %v3414_v25  ;;  %v3405_v29 = vsel %vm3404_vm15, %v4466_v16, %v3401_v26 }
 0xb78   :  { %v3410_v61 = vsel %vm3407_vm0, %v3409_v46, %v3405_v29 }
 0xb7d   :  { %v4470_v43 = vpop.eup %4469 }
 0xb7e   :  { %v3416_v32 = vmul.f32 %v4470_v43, %v3410_v61 }
 0xb80   :  { %3417 = vst [vmem:[#allocation4 + $0x38] sm:$0xff] %v3416_v32 }
 0xb81   :  { %3418 = vst [vmem:[%s6355_s9 + $0x8] sm:$0xff] %v3416_v32 }
 0xb87   :  { %v3421_v21 = vld [vmem:[#allocation4] ss:$8 sm:$0xf0]  ;;  %v3426_v37 = vld [vmem:[#allocation4 + $0x1] ss:$8 sm:$0xf0] }
 0xb88   :  { %v3422_v19 = vor.u32 %v3421_v21, %v3420_v5  ;;  %v3427_v8 = vor.u32 %v3426_v37, %v3425_v54  ;;  %v3432_v12 = vld [vmem:[#allocation4 + $0x2] ss:$8 sm:$0xf0]  ;;  %v3438_v44 = vld [vmem:[#allocation4 + $0x3] ss:$8 sm:$0xf0] }
 0xb89   :  { %v3433_v50 = vor.u32 %v3432_v12, %v3431_v23  ;;  %v3439_v52 = vor.u32 %v3438_v44, %v3437_v28  ;;  %v3444_v20 = vld [vmem:[#allocation4 + $0x4] ss:$8 sm:$0xf0]  ;;  %v3450_v7 = vld [vmem:[#allocation4 + $0x5] ss:$8 sm:$0xf0] }
 0xb8a   :  { %3423 = vst [vmem:[%s6354_s8] sm:$0xff] %v3422_v19  ;;  %v3445_v30 = vor.u32 %v3444_v20, %v3443_v18  ;;  %v3456_v39 = vld [vmem:[#allocation4 + $0x6] ss:$8 sm:$0xf0]  ;;  %v3462_v60 = vld [vmem:[#allocation4 + $0x7] ss:$8 sm:$0xf0]  ;;  %v3451_v35 = vor.u32 %v3450_v7, %v3449_v27 }
 0xb8b   :  { %4086 = vst [vmem:[%s6354_s8 + $0x8] sm:$0xff] %v3427_v8  ;;  %v3457_v3 = vor.u32 %v3456_v39, %v3455_v49  ;;  %v3463_v41 = vor.u32 %v3462_v60, %v3461_v38 }
 0xb8c   :  { %4087 = vst [vmem:[%s6354_s8 + $0x10] sm:$0xff] %v3433_v50 }
 0xb8d   :  { %4088 = vst [vmem:[%s6354_s8 + $0x18] sm:$0xff] %v3439_v52 }
 0xb8e   :  { %4089 = vst [vmem:[%s6354_s8 + $0x20] sm:$0xff] %v3445_v30 }
 0xb8f   :  { %4090 = vst [vmem:[%s6354_s8 + $0x28] sm:$0xff] %v3451_v35 }
 0xb90   :  { %4091 = vst [vmem:[%s6354_s8 + $0x30] sm:$0xff] %v3457_v3 }
 0xb91   :  { %4092 = vst [vmem:[%s6354_s8 + $0x38] sm:$0xff] %v3463_v41 }
 0xb92   :  { %3478 = vsyncpa [#allocation7], 1 }
 0xb93   :  { %3479 = vsyncmov [#allocation5] }
 0xb96   :  { %s3480_s19 = vpop.sfrf %3479 }
 0xb97   :  { %p4093_p4 = scmp.ne.s32.totalorder %s3480_s19, 0 }
 0xb99   :  { %3484 = shalt.err (%p4093_p4)  }
 0xb9a   :  { %3486 = vsyncmov [#allocation5 + $0x1] }
 0xb9d   :  { %s3487_s3 = vpop.sfrf %3486 }
 0xb9e   :  { %p4094_p5 = scmp.ne.s32.totalorder %s3487_s3, 0 }
 0xba0   :  { %3491 = shalt.err (%p4094_p5)  }
 0xba1   :  { %3493 = vsyncmov [#allocation5 + $0x2] }
 0xba4   :  { %s3494_s20 = vpop.sfrf %3493 }
 0xba5   :  { %p4095_p6 = scmp.ne.s32.totalorder %s3494_s20, 0 }
 0xba7   :  { %3498 = shalt.err (%p4095_p6)  }
 0xba8   :  { %3500 = vsyncmov [#allocation5 + $0x3] }
 0xbab   :  { %s3501_s4 = vpop.sfrf %3500 }
 0xbac   :  { %p4096_p7 = scmp.ne.s32.totalorder %s3501_s4, 0 }
 0xbae   :  { %3505 = shalt.err (%p4096_p7)  }
 0xbaf   :  { %3507 = vsyncmov [#allocation5 + $0x4] }
 0xbb2   :  { %s3508_s6 = vpop.sfrf %3507 }
 0xbb3   :  { %p4097_p8 = scmp.ne.s32.totalorder %s3508_s6, 0 }
 0xbb5   :  { %3512 = shalt.err (%p4097_p8)  }
 0xbb6   :  { %3514 = vsyncmov [#allocation5 + $0x5] }
 0xbb9   :  { %s3515_s8 = vpop.sfrf %3514 }
 0xbba   :  { %p4098_p9 = scmp.ne.s32.totalorder %s3515_s8, 0 }
 0xbbc   :  { %3519 = shalt.err (%p4098_p9)  }
 0xbbd   :  { %3521 = vsyncmov [#allocation5 + $0x6] }
 0xbc0   :  { %s3522_s21 = vpop.sfrf %3521 }
 0xbc1   :  { %p4099_p10 = scmp.ne.s32.totalorder %s3522_s21, 0 }
 0xbc3   :  { %3526 = shalt.err (%p4099_p10)  }
 0xbc4   :  { %3528 = vsyncmov [#allocation5 + $0x7] }
 0xbc7   :  { %s3529_s22 = vpop.sfrf %3528 }
 0xbc8   :  { %p4100_p11 = scmp.ne.s32.totalorder %s3529_s22, 0 }
 0xbca   :  { %3533 = shalt.err (%p4100_p11)  }

</bundles_post_ra>
